<compile_context>
chip_gen: v6e
topology: v6e:2x2x1
jax: 0.10.0
libtpu: 0.0.40
codegen_flags: <defaults>
</compile_context>

<pallas_src>
import functools

import jax
import jax.numpy as jnp
from jax.experimental import pallas as pl
from jax.experimental.pallas import tpu as pltpu

NUM_NUC_TYPES = 7
LN_EPS = 1e-5


def _nucleotide_encoder_kernel(x_ref, emb_w_ref, emb_b_ref,
                               conv_w_ref, conv_b_ref,
                               gamma_ref, beta_ref,
                               out_ref, *, num_layers, seq_len, true_f):
    """One batch-block of `bt` sequences flattened to M = bt*seq_len rows.

    x_ref:      (M, 7)                 one-hot nucleotides, bf16
    emb_w_ref:  (7, Fp)                Linear weight (pre-transposed), bf16
    emb_b_ref:  (1, Fp)                f32
    conv_w_ref: (num_layers, Fp, 3Fp)  [W_prev | W_ctr | W_next] per layer, bf16
    conv_b_ref / gamma_ref / beta_ref: (num_layers, Fp) f32
    out_ref:    (M, Fp)                f32
    """
    M, Fp = out_ref.shape

    # Embedding: Linear(7 -> F).  bf16 operands, f32 accumulation.
    h = jnp.dot(x_ref[...], emb_w_ref[...],
                preferred_element_type=jnp.float32) + emb_b_ref[...]      # (M, Fp) f32

    # Edge / feature masks built ONCE at full (M, Fp) shape and reused every layer.
    pos = jax.lax.broadcasted_iota(jnp.int32, (M, Fp), 0) % seq_len
    not_first = pos != 0
    not_last = pos != seq_len - 1
    pad_feats = Fp != true_f
    if pad_feats:
        feat_ok = jax.lax.broadcasted_iota(jnp.int32, (M, Fp), 1) < true_f

    inv_f = 1.0 / true_f
    c_prev = None
    for i in range(num_layers):
        # Conv1d(F, F, kernel_size=3, padding=1) as ONE (M, Fp) @ (Fp, 3Fp) matmul.
        y = jnp.dot(h.astype(jnp.bfloat16), conv_w_ref[i],
                    preferred_element_type=jnp.float32)                   # (M, 3Fp)
        # Recover the taps by rolling the OUTPUT (static lane-aligned slices):
        #   c[m] = h[m-1] @ W_prev + h[m] @ W_ctr + h[m+1] @ W_next,
        # with zero contribution beyond sequence edges (pltpu.roll needs shift >= 0:
        # +1 == previous row, M-1 == next row; wrap-around rows are masked off).
        c = (jnp.where(not_first, pltpu.roll(y[:, :Fp], shift=1, axis=0), 0.0)
             + y[:, Fp:2 * Fp]
             + jnp.where(not_last, pltpu.roll(y[:, 2 * Fp:], shift=M - 1, axis=0), 0.0)
             + conv_b_ref[pl.ds(i, 1), :])

        # LayerNorm over the TRUE feature width (biased variance, like nn.LayerNorm).
        mu = jnp.sum(c, axis=-1, keepdims=True) * inv_f    # padded cols of c are 0
        d = c - mu
        if pad_feats:
            d = jnp.where(feat_ok, d, 0.0)                 # keep stats over true F only
        var = jnp.sum(d * d, axis=-1, keepdims=True) * inv_f
        n = d * jax.lax.rsqrt(var + LN_EPS)
        n = n * gamma_ref[pl.ds(i, 1), :] + beta_ref[pl.ds(i, 1), :]

        # TODO(synk): dropout is identity at inference time (no PRNG mask applied).

        # Residual: PyTorch adds the PREVIOUS layer's pre-norm conv output.
        h = n if i == 0 else n + c_prev
        c_prev = c

    out_ref[...] = h


def _choose_batch_block(batch, seq_len, target_rows):
    """Largest divisor of `batch` whose flattened row count (d*seq_len) fits
    `target_rows` and is 16-row aligned (bf16 sublane tile).  Prefers an EVEN
    number of grid steps (v7x dual-TC split), then >= 2 steps, then the largest
    legal block.  Fallback (full batch) is always a legal full-array block."""
    cap = max(target_rows, seq_len)
    cands = [d for d in range(1, batch + 1)
             if batch % d == 0 and d * seq_len <= cap and (d * seq_len) % 16 == 0]
    if not cands:
        return batch
    even = [d for d in cands if (batch // d) >= 2 and (batch // d) % 2 == 0]
    if even:
        return max(even)
    multi = [d for d in cands if batch // d >= 2]
    return max(multi) if multi else max(cands)


def nucleotide_encoder(x, params, *, target_rows=1024):
    """x: (B, L, 7) float32 one-hot. Returns (B, L, F) float32."""
    B, L, _ = x.shape
    F = params["emb_w"].shape[1]
    num_layers = params["conv_w"].shape[0]

    # Pad the feature dim up to a lane multiple: keeps the fused matmul and makes
    # the output stores full-lane (no masked vst).  Padded weight rows/cols are 0.
    Fp = ((F + 127) // 128) * 128
    pf = Fp - F

    emb_w, emb_b = params["emb_w"], params["emb_b"]
    conv_w, conv_b = params["conv_w"], params["conv_b"]
    gamma, beta = params["gamma"], params["beta"]
    if pf:
        emb_w = jnp.pad(emb_w, ((0, 0), (0, pf)))
        emb_b = jnp.pad(emb_b, ((0, 0), (0, pf)))
        conv_w = jnp.pad(conv_w, ((0, 0), (0, 0), (0, pf), (0, pf)))
        conv_b = jnp.pad(conv_b, ((0, 0), (0, pf)))
        gamma = jnp.pad(gamma, ((0, 0), (0, pf)))
        beta = jnp.pad(beta, ((0, 0), (0, pf)))

    # Weight-side tap fusion: W_all[l] = [W_prev | W_ctr | W_next] -> (Fp, 3Fp).
    conv_w_all = jnp.transpose(conv_w, (0, 2, 1, 3)).reshape(num_layers, Fp, 3 * Fp)

    # Matmul operands in bf16 (native MXU path); biases / LN params stay f32.
    emb_w = emb_w.astype(jnp.bfloat16)
    conv_w_all = conv_w_all.astype(jnp.bfloat16)

    bt = _choose_batch_block(B, L, target_rows)
    M = bt * L
    grid = (B // bt,)

    x_flat = x.reshape(B * L, NUM_NUC_TYPES).astype(jnp.bfloat16)

    kernel = functools.partial(_nucleotide_encoder_kernel,
                               num_layers=num_layers, seq_len=L, true_f=F)

    # Single-buffer the resident (grid-invariant) weights when they are big enough
    # for the duplicate copy to matter (primarily a v7x / large-F VMEM knob).
    weight_pipe = dict(pipeline_mode=pl.Buffered(1)) if Fp >= 256 else {}

    out_flat = pl.pallas_call(
        kernel,
        out_shape=jax.ShapeDtypeStruct((B * L, Fp), jnp.float32),
        grid_spec=pltpu.PrefetchScalarGridSpec(
            num_scalar_prefetch=0,
            grid=grid,
            in_specs=[
                pl.BlockSpec((M, NUM_NUC_TYPES), lambda g: (g, 0)),
                pl.BlockSpec((NUM_NUC_TYPES, Fp), lambda g: (0, 0), **weight_pipe),
                pl.BlockSpec((1, Fp), lambda g: (0, 0), **weight_pipe),
                pl.BlockSpec((num_layers, Fp, 3 * Fp), lambda g: (0, 0, 0), **weight_pipe),
                pl.BlockSpec((num_layers, Fp), lambda g: (0, 0), **weight_pipe),
                pl.BlockSpec((num_layers, Fp), lambda g: (0, 0), **weight_pipe),
                pl.BlockSpec((num_layers, Fp), lambda g: (0, 0), **weight_pipe),
            ],
            out_specs=pl.BlockSpec((M, Fp), lambda g: (g, 0)),
        ),
        compiler_params=pltpu.CompilerParams(
            dimension_semantics=("parallel",),
            vmem_limit_bytes=48 * 1024 * 1024),   # room for larger M; < v7x 64 MiB
    )(x_flat, emb_w, emb_b, conv_w_all, conv_b, gamma, beta)

    out = out_flat[:, :F] if pf else out_flat
    return out.reshape(B, L, F)


def init_params(key, nucleotide_features, num_layers):
    """Deterministic synthetic parameters (shapes match the PyTorch module)."""
    F = nucleotide_features
    k_emb, k_embb, k_cw, k_cb = jax.random.split(key, 4)

    emb_bound = 1.0 / jnp.sqrt(NUM_NUC_TYPES)
    # stored pre-transposed: (7, F) so the forward does x @ emb_w
    emb_w = jax.random.uniform(k_emb, (NUM_NUC_TYPES, F), jnp.float32,
                               -emb_bound, emb_bound)
    emb_b = jax.random.uniform(k_embb, (1, F), jnp.float32, -emb_bound, emb_bound)

    conv_bound = 1.0 / jnp.sqrt(F * 3)
    # conv_w[l, k] corresponds to PyTorch conv_l.weight[:, :, k].T -> (F_in, F_out)
    conv_w = jax.random.uniform(k_cw, (num_layers, 3, F, F), jnp.float32,
                                -conv_bound, conv_bound)
    conv_b = jax.random.uniform(k_cb, (num_layers, F), jnp.float32,
                                -conv_bound, conv_bound)

    gamma = jnp.ones((num_layers, F), jnp.float32)
    beta = jnp.zeros((num_layers, F), jnp.float32)

    return {"emb_w": emb_w, "emb_b": emb_b, "conv_w": conv_w,
            "conv_b": conv_b, "gamma": gamma, "beta": beta}


def reference_forward(x, p, matmul_dtype=None):
    """Plain-JAX reference matching the PyTorch forward semantics.

    matmul_dtype=None  -> f32 HIGHEST-precision matmuls.
    matmul_dtype=bf16  -> same bf16 matmul operands / f32 accumulation as the kernel.
    """
    hp = jax.lax.Precision.HIGHEST

    def dot(a, b):
        if matmul_dtype is not None:
            return jnp.dot(a.astype(matmul_dtype), b.astype(matmul_dtype),
                           preferred_element_type=jnp.float32)
        return jnp.dot(a, b, precision=hp)

    B, L, _ = x.shape
    h = dot(x, p["emb_w"]) + p["emb_b"][0]
    c_prev = None
    for i in range(p["conv_w"].shape[0]):
        prev_h = jnp.pad(h, ((0, 0), (1, 0), (0, 0)))[:, :L, :]
        next_h = jnp.pad(h, ((0, 0), (0, 1), (0, 0)))[:, 1:, :]
        c = (dot(prev_h, p["conv_w"][i, 0])
             + dot(h, p["conv_w"][i, 1])
             + dot(next_h, p["conv_w"][i, 2])
             + p["conv_b"][i])
        mu = c.mean(-1, keepdims=True)
        var = ((c - mu) ** 2).mean(-1, keepdims=True)
        n = (c - mu) / jnp.sqrt(var + LN_EPS) * p["gamma"][i] + p["beta"][i]
        h = n if i == 0 else n + c_prev
        c_prev = c
    return h


if __name__ == "__main__":
    key = jax.random.PRNGKey(0)

    # (B, L, F, layers): F=128 exercises the lane-aligned fast path,
    # F=96 exercises the pad-to-128 path with masked LayerNorm stats.
    for (B, L, F, num_layers) in [(16, 32, 128, 2), (8, 32, 96, 2)]:
        key, k_params, k_seq = jax.random.split(key, 3)
        params = init_params(k_params, F, num_layers)

        nt_ids = jax.random.randint(k_seq, (B, L), 0, NUM_NUC_TYPES)
        x = jax.nn.one_hot(nt_ids, NUM_NUC_TYPES, dtype=jnp.float32)

        out = jax.block_until_ready(nucleotide_encoder(x, params))
        assert out.shape == (B, L, F)

        # Tight check vs a reference using the same bf16 matmul operands.
        ref_bf16 = reference_forward(x, params, matmul_dtype=jnp.bfloat16)
        err_b = float(jnp.max(jnp.abs(out - ref_bf16)))
        assert jnp.allclose(out, ref_bf16, atol=2e-3, rtol=2e-3), \
            f"(B={B},L={L},F={F}) mismatch vs bf16 reference (max_err={err_b})"

        # Loose sanity check vs the full-f32 reference (LayerNorm bounds bf16 drift).
        ref_f32 = reference_forward(x, params)
        err_f = float(jnp.max(jnp.abs(out - ref_f32)))
        assert jnp.allclose(out, ref_f32, atol=5e-2, rtol=5e-2), \
            f"(B={B},L={L},F={F}) drift vs f32 reference too large (max_err={err_f})"

    print("KERNEL_OK")
</pallas_src>

<mosaic_0001>
module attributes {stable_mosaic.version = 11 : i64} {
  func.func @_nucleotide_encoder_kernel(%arg0: i32, %arg1: memref<256x7xbf16, #tpu.memory_space<vmem>>, %arg2: memref<7x128xbf16, #tpu.memory_space<vmem>>, %arg3: memref<1x128xf32, #tpu.memory_space<vmem>>, %arg4: memref<2x128x384xbf16, #tpu.memory_space<vmem>>, %arg5: memref<2x128xf32, #tpu.memory_space<vmem>>, %arg6: memref<2x128xf32, #tpu.memory_space<vmem>>, %arg7: memref<2x128xf32, #tpu.memory_space<vmem>>, %arg8: memref<256x128xf32, #tpu.memory_space<vmem>>) attributes {dimension_semantics = [#tpu.dimension_semantics<parallel>], iteration_bounds = array<i64: 2>, scalar_prefetch = 0 : i64, scratch_operands = 0 : i64, tpu.core_type = #tpu.core_type<tc>, window_params = [{transform_indices = @transform_0, window_bounds = array<i64: 256, 7>}, {pipeline_mode = #tpu.pipeline_mode<synchronous>, transform_indices = @transform_1, window_bounds = array<i64: 7, 128>}, {pipeline_mode = #tpu.pipeline_mode<synchronous>, transform_indices = @transform_2, window_bounds = array<i64: 1, 128>}, {pipeline_mode = #tpu.pipeline_mode<synchronous>, transform_indices = @transform_3, window_bounds = array<i64: 2, 128, 384>}, {pipeline_mode = #tpu.pipeline_mode<synchronous>, transform_indices = @transform_4, window_bounds = array<i64: 2, 128>}, {pipeline_mode = #tpu.pipeline_mode<synchronous>, transform_indices = @transform_5, window_bounds = array<i64: 2, 128>}, {pipeline_mode = #tpu.pipeline_mode<synchronous>, transform_indices = @transform_6, window_bounds = array<i64: 2, 128>}, {transform_indices = @transform_7, window_bounds = array<i64: 256, 128>}]} {
    %c0 = arith.constant 0 : index
    %c0_0 = arith.constant 0 : index
    %0 = vector.load %arg1[%c0, %c0_0] : memref<256x7xbf16, #tpu.memory_space<vmem>>, vector<256x7xbf16>
    %c0_1 = arith.constant 0 : index
    %c0_2 = arith.constant 0 : index
    %1 = vector.load %arg2[%c0_1, %c0_2] : memref<7x128xbf16, #tpu.memory_space<vmem>>, vector<7x128xbf16>
    %cst = arith.constant dense<0.000000e+00> : vector<256x128xf32>
    %2 = tpu.matmul %0, %1, %cst {dimension_numbers = #tpu.dot_dimension_numbers<[1], [0], [0], [1], [0, 0, 1, 1], [], []>} : vector<256x7xbf16>, vector<7x128xbf16>, vector<256x128xf32> -> vector<256x128xf32>
    %c0_3 = arith.constant 0 : index
    %c0_4 = arith.constant 0 : index
    %3 = vector.load %arg3[%c0_3, %c0_4] : memref<1x128xf32, #tpu.memory_space<vmem>>, vector<1x128xf32>
    %4 = vector.broadcast %3 : vector<1x128xf32> to vector<256x128xf32>
    %5 = arith.addf %2, %4 : vector<256x128xf32>
    %6 = tpu.iota {dimensions = array<i32: 0>} : vector<256x128xi32>
    %c32_i32 = arith.constant 32 : i32
    %c0_i32 = arith.constant 0 : i32
    %7 = arith.cmpi eq, %c32_i32, %c0_i32 : i32
    %c1_i32 = arith.constant 1 : i32
    %8 = arith.select %7, %c1_i32, %c32_i32 : i32
    %9 = vector.broadcast %8 : i32 to vector<256x128xi32>
    %10 = arith.remsi %6, %9 : vector<256x128xi32>
    %c0_i32_5 = arith.constant 0 : i32
    %11 = vector.broadcast %c0_i32_5 : i32 to vector<256x128xi32>
    %12 = arith.cmpi ne, %10, %11 : vector<256x128xi32>
    %c0_i32_6 = arith.constant 0 : i32
    %13 = vector.broadcast %c0_i32_6 : i32 to vector<256x128xi32>
    %14 = arith.cmpi slt, %10, %13 : vector<256x128xi32>
    %c0_i32_7 = arith.constant 0 : i32
    %15 = arith.cmpi slt, %8, %c0_i32_7 : i32
    %16 = vector.broadcast %15 : i1 to vector<256x128xi1>
    %17 = vector.broadcast %16 : vector<256x128xi1> to vector<256x128xi1>
    %18 = arith.xori %14, %17 : vector<256x128xi1>
    %19 = arith.andi %18, %12 : vector<256x128xi1>
    %20 = vector.broadcast %8 : i32 to vector<256x128xi32>
    %21 = arith.addi %10, %20 : vector<256x128xi32>
    %22 = arith.select %19, %21, %10 : vector<256x128xi1>, vector<256x128xi32>
    %c0_i32_8 = arith.constant 0 : i32
    %23 = vector.broadcast %c0_i32_8 : i32 to vector<256x128xi32>
    %24 = arith.cmpi ne, %22, %23 : vector<256x128xi32>
    %c31_i32 = arith.constant 31 : i32
    %25 = vector.broadcast %c31_i32 : i32 to vector<256x128xi32>
    %26 = arith.cmpi ne, %22, %25 : vector<256x128xi32>
    %27 = arith.truncf %5 : vector<256x128xf32> to vector<256x128xbf16>
    %c0_9 = arith.constant 0 : index
    %c0_10 = arith.constant 0 : index
    %c0_11 = arith.constant 0 : index
    %28 = vector.load %arg4[%c0_9, %c0_10, %c0_11] : memref<2x128x384xbf16, #tpu.memory_space<vmem>>, vector<1x128x384xbf16>
    %29 = vector.shape_cast %28 : vector<1x128x384xbf16> to vector<128x384xbf16>
    %cst_12 = arith.constant dense<0.000000e+00> : vector<256x384xf32>
    %30 = tpu.matmul %27, %29, %cst_12 {dimension_numbers = #tpu.dot_dimension_numbers<[1], [0], [0], [1], [0, 0, 1, 1], [], []>} : vector<256x128xbf16>, vector<128x384xbf16>, vector<256x384xf32> -> vector<256x384xf32>
    %31 = vector.extract_strided_slice %30 {offsets = [0, 0], sizes = [256, 128], strides = [1, 1]} : vector<256x384xf32> to vector<256x128xf32>
    %c1_i32_13 = arith.constant 1 : i32
    %32 = tpu.dynamic_rotate %31 by %c1_i32_13 dim 0 : vector<256x128xf32>, i32 -> vector<256x128xf32>
    %cst_14 = arith.constant 0.000000e+00 : f32
    %33 = vector.broadcast %cst_14 : f32 to vector<256x128xf32>
    %34 = arith.select %24, %32, %33 : vector<256x128xi1>, vector<256x128xf32>
    %35 = vector.extract_strided_slice %30 {offsets = [0, 128], sizes = [256, 128], strides = [1, 1]} : vector<256x384xf32> to vector<256x128xf32>
    %36 = arith.addf %34, %35 : vector<256x128xf32>
    %37 = vector.extract_strided_slice %30 {offsets = [0, 256], sizes = [256, 128], strides = [1, 1]} : vector<256x384xf32> to vector<256x128xf32>
    %c255_i32 = arith.constant 255 : i32
    %38 = tpu.dynamic_rotate %37 by %c255_i32 dim 0 : vector<256x128xf32>, i32 -> vector<256x128xf32>
    %cst_15 = arith.constant 0.000000e+00 : f32
    %39 = vector.broadcast %cst_15 : f32 to vector<256x128xf32>
    %40 = arith.select %26, %38, %39 : vector<256x128xi1>, vector<256x128xf32>
    %41 = arith.addf %36, %40 : vector<256x128xf32>
    %c0_16 = arith.constant 0 : index
    %c0_17 = arith.constant 0 : index
    %42 = vector.load %arg5[%c0_16, %c0_17] : memref<2x128xf32, #tpu.memory_space<vmem>>, vector<1x128xf32>
    %43 = vector.broadcast %42 : vector<1x128xf32> to vector<256x128xf32>
    %44 = arith.addf %41, %43 : vector<256x128xf32>
    %cst_18 = arith.constant dense<0.000000e+00> : vector<256xf32>
    %45 = vector.multi_reduction <add>, %44, %cst_18 [1] : vector<256x128xf32> to vector<256xf32>
    %46 = vector.shape_cast %45 : vector<256xf32> to vector<256x1xf32>
    %cst_19 = arith.constant 7.812500e-03 : f32
    %47 = vector.broadcast %cst_19 : f32 to vector<256x1xf32>
    %48 = arith.mulf %46, %47 : vector<256x1xf32>
    %49 = vector.broadcast %48 : vector<256x1xf32> to vector<256x128xf32>
    %50 = arith.subf %44, %49 : vector<256x128xf32>
    %51 = arith.mulf %50, %50 : vector<256x128xf32>
    %cst_20 = arith.constant dense<0.000000e+00> : vector<256xf32>
    %52 = vector.multi_reduction <add>, %51, %cst_20 [1] : vector<256x128xf32> to vector<256xf32>
    %53 = vector.shape_cast %52 : vector<256xf32> to vector<256x1xf32>
    %cst_21 = arith.constant 7.812500e-03 : f32
    %54 = vector.broadcast %cst_21 : f32 to vector<256x1xf32>
    %55 = arith.mulf %53, %54 : vector<256x1xf32>
    %cst_22 = arith.constant 9.99999974E-6 : f32
    %56 = vector.broadcast %cst_22 : f32 to vector<256x1xf32>
    %57 = arith.addf %55, %56 : vector<256x1xf32>
    %58 = math.rsqrt %57 : vector<256x1xf32>
    %59 = vector.broadcast %58 : vector<256x1xf32> to vector<256x128xf32>
    %60 = arith.mulf %50, %59 : vector<256x128xf32>
    %c0_23 = arith.constant 0 : index
    %c0_24 = arith.constant 0 : index
    %61 = vector.load %arg6[%c0_23, %c0_24] : memref<2x128xf32, #tpu.memory_space<vmem>>, vector<1x128xf32>
    %62 = vector.broadcast %61 : vector<1x128xf32> to vector<256x128xf32>
    %63 = arith.mulf %60, %62 : vector<256x128xf32>
    %c0_25 = arith.constant 0 : index
    %c0_26 = arith.constant 0 : index
    %64 = vector.load %arg7[%c0_25, %c0_26] : memref<2x128xf32, #tpu.memory_space<vmem>>, vector<1x128xf32>
    %65 = vector.broadcast %64 : vector<1x128xf32> to vector<256x128xf32>
    %66 = arith.addf %63, %65 : vector<256x128xf32>
    %67 = arith.truncf %66 : vector<256x128xf32> to vector<256x128xbf16>
    %c1 = arith.constant 1 : index
    %c0_27 = arith.constant 0 : index
    %c0_28 = arith.constant 0 : index
    %68 = vector.load %arg4[%c1, %c0_27, %c0_28] : memref<2x128x384xbf16, #tpu.memory_space<vmem>>, vector<1x128x384xbf16>
    %69 = vector.shape_cast %68 : vector<1x128x384xbf16> to vector<128x384xbf16>
    %cst_29 = arith.constant dense<0.000000e+00> : vector<256x384xf32>
    %70 = tpu.matmul %67, %69, %cst_29 {dimension_numbers = #tpu.dot_dimension_numbers<[1], [0], [0], [1], [0, 0, 1, 1], [], []>} : vector<256x128xbf16>, vector<128x384xbf16>, vector<256x384xf32> -> vector<256x384xf32>
    %71 = vector.extract_strided_slice %70 {offsets = [0, 0], sizes = [256, 128], strides = [1, 1]} : vector<256x384xf32> to vector<256x128xf32>
    %c1_i32_30 = arith.constant 1 : i32
    %72 = tpu.dynamic_rotate %71 by %c1_i32_30 dim 0 : vector<256x128xf32>, i32 -> vector<256x128xf32>
    %cst_31 = arith.constant 0.000000e+00 : f32
    %73 = vector.broadcast %cst_31 : f32 to vector<256x128xf32>
    %74 = arith.select %24, %72, %73 : vector<256x128xi1>, vector<256x128xf32>
    %75 = vector.extract_strided_slice %70 {offsets = [0, 128], sizes = [256, 128], strides = [1, 1]} : vector<256x384xf32> to vector<256x128xf32>
    %76 = arith.addf %74, %75 : vector<256x128xf32>
    %77 = vector.extract_strided_slice %70 {offsets = [0, 256], sizes = [256, 128], strides = [1, 1]} : vector<256x384xf32> to vector<256x128xf32>
    %c255_i32_32 = arith.constant 255 : i32
    %78 = tpu.dynamic_rotate %77 by %c255_i32_32 dim 0 : vector<256x128xf32>, i32 -> vector<256x128xf32>
    %cst_33 = arith.constant 0.000000e+00 : f32
    %79 = vector.broadcast %cst_33 : f32 to vector<256x128xf32>
    %80 = arith.select %26, %78, %79 : vector<256x128xi1>, vector<256x128xf32>
    %81 = arith.addf %76, %80 : vector<256x128xf32>
    %c1_34 = arith.constant 1 : index
    %c0_35 = arith.constant 0 : index
    %82 = vector.load %arg5[%c1_34, %c0_35] : memref<2x128xf32, #tpu.memory_space<vmem>>, vector<1x128xf32>
    %83 = vector.broadcast %82 : vector<1x128xf32> to vector<256x128xf32>
    %84 = arith.addf %81, %83 : vector<256x128xf32>
    %cst_36 = arith.constant dense<0.000000e+00> : vector<256xf32>
    %85 = vector.multi_reduction <add>, %84, %cst_36 [1] : vector<256x128xf32> to vector<256xf32>
    %86 = vector.shape_cast %85 : vector<256xf32> to vector<256x1xf32>
    %cst_37 = arith.constant 7.812500e-03 : f32
    %87 = vector.broadcast %cst_37 : f32 to vector<256x1xf32>
    %88 = arith.mulf %86, %87 : vector<256x1xf32>
    %89 = vector.broadcast %88 : vector<256x1xf32> to vector<256x128xf32>
    %90 = arith.subf %84, %89 : vector<256x128xf32>
    %91 = arith.mulf %90, %90 : vector<256x128xf32>
    %cst_38 = arith.constant dense<0.000000e+00> : vector<256xf32>
    %92 = vector.multi_reduction <add>, %91, %cst_38 [1] : vector<256x128xf32> to vector<256xf32>
    %93 = vector.shape_cast %92 : vector<256xf32> to vector<256x1xf32>
    %cst_39 = arith.constant 7.812500e-03 : f32
    %94 = vector.broadcast %cst_39 : f32 to vector<256x1xf32>
    %95 = arith.mulf %93, %94 : vector<256x1xf32>
    %cst_40 = arith.constant 9.99999974E-6 : f32
    %96 = vector.broadcast %cst_40 : f32 to vector<256x1xf32>
    %97 = arith.addf %95, %96 : vector<256x1xf32>
    %98 = math.rsqrt %97 : vector<256x1xf32>
    %99 = vector.broadcast %98 : vector<256x1xf32> to vector<256x128xf32>
    %100 = arith.mulf %90, %99 : vector<256x128xf32>
    %c1_41 = arith.constant 1 : index
    %c0_42 = arith.constant 0 : index
    %101 = vector.load %arg6[%c1_41, %c0_42] : memref<2x128xf32, #tpu.memory_space<vmem>>, vector<1x128xf32>
    %102 = vector.broadcast %101 : vector<1x128xf32> to vector<256x128xf32>
    %103 = arith.mulf %100, %102 : vector<256x128xf32>
    %c1_43 = arith.constant 1 : index
    %c0_44 = arith.constant 0 : index
    %104 = vector.load %arg7[%c1_43, %c0_44] : memref<2x128xf32, #tpu.memory_space<vmem>>, vector<1x128xf32>
    %105 = vector.broadcast %104 : vector<1x128xf32> to vector<256x128xf32>
    %106 = arith.addf %103, %105 : vector<256x128xf32>
    %107 = arith.addf %106, %44 : vector<256x128xf32>
    %c0_45 = arith.constant 0 : index
    %c0_46 = arith.constant 0 : index
    %108 = vector.load %arg8[%c0_45, %c0_46] : memref<256x128xf32, #tpu.memory_space<vmem>>, vector<256x128xf32>
    tpu.vector_store %arg8[%c0_45, %c0_46], %107 {strides = array<i32>} : memref<256x128xf32, #tpu.memory_space<vmem>>, vector<256x128xf32>,
    return
  }
  func.func @transform_0(%arg0: i32) -> (i32, i32) {
    %c0_i32 = arith.constant 0 : i32
    %c0_i32_0 = arith.constant 0 : i32
    return %arg0, %c0_i32 : i32, i32
  }
  func.func @transform_1(%arg0: i32) -> (i32, i32) {
    %c0_i32 = arith.constant 0 : i32
    %c0_i32_0 = arith.constant 0 : i32
    %c0_i32_1 = arith.constant 0 : i32
    return %c0_i32, %c0_i32_0 : i32, i32
  }
  func.func @transform_2(%arg0: i32) -> (i32, i32) {
    %c0_i32 = arith.constant 0 : i32
    %c0_i32_0 = arith.constant 0 : i32
    %c0_i32_1 = arith.constant 0 : i32
    return %c0_i32, %c0_i32_0 : i32, i32
  }
  func.func @transform_3(%arg0: i32) -> (i32, i32, i32) {
    %c0_i32 = arith.constant 0 : i32
    %c0_i32_0 = arith.constant 0 : i32
    %c0_i32_1 = arith.constant 0 : i32
    %c0_i32_2 = arith.constant 0 : i32
    return %c0_i32, %c0_i32_0, %c0_i32_1 : i32, i32, i32
  }
  func.func @transform_4(%arg0: i32) -> (i32, i32) {
    %c0_i32 = arith.constant 0 : i32
    %c0_i32_0 = arith.constant 0 : i32
    %c0_i32_1 = arith.constant 0 : i32
    return %c0_i32, %c0_i32_0 : i32, i32
  }
  func.func @transform_5(%arg0: i32) -> (i32, i32) {
    %c0_i32 = arith.constant 0 : i32
    %c0_i32_0 = arith.constant 0 : i32
    %c0_i32_1 = arith.constant 0 : i32
    return %c0_i32, %c0_i32_0 : i32, i32
  }
  func.func @transform_6(%arg0: i32) -> (i32, i32) {
    %c0_i32 = arith.constant 0 : i32
    %c0_i32_0 = arith.constant 0 : i32
    %c0_i32_1 = arith.constant 0 : i32
    return %c0_i32, %c0_i32_0 : i32, i32
  }
  func.func @transform_7(%arg0: i32) -> (i32, i32) {
    %c0_i32 = arith.constant 0 : i32
    %c0_i32_0 = arith.constant 0 : i32
    return %arg0, %c0_i32 : i32, i32
  }
}

</mosaic_0001>

<bundles_post_ra>
// kernel: tpu_custom_call.1
= control target key start
LH: loop header
LB: loop body
LE: loop exit
PB: predicated region body
PF: predicated region fallthrough
CT: control target
= control target key end

     0   :  { %12 = vsyncpa [#allocation3], 0  ;;  %s6196_s0 = inlined_call_operand.vmem [shape: bf16[512,7], index: 0, kind: input, shape index: {}]   ;;  %s6197_s1 = inlined_call_operand.vmem [shape: bf16[7,128], index: 1, kind: input, shape index: {}]   ;;  %s6198_s2 = inlined_call_operand.vmem [shape: f32[1,128], index: 2, kind: input, shape index: {}]   ;;  %s6199_s3 = inlined_call_operand.hbm [shape: bf16[2,128,384], index: 3, kind: input, shape index: {}]   ;;  %s6200_s4 = inlined_call_operand.vmem [shape: f32[2,128], index: 4, kind: input, shape index: {}]   ;;  %s6201_s5 = inlined_call_operand.vmem [shape: f32[2,128], index: 5, kind: input, shape index: {}]   ;;  %s6202_s6 = inlined_call_operand.vmem [shape: f32[2,128], index: 6, kind: input, shape index: {}]   ;;  %s6203_s7 = inlined_call_operand.hbm [shape: f32[512,128], index: 7, kind: output, shape index: {}]  }
   0x1   :  { %13 = vsyncpa [#allocation4], 0 }
   0x2   :  { %15 = vsyncpa [#allocation4 + $0x1], 0  ;;  %s4470_s24 = smov 0   ;;  %s4472_s25 = smov 0  }
   0x3   :  { %s4474_s26 = smov 0   ;;  %s4476_s27 = smov 0  }
   0x4 LB: > { %s4491_s28 = sadd.s32 4294967295, %s4420_s27   ;;  %s3767_s29 = sadd.s32 4294967294, %s4420_s27   ;;  %s4420_s27 = sphi %s4476_s27, %s6445_s27   ;;  %s4416_s26 = sphi %s4474_s26, %s6444_s26   ;;  %s4412_s25 = sphi %s4472_s25, %s6443_s25   ;;  %s4408_s24 = sphi %s4470_s24, %s6442_s24  }
   0x5   : > { %s4495_s30 = sadd.s32 1, %s4420_s27   ;;  %s180_s8 = sadd.s32 1, %s4416_s26 }
   0x6   : > { %s177_s9 = ssub.s32 %s4420_s27, %s4495_s30  ;;  %p190_p0 = scmp.ne.s32.totalorder %s4416_s26, %s4412_s25 }
   0x7   : > { %p178_p1 = scmp.eq.s32.totalorder %s177_s9, 0  ;;  %p191_p2 = scmp.eq.s32.totalorder %s4491_s28, 1 }
   0x8   : > { %p196_p3 = scmp.ne.s32.totalorder %s4412_s25, %s4408_s24  ;;  %p197_p4 = scmp.eq.s32.totalorder %s3767_s29, 1 }
   0x9   : > { %s4506_s10 = scalar_select %p178_p1, %s4416_s26, %s180_s8  }
   0xa   : > { %p4508_p5 = por %p191_p2, %p190_p0  ;;  %p4512_p6 = por %p197_p4, %p196_p3 }
   0xb   : > { %p3768_p7 = scmp.ge.s32.totalorder %s4420_s27, 1  ;;  %p204_p8 = scmp.lt.s32.totalorder %s4420_s27, 3 }
   0xc   : > { %s6259_s12 = scalar_select %p4512_p6, 1, 0 }
   0xd   : > { %p4080_p9 = scmp.eq.s32.totalorder %s4491_s28, 0  ;;  %p4519_p10 = pnand %p3768_p7, %p204_p8 }
   0xe   : > { %s4422_s14 = smov [#allocation2]  }
   0xf   : > { %s222_s15 = sshll.u32 %s4422_s14, 4  ;;  %p4072_p11 = pneg %p4519_p10  ;;  %s223_s15 = int_to_ptr.vmem [resolvable:$true] %s222_s15 }
  0x10   : > { %s4341_s16 = scalar_lea.vmem %s223_s15, 6144  ;;  %p4349_p3 = scmp.lt.s32.totalorder %s223_s15, %s223_s15 }
  0x11   : > { %p4073_p12 = pnand %p4080_p9, %p4072_p11  ;;  %p4342_p0 = scmp.ne.s32.totalorder %s223_s15, %s4341_s16 }
  0x12   : > { %p4350_p4 = scmp.lt.s32.totalorder %s4341_s16, %s4341_s16 }
  0x13   : > { %p4332_p13 = pneg %p4073_p12 }
  0x14   : > { %p4351_p6 = por %p4350_p4, %p4349_p3 }
  0x15   : > { %p4344_p1 = pnand %p4342_p0, %p4332_p13 }
  0x17   : > { %p4345_p2 = pneg %p4344_p1 }
  0x19   : > { %p4352_p7 = pnand %p4351_p6, %p4345_p2 }
  0x1b   : > { %4355 = shalt.err (!%p4352_p7)
}
  0x1c   : > { %s4423_s17 = smov 192   ;;  %s4424_s18 = smov 12  }
  0x1d   : > { %4075 = dma.hbm_to_vmem [thread:$0]  (!%p4073_p12), %s6199_s3, 6144, %s223_s15, [#allocation3], %s4423_s17, %s4423_s17, %s4424_s18  }
  0x1e   : > { %256 = sbr.rel (%p4519_p10) target bundleno = 1611 (0x64b), region = 48 }
  0x23   : > { %4399 = dma.done.wait (%p4080_p9), [#allocation3], 6144  }
  0x24   : > { %4401 = vsyncadd (%p4080_p9), [#allocation3], 4294961152  ;;  %vm465_vm0 = vcmask 1042432   ;;  %s3774_s21 = sshll.u32 %s4491_s28, 5  ;;  %vm466_vm1 = vcmask 1043456   ;;  %v4425_v0 = vmov 65535  }
  0x25   : > { %p289_p6 = scmp.lt.s32.totalorder %s3774_s21, 63  ;;  %v467_v1 = vsel %vm465_vm0, 4294967295, %v4425_v0  ;;  %vm416_vm2 = vcmask 56320   ;;  %v328_v3 = vld [vmem:[%s6197_s1] sm:$0xf]  ;;  %v6204_v45 = vmov 0  }
  0x26   : > { %v468_v2 = vsel %vm466_vm1, %v467_v1, 0  ;;  %v4138_v16 = vld [vmem:[#allocation2 + $0xa8] ss:$12 sps:$4 sm:$0xff]   ;;  %v4140_v17 = vld [vmem:[#allocation2 + $0xac] ss:$12 sps:$4 sm:$0xff]   ;;  %s285_s29 = sand.u32 1, %s4412_s25  }
  0x27   : > { %s6447_s21 = smov (!%p289_p6, %s3774_s21), 63  ;;  %v470_v4 = vand.u32 %v468_v2, %v328_v3  ;;  %v4141_v18 = vld [vmem:[#allocation2 + $0xb0] ss:$12 sps:$4 sm:$0xff]   ;;  %v4144_v20 = vld [vmem:[#allocation2 + $0x94] ss:$12 sps:$4 sm:$0xff]   ;;  %s3773_s15 = sshll.u32 %s285_s29, 8 }
  0x28   : > { %s3775_s22 = sshll.u32 %s6447_s21, 2  ;;  %v4145_v21 = vld [vmem:[#allocation2 + $0x98] ss:$12 sps:$4 sm:$0xff]   ;;  %v4142_v22 = vld [vmem:[#allocation2 + $0x90] ss:$12 sps:$4 sm:$0xff]   ;;  %s5995_s16 = scalar_lea.vmem [#allocation5], %s3773_s15 }
  0x29   : > { %s4540_s8 = scalar_lea.vmem %s6196_s0, %s3775_s22  ;;  %3934 = vmatprep.subr.bf16.mxu0 %v470_v4  ;;  %4064 = vmatprep.subr.bf16.mxu1 %v470_v4  ;;  %v4148_v23 = vld [vmem:[#allocation2 + $0x7c] ss:$12 sps:$4 sm:$0xff]   ;;  %v4149_v24 = vld [vmem:[#allocation2 + $0x80] ss:$12 sps:$4 sm:$0xff]   ;;  %v4146_v27 = vld [vmem:[#allocation2 + $0x78] ss:$12 sps:$4 sm:$0xff]  }
  0x2a   : > { %v4122_v5 = vld [vmem:[%s4540_s8] sm:$0xff]   ;;  %v4123_v6 = vld [vmem:[%s4540_s8 + $0x8] sm:$0xff]   ;;  %3935 = vmatpush3.bf16.msra.mxu0 %v470_v4  ;;  %v4124_v7 = vld [vmem:[%s4540_s8 + $0x10] sm:$0xff]   ;;  %4065 = vmatpush3.bf16.msra.mxu1 %v470_v4  ;;  %s3868_s17 = sshll.u32 %s4491_s28, 12  ;;  %s3693_s18 = sshll.u32 %s5995_s16, 4  ;;  %s6149_s18 = int_to_ptr.vmem [resolvable:$true] %s3693_s18 }
  0x2b   : > { %3936 = vmatprep.mubr.msk.bf16.mxu0 %vm416_vm2, %v4122_v5  ;;  %v4125_v8 = vld [vmem:[%s4540_s8 + $0x18] sm:$0xff]   ;;  %v4130_v9 = vld [vmem:[%s4540_s8 + $0x40] sm:$0xff]   ;;  %v4131_v10 = vld [vmem:[%s4540_s8 + $0x48] sm:$0xff]   ;;  %1290 = vmatprep.subr.bf16.mxu1 %v4140_v17  ;;  %s6147_s21 = scalar_lea.hbm %s6203_s7, %s3868_s17  ;;  %s6156_s28 = scalar_lea.sflag [#allocation4], %s285_s29 }
  0x2c   : > { %3952 = vmatprep.mubr.msk.bf16.mxu1 %vm416_vm2, %v4130_v9  ;;  %v4132_v11 = vld [vmem:[%s4540_s8 + $0x50] sm:$0xff]   ;;  %v4126_v12 = vld [vmem:[%s4540_s8 + $0x20] sm:$0xff]   ;;  %v4133_v13 = vld [vmem:[%s4540_s8 + $0x58] sm:$0xff]   ;;  %3968 = vmatprep.subr.bf16.mxu0 %v4141_v18  ;;  %s4356_s22 = scalar_lea.vmem %s6149_s18, 4096  ;;  %s4427_s23 = smov [#allocation5]  }
  0x2d   : > { %3937 = vmatmul.mubr.msk.bf16.vlgmr.msra.gmra.mxu0 %vm416_vm2, %v4123_v6  ;;  %3953 = vmatmul.mubr.msk.bf16.vlgmr.msra.gmra.mxu1 %vm416_vm2, %v4131_v10  ;;  %v4134_v14 = vld [vmem:[%s4540_s8 + $0x60] sm:$0xff]   ;;  %v4127_v15 = vld [vmem:[%s4540_s8 + $0x28] sm:$0xff]   ;;  %v4128_v19 = vld [vmem:[%s4540_s8 + $0x30] sm:$0xff]   ;;  %p4357_p8 = scmp.ne.s32.totalorder %s6149_s18, %s4356_s22 }
  0x2e   : > { %3940 = vmatprep.mubr.msk.bf16.mxu0 %vm416_vm2, %v4124_v7  ;;  %3956 = vmatprep.mubr.msk.bf16.mxu1 %vm416_vm2, %v4132_v11  ;;  %v4135_v25 = vld [vmem:[%s4540_s8 + $0x68] sm:$0xff]   ;;  %v4136_v26 = vld [vmem:[%s4540_s8 + $0x70] sm:$0xff]   ;;  %v4129_v28 = vld [vmem:[%s4540_s8 + $0x38] sm:$0xff]  }
  0x2f   : > { %1291 = vmatpush1.bf16.msra.mxu1 %v4138_v16  ;;  %3969 = vmatpush3.bf16.msra.mxu0 %v4141_v18  ;;  %v4152_v29 = vld [vmem:[#allocation2 + $0x64] ss:$12 sps:$4 sm:$0xff]   ;;  %v4150_v30 = vld [vmem:[#allocation2 + $0x60] ss:$12 sps:$4 sm:$0xff]   ;;  %v4153_v31 = vld [vmem:[#allocation2 + $0x68] ss:$12 sps:$4 sm:$0xff]   ;;  %p4358_p9 = pnand %p4357_p8, %p4508_p5 }
  0x30   : > { %1292 = vmatprep.subr.bf16.mxu1 %v4144_v20  ;;  %3970 = vmatprep.subr.bf16.mxu0 %v4145_v21  ;;  %v4156_v32 = vld [vmem:[#allocation2 + $0x4c] ss:$12 sps:$4 sm:$0xff]   ;;  %v4157_v33 = vld [vmem:[#allocation2 + $0x50] ss:$12 sps:$4 sm:$0xff]   ;;  %v4154_v35 = vld [vmem:[#allocation2 + $0x48] ss:$12 sps:$4 sm:$0xff]  }
  0x31   : > { %v4137_v34 = vld [vmem:[%s4540_s8 + $0x78] sm:$0xff]   ;;  %v4160_v36 = vld [vmem:[#allocation2 + $0x34] ss:$12 sps:$4 sm:$0xff]   ;;  %v4168_v42 = vld [vmem:[#allocation2 + $0x4] ss:$12 sps:$4 sm:$0xff]   ;;  %p4359_p10 = pneg %p4358_p9  ;;  %s4360_s8 = sshll.u32 %s4427_s23, 4  ;;  %s4361_s8 = int_to_ptr.vmem [resolvable:$false] %s4360_s8 }
  0x32   : > { %v4158_v37 = vld [vmem:[#allocation2 + $0x30] ss:$12 sps:$4 sm:$0xff]   ;;  %v4161_v38 = vld [vmem:[#allocation2 + $0x38] ss:$12 sps:$4 sm:$0xff]   ;;  %v4165_v41 = vld [vmem:[#allocation2 + $0x20] ss:$12 sps:$4 sm:$0xff]   ;;  %p4363_p11 = scmp.lt.s32.totalorder %s6149_s18, %s4361_s8 }
  0x33   : > { %1293 = vmatpush1.bf16.msra.mxu1 %v4142_v22  ;;  %3971 = vmatpush3.bf16.msra.mxu0 %v4145_v21  ;;  %v4164_v39 = vld [vmem:[#allocation2 + $0x1c] ss:$12 sps:$4 sm:$0xff]   ;;  %v4162_v40 = vld [vmem:[#allocation2 + $0x18] ss:$12 sps:$4 sm:$0xff]   ;;  %v4166_v43 = vld [vmem:[#allocation2] ss:$12 sps:$4 sm:$0xff]  }
  0x34   : > { %1294 = vmatprep.subr.bf16.mxu1 %v4148_v23  ;;  %3972 = vmatprep.subr.bf16.mxu0 %v4149_v24  ;;  %v4169_v44 = vld [vmem:[#allocation2 + $0x8] ss:$12 sps:$4 sm:$0xff]   ;;  %v4581_v49 = vld [vmem:[%s6198_s2] ss:$0 sm:$0xff]  ;;  %s4362_s9 = scalar_lea.vmem %s4361_s8, 8192 }
  0x35   : > { %3941 = vmatmul.mubr.msk.bf16.gmra.mxu0 %vm416_vm2, %v4125_v8  ;;  %3957 = vmatmul.mubr.msk.bf16.gmra.mxu1 %vm416_vm2, %v4133_v13  ;;  %p4364_p12 = scmp.lt.s32.totalorder %s4362_s9, %s4356_s22 }
  0x36   : > { %3944 = vmatprep.mubr.msk.bf16.mxu0 %vm416_vm2, %v4126_v12  ;;  %3960 = vmatprep.mubr.msk.bf16.mxu1 %vm416_vm2, %v4134_v14 }
  0x37   : > { %1295 = vmatpush1.bf16.msra.mxu1 %v4146_v27  ;;  %3973 = vmatpush3.bf16.msra.mxu0 %v4149_v24  ;;  %p4365_p13 = por %p4364_p12, %p4363_p11 }
  0x38   : > { %1296 = vmatprep.subr.bf16.mxu1 %v4152_v29  ;;  %3974 = vmatprep.subr.bf16.mxu0 %v4153_v31 }
  0x39   : > { %p4366_p0 = pnand %p4365_p13, %p4359_p10 }
  0x3b   : > { %1297 = vmatpush1.bf16.msra.mxu1 %v4150_v30  ;;  %3975 = vmatpush3.bf16.msra.mxu0 %v4153_v31 }
  0x3c   : > { %1298 = vmatprep.subr.bf16.mxu1 %v4156_v32  ;;  %3976 = vmatprep.subr.bf16.mxu0 %v4157_v33 }
  0x3d   : > { %3945 = vmatmul.mubr.msk.bf16.gmra.mxu0 %vm416_vm2, %v4127_v15  ;;  %3961 = vmatmul.mubr.msk.bf16.gmra.mxu1 %vm416_vm2, %v4135_v25 }
  0x3e   : > { %3948 = vmatprep.mubr.msk.bf16.mxu0 %vm416_vm2, %v4128_v19  ;;  %3964 = vmatprep.mubr.msk.bf16.mxu1 %vm416_vm2, %v4136_v26 }
  0x3f   : > { %1299 = vmatpush1.bf16.msra.mxu1 %v4154_v35  ;;  %3977 = vmatpush3.bf16.msra.mxu0 %v4157_v33 }
  0x40   : > { %1300 = vmatprep.subr.bf16.mxu1 %v4160_v36  ;;  %3978 = vmatprep.subr.bf16.mxu0 %v4161_v38 }
  0x43   : > { %1301 = vmatpush1.bf16.msra.mxu1 %v4158_v37  ;;  %3979 = vmatpush3.bf16.msra.mxu0 %v4161_v38 }
  0x44   : > { %1302 = vmatprep.subr.bf16.mxu1 %v4164_v39  ;;  %3980 = vmatprep.subr.bf16.mxu0 %v4165_v41 }
  0x45   : > { %3949 = vmatmul.mubr.msk.bf16.gmra.mxu0 %vm416_vm2, %v4129_v28  ;;  %3965 = vmatmul.mubr.msk.bf16.gmra.mxu1 %vm416_vm2, %v4137_v34 }
  0x46   : > { %1322 = vmatprep.mubr.bf16.mxu1 %v6204_v45 }
  0x47   : > { %1303 = vmatpush1.bf16.msra.mxu1 %v4162_v40  ;;  %3981 = vmatpush3.bf16.msra.mxu0 %v4165_v41 }
  0x48   : > { %1304 = vmatprep.subr.bf16.mxu1 %v4168_v42  ;;  %3982 = vmatprep.subr.bf16.mxu0 %v4169_v44 }
  0x4b   : > { %1305 = vmatpush1.bf16.msra.mxu1 %v4166_v43  ;;  %3983 = vmatpush3.bf16.msra.mxu0 %v4169_v44 }
  0xed   : > { %v3938_v46 = vpop.f32.mrf.mxu0  ;;  %v4583_v50 = vpop.f32.mrf.mxu1 }
  0xee   : > { %v515_v56 = vadd.f32 %v3938_v46, %v4581_v49  ;;  %v579_v38 = vadd.f32 %v4583_v50, %v4581_v49 }
  0xef   : > { %v506_v47 = vpop.f32.mrf.mxu0  ;;  %v570_v55 = vpop.f32.mrf.mxu1 }
  0xf0   : > { %v507_v53 = vadd.f32 %v4581_v49, %v506_v47  ;;  %v571_v29 = vadd.f32 %v4581_v49, %v570_v55 }
  0xf1   : > { %v3939_v48 = vpop.f32.mrf.mxu0  ;;  %v3955_v59 = vpop.f32.mrf.mxu1 }
  0xf2   : > { %v518_v51 = vadd.f32 %v3939_v48, %v4581_v49  ;;  %v582_v39 = vadd.f32 %v3955_v59, %v4581_v49 }
  0xf3   : > { %v509_v52 = vpop.f32.mrf.mxu0  ;;  %v573_v62 = vpop.f32.mrf.mxu1 }
  0xf4   : > { %v510_v54 = vadd.f32 %v4581_v49, %v509_v52  ;;  %v1115_v60 = vpack.c.bf16 %v518_v51, %v515_v56  ;;  %v574_v30 = vadd.f32 %v4581_v49, %v573_v62  ;;  %v1123_v43 = vpack.c.bf16 %v582_v39, %v579_v38 }
  0xf5   : > { %v3942_v57 = vpop.f32.mrf.mxu0  ;;  %v3958_v3 = vpop.f32.mrf.mxu1 }
  0xf6   : > { %v1114_v58 = vpack.c.bf16 %v510_v54, %v507_v53  ;;  %v531_v63 = vadd.f32 %v3942_v57, %v4581_v49  ;;  %v1122_v36 = vpack.c.bf16 %v574_v30, %v571_v29  ;;  %v595_v47 = vadd.f32 %v3958_v3, %v4581_v49 }
  0xf7   : > { %v522_v61 = vpop.f32.mrf.mxu0  ;;  %v586_v6 = vpop.f32.mrf.mxu1 }
  0xf8   : > { %1323 = vmatmul.mubr.bf16.vlgmr.msra.gmra.mxu1 %v1114_v58  ;;  %3984 = vmatprep.mubr.bf16.mxu0 %v1114_v58  ;;  %v523_v1 = vadd.f32 %v4581_v49, %v522_v61  ;;  %v587_v40 = vadd.f32 %v4581_v49, %v586_v6 }
  0xf9   : > { %v3943_v0 = vpop.f32.mrf.mxu0  ;;  %3985 = vmatmul.mubr.bf16.vlgmr.msra.gmra.mxu0 %v1115_v60  ;;  %1332 = vmatprep.mubr.bf16.mxu1 %v6204_v45  ;;  %v3959_v10 = vpop.f32.mrf.mxu1 }
  0xfa   : > { %v534_v2 = vadd.f32 %v3943_v0, %v4581_v49  ;;  %v598_v48 = vadd.f32 %v3959_v10, %v4581_v49 }
  0xfb   : > { %v525_v4 = vpop.f32.mrf.mxu0  ;;  %v589_v12 = vpop.f32.mrf.mxu1 }
  0xfc   : > { %v526_v5 = vadd.f32 %v4581_v49, %v525_v4  ;;  %v1117_v7 = vpack.c.bf16 %v534_v2, %v531_v63  ;;  %v590_v41 = vadd.f32 %v4581_v49, %v589_v12  ;;  %v1125_v53 = vpack.c.bf16 %v598_v48, %v595_v47 }
  0xfd   : > { %v3946_v8 = vpop.f32.mrf.mxu0  ;;  %v3962_v18 = vpop.f32.mrf.mxu1 }
  0xfe   : > { %v1116_v9 = vpack.c.bf16 %v526_v5, %v523_v1  ;;  %v547_v13 = vadd.f32 %v3946_v8, %v4581_v49  ;;  %v1124_v44 = vpack.c.bf16 %v590_v41, %v587_v40  ;;  %v611_v56 = vadd.f32 %v3962_v18, %v4581_v49 }
  0xff   : > { %v538_v11 = vpop.f32.mrf.mxu0  ;;  %v602_v24 = vpop.f32.mrf.mxu1 }
 0x100   : > { %1333 = vmatmul.mubr.bf16.gmra.mxu1 %v1115_v60  ;;  %3988 = vmatprep.mubr.bf16.mxu0 %v1116_v9  ;;  %v539_v15 = vadd.f32 %v4581_v49, %v538_v11  ;;  %v603_v50 = vadd.f32 %v4581_v49, %v602_v24 }
 0x101   : > { %v3947_v14 = vpop.f32.mrf.mxu0  ;;  %3989 = vmatmul.mubr.bf16.gmra.mxu0 %v1117_v7  ;;  %1342 = vmatprep.mubr.bf16.mxu1 %v6204_v45  ;;  %v3963_v32 = vpop.f32.mrf.mxu1 }
 0x102   : > { %v550_v16 = vadd.f32 %v3947_v14, %v4581_v49  ;;  %v614_v57 = vadd.f32 %v3963_v32, %v4581_v49 }
 0x103   : > { %v541_v17 = vpop.f32.mrf.mxu0  ;;  %v605_v37 = vpop.f32.mrf.mxu1 }
 0x104   : > { %v542_v19 = vadd.f32 %v4581_v49, %v541_v17  ;;  %v1119_v20 = vpack.c.bf16 %v550_v16, %v547_v13  ;;  %v606_v51 = vadd.f32 %v4581_v49, %v605_v37  ;;  %v1127_v60 = vpack.c.bf16 %v614_v57, %v611_v56 }
 0x105   : > { %v3950_v21 = vpop.f32.mrf.mxu0  ;;  %v3966_v42 = vpop.f32.mrf.mxu1 }
 0x106   : > { %v1118_v22 = vpack.c.bf16 %v542_v19, %v539_v15  ;;  %v563_v25 = vadd.f32 %v3950_v21, %v4581_v49  ;;  %v1126_v54 = vpack.c.bf16 %v606_v51, %v603_v50  ;;  %v627_v62 = vadd.f32 %v3966_v42, %v4581_v49 }
 0x107   : > { %v554_v23 = vpop.f32.mrf.mxu0  ;;  %v618_v46 = vpop.f32.mrf.mxu1 }
 0x108   : > { %1343 = vmatmul.mubr.bf16.gmra.mxu1 %v1116_v9  ;;  %3992 = vmatprep.mubr.bf16.mxu0 %v1118_v22  ;;  %v555_v27 = vadd.f32 %v4581_v49, %v554_v23  ;;  %v619_v58 = vadd.f32 %v4581_v49, %v618_v46  ;;  %v4680_v46 = vld [vmem:[%s6200_s4] ss:$0 sm:$0xff] }
 0x109   : > { %v3951_v26 = vpop.f32.mrf.mxu0  ;;  %3993 = vmatmul.mubr.bf16.gmra.mxu0 %v1119_v20  ;;  %1352 = vmatprep.mubr.bf16.mxu1 %v6204_v45  ;;  %v3967_v52 = vpop.f32.mrf.mxu1 }
 0x10a   : > { %v566_v28 = vadd.f32 %v3951_v26, %v4581_v49  ;;  %v630_v63 = vadd.f32 %v3967_v52, %v4581_v49 }
 0x10b   : > { %v557_v31 = vpop.f32.mrf.mxu0  ;;  %v621_v55 = vpop.f32.mrf.mxu1 }
 0x10c   : > { %v558_v33 = vadd.f32 %v4581_v49, %v557_v31  ;;  %v1121_v34 = vpack.c.bf16 %v566_v28, %v563_v25  ;;  %v622_v59 = vadd.f32 %v4581_v49, %v621_v55  ;;  %v1129_v0 = vpack.c.bf16 %v630_v63, %v627_v62 }
 0x10d   : > { %v633_v49 = vlaneseq }
 0x10e   : > { %v1120_v35 = vpack.c.bf16 %v558_v33, %v555_v27  ;;  %v1128_v61 = vpack.c.bf16 %v622_v59, %v619_v58 }
 0x10f   : > { %v4636_v2 = vshrl.u32 %v633_v49, 7 }
 0x110   : > { %1353 = vmatmul.mubr.bf16.gmra.mxu1 %v1117_v7  ;;  %3996 = vmatprep.mubr.bf16.mxu0 %v1120_v35 }
 0x111   : > { %3997 = vmatmul.mubr.bf16.gmra.mxu0 %v1121_v34  ;;  %1362 = vmatprep.mubr.bf16.mxu1 %v6204_v45  ;;  %vm6216_vm3 = vcmp.lt.s32.totalorder %v4636_v2, 1  ;;  %v637_v10 = vadd.s32 24, %v4636_v2  ;;  %vm6241_vm4 = vcmp.lt.s32.totalorder %v4636_v2, 7  ;;  %v638_v23 = vadd.s32 32, %v4636_v2 }
 0x112   : > { %4000 = vmatprep.mubr.bf16.mxu0 %v1122_v36 }
 0x113   : > { %v698_v37 = vand.u32 31, %v638_v23 }
 0x115   : > { %vm4693_vm6 = vcmp.ne.s32.totalorder %v698_v37, 0 }
 0x118   : > { %1363 = vmatmul.mubr.bf16.gmra.mxu1 %v1118_v22  ;;  %v691_v22 = vand.u32 31, %v637_v10 }
 0x119   : > { %4001 = vmatmul.mubr.bf16.gmra.mxu0 %v1123_v43  ;;  %1372 = vmatprep.mubr.bf16.mxu1 %v6204_v45 }
 0x11a   : > { %4004 = vmatprep.mubr.bf16.mxu0 %v1124_v44  ;;  %vm4668_vm5 = vcmp.ne.s32.totalorder %v691_v22, 31 }
 0x120   : > { %1373 = vmatmul.mubr.bf16.gmra.mxu1 %v1119_v20 }
 0x121   : > { %4005 = vmatmul.mubr.bf16.gmra.mxu0 %v1125_v53  ;;  %1382 = vmatprep.mubr.bf16.mxu1 %v6204_v45 }
 0x122   : > { %4008 = vmatprep.mubr.bf16.mxu0 %v1126_v54 }
 0x128   : > { %1383 = vmatmul.mubr.bf16.gmra.mxu1 %v1120_v35 }
 0x129   : > { %4009 = vmatmul.mubr.bf16.gmra.mxu0 %v1127_v60  ;;  %1392 = vmatprep.mubr.bf16.mxu1 %v6204_v45 }
 0x12a   : > { %4012 = vmatprep.mubr.bf16.mxu0 %v1128_v61 }
 0x130   : > { %1393 = vmatmul.mubr.bf16.gmra.mxu1 %v1121_v34 }
 0x131   : > { %4013 = vmatmul.mubr.bf16.gmra.mxu0 %v1129_v0  ;;  %1402 = vmatprep.mubr.bf16.mxu1 %v6204_v45 }
 0x132   : > { %2574 = vmatprep.mubr.bf16.mxu0 %v6204_v45 }
 0x138   : > { %1403 = vmatmul.mubr.bf16.gmra.mxu1 %v1122_v36 }
 0x139   : > { %1412 = vmatprep.mubr.bf16.mxu1 %v6204_v45 }
 0x140   : > { %1413 = vmatmul.mubr.bf16.gmra.mxu1 %v1123_v43 }
 0x141   : > { %1422 = vmatprep.mubr.bf16.mxu1 %v6204_v45 }
 0x148   : > { %1423 = vmatmul.mubr.bf16.gmra.mxu1 %v1124_v44 }
 0x149   : > { %1432 = vmatprep.mubr.bf16.mxu1 %v6204_v45 }
 0x150   : > { %1433 = vmatmul.mubr.bf16.gmra.mxu1 %v1125_v53 }
 0x151   : > { %1442 = vmatprep.mubr.bf16.mxu1 %v6204_v45 }
 0x158   : > { %1443 = vmatmul.mubr.bf16.gmra.mxu1 %v1126_v54 }
 0x159   : > { %1452 = vmatprep.mubr.bf16.mxu1 %v6204_v45 }
 0x160   : > { %1453 = vmatmul.mubr.bf16.gmra.mxu1 %v1127_v60 }
 0x161   : > { %1462 = vmatprep.mubr.bf16.mxu1 %v6204_v45 }
 0x168   : > { %1463 = vmatmul.mubr.bf16.gmra.mxu1 %v1128_v61 }
 0x169   : > { %1472 = vmatprep.mubr.bf16.mxu1 %v6204_v45 }
 0x170   : > { %1473 = vmatmul.mubr.bf16.gmra.mxu1 %v1129_v0 }
 0x1b8   : > { %v4634_v1 = vpop.f32.mrf.mxu1 }
 0x1b9   : > { %v3986_v3 = vpop.f32.mrf.mxu0  ;;  %v6207_v7 = vrot.slane %v4634_v1, 7 }
 0x1ba   : > { %v4638_v4 = vpop.f32.mrf.mxu1  ;;  %v1775_v14 = vrot.slane %v3986_v3, 1 }
 0x1bb   : > { %v4640_v5 = vpop.f32.mrf.mxu0 }
 0x1bc   : > { %v1328_v6 = vpop.f32.mrf.mxu1  ;;  %v6208_v15 = vrot.slane %v4640_v5, 1 }
 0x1bd   : > { %v1645_v8 = vrot.slane %v1328_v6, 7  ;;  %v3987_v9 = vpop.f32.mrf.mxu0 }
 0x1be   : > { %v1330_v11 = vpop.f32.mrf.mxu1  ;;  %v1776_v19 = vrot.slane %v3987_v9, 1 }
 0x1bf   : > { %v1707_v12 = vsel %vm6216_vm3, %v6207_v7, %v1645_v8  ;;  %v1520_v13 = vpop.f32.mrf.mxu0  ;;  %v6299_v7 = vmov 0 }
 0x1c0   : > { %v1742_v16 = vadd.f32 %v1707_v12, %v1330_v11  ;;  %v1774_v17 = vrot.slane %v1520_v13, 1  ;;  %v1334_v18 = vpop.f32.mrf.mxu1  ;;  %v1834_v33 = vsel %vm6241_vm4, %v1775_v14, %v1776_v19  ;;  %v641_v11 = vadd.s32 56, %v4636_v2 }
 0x1c1   : > { %v1646_v20 = vrot.slane %v1334_v18, 7  ;;  %v3990_v21 = vpop.f32.mrf.mxu0 }
 0x1c2   : > { %v1835_v24 = vsel %vm6241_vm4, %v1774_v17, %v1775_v14  ;;  %v4658_v25 = vsel %vm6241_vm4, %v6208_v15, %v1774_v17  ;;  %v1336_v26 = vpop.f32.mrf.mxu1  ;;  %v1779_v38 = vrot.slane %v3990_v21, 1 }
 0x1c3   : > { %v1706_v27 = vsel %vm6216_vm3, %v1645_v8, %v1646_v20  ;;  %v1533_v28 = vpop.f32.mrf.mxu0  ;;  %v4662_v29 = vadd.f32 %v1835_v24, %v1742_v16  ;;  %v642_v24 = vadd.s32 64, %v4636_v2 }
 0x1c4   : > { %v1743_v30 = vadd.f32 %v1706_v27, %v1336_v26  ;;  %v1777_v31 = vrot.slane %v1533_v28, 1  ;;  %v1338_v32 = vpop.f32.mrf.mxu1  ;;  %v719_v28 = vand.u32 31, %v641_v11 }
 0x1c5   : > { %v1647_v34 = vrot.slane %v1338_v32, 7  ;;  %v4666_v35 = vpop.f32.mrf.mxu0 }
 0x1c6   : > { %v1872_v39 = vadd.f32 %v1834_v33, %v1743_v30  ;;  %v1780_v40 = vrot.slane %v4666_v35, 1  ;;  %v1340_v41 = vpop.f32.mrf.mxu1  ;;  %v1833_v42 = vsel %vm6241_vm4, %v1776_v19, %v1777_v31  ;;  %vm4749_vm7 = vcmp.ne.s32.totalorder %v719_v28, 31 }
 0x1c7   : > { %v1705_v43 = vsel %vm6216_vm3, %v1646_v20, %v1647_v34  ;;  %v1536_v44 = vpop.f32.mrf.mxu0  ;;  %v1841_v53 = vsel %vm4668_vm5, %v1833_v42, 0.0  ;;  %v726_v42 = vand.u32 31, %v642_v24 }
 0x1c8   : > { %v1744_v47 = vadd.f32 %v1705_v43, %v1340_v41  ;;  %v1778_v48 = vrot.slane %v1536_v44, 1  ;;  %v1344_v50 = vpop.f32.mrf.mxu1  ;;  %v4683_v51 = vadd.f32 %v4680_v46, %v1872_v39  ;;  %v1830_v52 = vsel %vm6241_vm4, %v1779_v38, %v1780_v40 }
 0x1c9   : > { %v1648_v54 = vrot.slane %v1344_v50, 7  ;;  %v4691_v55 = vpop.f32.mrf.mxu0  ;;  %vm4775_vm8 = vcmp.ne.s32.totalorder %v726_v42, 0 }
 0x1ca   : > { %6263 = vst [vmem:[#allocation8_spill] sm:$0xff] %v4683_v51  ;;  %v1873_v57 = vadd.f32 %v1841_v53, %v1744_v47  ;;  %1943 = vadd.xlane.f32.xlu1 %v4683_v51  ;;  %v1346_v58 = vpop.f32.mrf.mxu1  ;;  %v1832_v59 = vsel %vm6241_vm4, %v1777_v31, %v1778_v48  ;;  %v1783_v62 = vrot.slane %v4691_v55, 1  ;;  %v1831_v21 = vsel %vm6241_vm4, %v1778_v48, %v1779_v38 }
 0x1cb   : > { %v1704_v60 = vsel %vm6216_vm3, %v1647_v34, %v1648_v54  ;;  %v1549_v61 = vpop.f32.mrf.mxu0 }
 0x1cc   : > { %v1713_v63 = vsel %vm4693_vm6, %v1704_v60, 0.0  ;;  %v1348_v0 = vpop.f32.mrf.mxu1  ;;  %v4706_v49 = vadd.f32 %v4680_v46, %v1873_v57  ;;  %v1781_v16 = vrot.slane %v1549_v61, 1 }
 0x1cd   : > { %v1745_v3 = vadd.f32 %v1713_v63, %v1346_v58  ;;  %v1649_v6 = vrot.slane %v1348_v0, 7  ;;  %v4708_v8 = vpop.f32.mrf.mxu0 }
 0x1ce   : > { %6266 = vst [vmem:[#allocation9_spill] sm:$0xff] %v4706_v49  ;;  %v1784_v9 = vrot.slane %v4708_v8, 1  ;;  %1945 = vadd.xlane.f32.xlu1 %v4706_v49  ;;  %v1350_v10 = vpop.f32.mrf.mxu1  ;;  %v1829_v50 = vsel %vm6241_vm4, %v1780_v40, %v1781_v16 }
 0x1cf   : > { %v4713_v12 = vadd.f32 %v1832_v59, %v1745_v3  ;;  %v1703_v13 = vsel %vm6216_vm3, %v1648_v54, %v1649_v6  ;;  %v4717_v14 = vpop.f32.mrf.mxu0  ;;  %v1845_v40 = vsel %vm4749_vm7, %v1829_v50, 0.0 }
 0x1d0   : > { %v1746_v17 = vadd.f32 %v1703_v13, %v1350_v10  ;;  %v1782_v18 = vrot.slane %v4717_v14, 1  ;;  %v1354_v19 = vpop.f32.mrf.mxu1  ;;  %v4726_v20 = vsel %vm6241_vm4, %v1783_v62, %v1784_v9 }
 0x1d1   : > { %v1650_v22 = vrot.slane %v1354_v19, 7  ;;  %v4730_v23 = vpop.f32.mrf.mxu0 }
 0x1d2   : > { %v1875_v26 = vadd.f32 %v1831_v21, %v1746_v17  ;;  %v1356_v27 = vpop.f32.mrf.mxu1  ;;  %v1828_v30 = vsel %vm6241_vm4, %v1781_v16, %v1782_v18  ;;  %v1787_v33 = vrot.slane %v4730_v23, 1 }
 0x1d3   : > { %v1702_v31 = vsel %vm6216_vm3, %v1649_v6, %v1650_v22  ;;  %v4737_v32 = vpop.f32.mrf.mxu0 }
 0x1d4   : > { %v1747_v34 = vadd.f32 %v1702_v31, %v1356_v27  ;;  %v1358_v37 = vpop.f32.mrf.mxu1  ;;  %v4741_v38 = vadd.f32 %v4680_v46, %v1875_v26  ;;  %v645_v27 = vadd.s32 88, %v4636_v2 }
 0x1d5   : > { %v1651_v39 = vrot.slane %v1358_v37, 7  ;;  %v4743_v41 = vpop.f32.mrf.mxu0 }
 0x1d6   : > { %6267 = vst [vmem:[#allocation10_spill] sm:$0xff] %v4741_v38  ;;  %v4745_v43 = vadd.f32 %v1830_v52, %v1747_v34  ;;  %v1788_v44 = vrot.slane %v4743_v41, 1  ;;  %1949 = vadd.xlane.f32.xlu1 %v4741_v38  ;;  %v1360_v48 = vpop.f32.mrf.mxu1  ;;  %v1785_v52 = vrot.slane %v4737_v32, 1 }
 0x1d7   : > { %v1701_v53 = vsel %vm6216_vm3, %v1650_v22, %v1651_v39  ;;  %v4759_v54 = vpop.f32.mrf.mxu0 }
 0x1d8   : > { %v1748_v57 = vadd.f32 %v1701_v53, %v1360_v48  ;;  %v1786_v58 = vrot.slane %v4759_v54, 1  ;;  %v1364_v59 = vpop.f32.mrf.mxu1  ;;  %v4769_v35 = vsel %vm6241_vm4, %v1787_v33, %v1788_v44  ;;  %v646_v53 = vadd.s32 96, %v4636_v2 }
 0x1d9   : > { %v1652_v60 = vrot.slane %v1364_v59, 7  ;;  %v4773_v61 = vpop.f32.mrf.mxu0 }
 0x1da   : > { %v1877_v0 = vadd.f32 %v1845_v40, %v1748_v57  ;;  %v1366_v3 = vpop.f32.mrf.mxu1  ;;  %v1824_v6 = vsel %vm6241_vm4, %v1785_v52, %v1786_v58  ;;  %v1791_v13 = vrot.slane %v4773_v61, 1  ;;  %v747_v40 = vand.u32 31, %v645_v27 }
 0x1db   : > { %v1700_v10 = vsel %vm6216_vm3, %v1651_v39, %v1652_v60  ;;  %v4785_v11 = vpop.f32.mrf.mxu0 }
 0x1dc   : > { %v1717_v14 = vsel %vm4775_vm8, %v1700_v10, 0.0  ;;  %v1368_v16 = vpop.f32.mrf.mxu1  ;;  %v4791_v17 = vadd.f32 %v4680_v46, %v1877_v0  ;;  %v1789_v34 = vrot.slane %v4785_v11, 1  ;;  %vm4834_vm9 = vcmp.ne.s32.totalorder %v747_v40, 31 }
 0x1dd   : > { %v1749_v19 = vadd.f32 %v1717_v14, %v1366_v3  ;;  %v1653_v21 = vrot.slane %v1368_v16, 7  ;;  %v4793_v22 = vpop.f32.mrf.mxu0  ;;  %v6274_v14 = vmov 0  ;;  %v649_v40 = vadd.s32 120, %v4636_v2 }
 0x1de   : > { %6272 = vst [vmem:[#allocation11_spill] sm:$0xff] %v4791_v17  ;;  %v1792_v24 = vrot.slane %v4793_v22, 1  ;;  %1953 = vadd.xlane.f32.xlu1 %v4791_v17  ;;  %v1370_v26 = vpop.f32.mrf.mxu1  ;;  %v6275_v14 = vsel %vm4834_vm9, 4294967295, %v6274_v14 }
 0x1df   : > { %v4798_v28 = vadd.f32 %v1828_v30, %v1749_v19  ;;  %v1699_v31 = vsel %vm6216_vm3, %v1652_v60, %v1653_v21  ;;  %v4802_v32 = vpop.f32.mrf.mxu0  ;;  %v1827_v30 = vsel %vm6241_vm4, %v1782_v18, %v1783_v62  ;;  %v754_v18 = vand.u32 31, %v646_v53  ;;  %6276 = vst [vmem:[#allocation13_spill] sm:$0xff] %v6275_v14 }
 0x1e0   : > { %v1750_v37 = vadd.f32 %v1699_v31, %v1370_v26  ;;  %v1790_v39 = vrot.slane %v4802_v32, 1  ;;  %v1374_v42 = vpop.f32.mrf.mxu1  ;;  %v4812_v48 = vsel %vm6241_vm4, %v1791_v13, %v1792_v24  ;;  %v1825_v19 = vsel %vm6241_vm4, %v1784_v9, %v1785_v52 }
 0x1e1   : > { %v1654_v50 = vrot.slane %v1374_v42, 7  ;;  %vm4846_vm10 = vcmp.ne.s32.totalorder %v754_v18, 0  ;;  %v1823_v18 = vsel %vm6241_vm4, %v1786_v58, %v1787_v33  ;;  %v6281_v33 = vmov 0 }
 0x1e2   : > { %v1879_v57 = vadd.f32 %v1827_v30, %v1750_v37  ;;  %v1376_v59 = vpop.f32.mrf.mxu1  ;;  %v4823_v60 = vsel %vm6241_vm4, %v1789_v34, %v1790_v39 }
 0x1e3   : > { %v1698_v0 = vsel %vm6216_vm3, %v1653_v21, %v1654_v50 }
 0x1e4   : > { %v1751_v3 = vadd.f32 %v1698_v0, %v1376_v59  ;;  %v1378_v55 = vpop.f32.mrf.mxu1  ;;  %v4828_v10 = vadd.f32 %v4680_v46, %v1879_v57 }
 0x1e5   : > { %v1655_v62 = vrot.slane %v1378_v55, 7 }
 0x1e6   : > { %6273 = vst [vmem:[#allocation12_spill] sm:$0xff] %v4828_v10  ;;  %v4831_v11 = vadd.f32 %v4726_v20, %v1751_v3  ;;  %1957 = vadd.xlane.f32.xlu1 %v4828_v10  ;;  %v1380_v16 = vpop.f32.mrf.mxu1  ;;  %v1849_v20 = vsel %vm4834_vm9, %v1825_v19, 0.0  ;;  %v650_v19 = vadd.s32 128, %v4636_v2 }
 0x1e7   : > { %v1697_v21 = vsel %vm6216_vm3, %v1654_v50, %v1655_v62 }
 0x1e8   : > { %v1752_v26 = vadd.f32 %v1697_v21, %v1380_v16  ;;  %v1384_v27 = vpop.f32.mrf.mxu1 }
 0x1e9   : > { %v1656_v31 = vrot.slane %v1384_v27, 7  ;;  %v775_v27 = vand.u32 31, %v649_v40 }
 0x1ea   : > { %v1881_v42 = vadd.f32 %v1849_v20, %v1752_v26  ;;  %v1386_v30 = vpop.f32.mrf.mxu1 }
 0x1eb   : > { %v1696_v8 = vsel %vm6216_vm3, %v1655_v62, %v1656_v31  ;;  %vm4879_vm11 = vcmp.ne.s32.totalorder %v775_v27, 31 }
 0x1ec   : > { %v1721_v9 = vsel %vm4846_vm10, %v1696_v8, 0.0  ;;  %v1388_v52 = vpop.f32.mrf.mxu1  ;;  %v4855_v50 = vadd.f32 %v4680_v46, %v1881_v42  ;;  %v6282_v33 = vsel %vm4879_vm11, 4294967295, %v6281_v33  ;;  %v1821_v8 = vsel %vm6241_vm4, %v1788_v44, %v1789_v34 }
 0x1ed   : > { %v1753_v53 = vadd.f32 %v1721_v9, %v1386_v30  ;;  %v1657_v57 = vrot.slane %v1388_v52, 7  ;;  %v782_v30 = vand.u32 31, %v650_v19  ;;  %6283 = vst [vmem:[#allocation16_spill] sm:$0xff] %v6282_v33  ;;  %v6302_v33 = vmov 0 }
 0x1ee   : > { %6279 = vst [vmem:[#allocation14_spill] sm:$0xff] %v4855_v50  ;;  %1961 = vadd.xlane.f32.xlu1 %v4855_v50  ;;  %v1390_v59 = vpop.f32.mrf.mxu1 }
 0x1ef   : > { %v4859_v0 = vadd.f32 %v1824_v6, %v1753_v53  ;;  %v1695_v3 = vsel %vm6216_vm3, %v1656_v31, %v1657_v57  ;;  %vm4891_vm12 = vcmp.ne.s32.totalorder %v782_v30, 0 }
 0x1f0   : > { %v1754_v55 = vadd.f32 %v1695_v3, %v1390_v59  ;;  %v1394_v62 = vpop.f32.mrf.mxu1  ;;  %v6284_v59 = vmov 0 }
 0x1f1   : > { %v1658_v16 = vrot.slane %v1394_v62, 7  ;;  %v6285_v59 = vsel %vm4891_vm12, 4294967295, %v6284_v59  ;;  %v4902_v62 = vpop.f32.mrf.mxu0 }
 0x1f2   : > { %v1883_v21 = vadd.f32 %v1823_v18, %v1754_v55  ;;  %v1396_v26 = vpop.f32.mrf.mxu1  ;;  %6286 = vst [vmem:[#allocation17_spill] sm:$0xff] %v6285_v59 }
 0x1f3   : > { %v1694_v6 = vsel %vm6216_vm3, %v1657_v57, %v1658_v16 }
 0x1f4   : > { %v1755_v20 = vadd.f32 %v1694_v6, %v1396_v26  ;;  %v1398_v31 = vpop.f32.mrf.mxu1  ;;  %v4873_v42 = vadd.f32 %v4680_v46, %v1883_v21  ;;  %v653_v21 = vadd.s32 152, %v4636_v2 }
 0x1f5   : > { %v1659_v23 = vrot.slane %v1398_v31, 7  ;;  %v1597_v31 = vpop.f32.mrf.mxu0 }
 0x1f6   : > { %6280 = vst [vmem:[#allocation15_spill] sm:$0xff] %v4873_v42  ;;  %v4876_v54 = vadd.f32 %v4769_v35, %v1755_v20  ;;  %1965 = vadd.xlane.f32.xlu1 %v4873_v42  ;;  %v1400_v58 = vpop.f32.mrf.mxu1  ;;  %v1853_v35 = vsel %vm4879_vm11, %v1821_v8, 0.0  ;;  %v1793_v8 = vrot.slane %v1597_v31, 1 }
 0x1f7   : > { %v1693_v9 = vsel %vm6216_vm3, %v1658_v16, %v1659_v23  ;;  %v4923_v61 = vpop.f32.mrf.mxu0 }
 0x1f8   : > { %v1756_v52 = vadd.f32 %v1693_v9, %v1400_v58  ;;  %v1404_v53 = vpop.f32.mrf.mxu1  ;;  %v654_v58 = vadd.s32 160, %v4636_v2 }
 0x1f9   : > { %v1660_v57 = vrot.slane %v1404_v53, 7 }
 0x1fa   : > { %v1885_v40 = vadd.f32 %v1853_v35, %v1756_v52  ;;  %v1406_v3 = vpop.f32.mrf.mxu1  ;;  %v803_v52 = vand.u32 31, %v653_v21 }
 0x1fb   : > { %v1692_v41 = vsel %vm6216_vm3, %v1659_v23, %v1660_v57  ;;  %v1819_v23 = vsel %vm6241_vm4, %v1790_v39, %v1791_v13  ;;  %v6289_v39 = vmov 0 }
 0x1fc   : > { %v1725_v44 = vsel %vm4891_vm12, %v1692_v41, 0.0  ;;  %v1408_v34 = vpop.f32.mrf.mxu1  ;;  %v4900_v55 = vadd.f32 %v4680_v46, %v1885_v40  ;;  %vm4929_vm13 = vcmp.ne.s32.totalorder %v803_v52, 31 }
 0x1fd   : > { %v1757_v18 = vadd.f32 %v1725_v44, %v1406_v3  ;;  %v1661_v16 = vrot.slane %v1408_v34, 7  ;;  %v810_v3 = vand.u32 31, %v654_v58  ;;  %v6290_v39 = vsel %vm4929_vm13, 4294967295, %v6289_v39 }
 0x1fe   : > { %6287 = vst [vmem:[#allocation18_spill] sm:$0xff] %v4900_v55  ;;  %1969 = vadd.xlane.f32.xlu1 %v4900_v55  ;;  %v1410_v19 = vpop.f32.mrf.mxu1  ;;  %6291 = vst [vmem:[#allocation20_spill] sm:$0xff] %v6290_v39  ;;  %v1817_v44 = vsel %vm6241_vm4, %v1792_v24, %v1793_v8  ;;  %v1795_v58 = vrot.slane %v4902_v62, 1 }
 0x1ff   : > { %v4907_v26 = vadd.f32 %v4823_v60, %v1757_v18  ;;  %v1691_v27 = vsel %vm6216_vm3, %v1660_v57, %v1661_v16  ;;  %vm4941_vm14 = vcmp.ne.s32.totalorder %v810_v3, 0 }
 0x200   : > { %v1758_v6 = vadd.f32 %v1691_v27, %v1410_v19  ;;  %v1414_v20 = vpop.f32.mrf.mxu1  ;;  %v1600_v19 = vpop.f32.mrf.mxu0  ;;  %v6292_v27 = vmov 0 }
 0x201   : > { %v1662_v30 = vrot.slane %v1414_v20, 7  ;;  %v6293_v27 = vsel %vm4941_vm14, 4294967295, %v6292_v27 }
 0x202   : > { %v1887_v9 = vadd.f32 %v1819_v23, %v1758_v6  ;;  %v1416_v60 = vpop.f32.mrf.mxu1  ;;  %6294 = vst [vmem:[#allocation21_spill] sm:$0xff] %v6293_v27  ;;  %v1794_v6 = vrot.slane %v1600_v19, 1 }
 0x203   : > { %v1690_v53 = vsel %vm6216_vm3, %v1661_v16, %v1662_v30 }
 0x204   : > { %v1759_v35 = vadd.f32 %v1690_v53, %v1416_v60  ;;  %v1418_v57 = vpop.f32.mrf.mxu1  ;;  %v4921_v40 = vadd.f32 %v4680_v46, %v1887_v9  ;;  %v1816_v52 = vsel %vm6241_vm4, %v1793_v8, %v1794_v6  ;;  %v1815_v62 = vsel %vm6241_vm4, %v1794_v6, %v1795_v58 }
 0x205   : > { %v1663_v32 = vrot.slane %v1418_v57, 7 }
 0x206   : > { %6288 = vst [vmem:[#allocation19_spill] sm:$0xff] %v4921_v40  ;;  %v4926_v13 = vadd.f32 %v4812_v48, %v1759_v35  ;;  %1973 = vadd.xlane.f32.xlu1 %v4921_v40  ;;  %v1420_v41 = vpop.f32.mrf.mxu1  ;;  %v1857_v48 = vsel %vm4929_vm13, %v1817_v44, 0.0 }
 0x207   : > { %v1689_v34 = vsel %vm6216_vm3, %v1662_v30, %v1663_v32 }
 0x208   : > { %v1760_v18 = vadd.f32 %v1689_v34, %v1420_v41  ;;  %v1424_v16 = vpop.f32.mrf.mxu1  ;;  %v6206_v41 = vrot.slane %v4923_v61, 1  ;;  %v658_v34 = vadd.s32 192, %v4636_v2 }
 0x209   : > { %v1664_v21 = vrot.slane %v1424_v16, 7 }
 0x20a   : > { %v1889_v20 = vadd.f32 %v1857_v48, %v1760_v18  ;;  %v1426_v22 = vpop.f32.mrf.mxu1 }
 0x20b   : > { %v1688_v24 = vsel %vm6216_vm3, %v1663_v32, %v1664_v21 }
 0x20c   : > { %v1729_v31 = vsel %vm4941_vm14, %v1688_v24, 0.0  ;;  %v1428_v23 = vpop.f32.mrf.mxu1  ;;  %v4950_v30 = vadd.f32 %v4680_v46, %v1889_v20 }
 0x20d   : > { %v1761_v9 = vadd.f32 %v1729_v31, %v1426_v22  ;;  %v1665_v60 = vrot.slane %v1428_v23, 7  ;;  %v838_v22 = vand.u32 31, %v658_v34  ;;  %v4974_v31 = vpop.f32.mrf.mxu0 }
 0x20e   : > { %6295 = vst [vmem:[#allocation22_spill] sm:$0xff] %v4950_v30  ;;  %1977 = vadd.xlane.f32.xlu1 %v4950_v30  ;;  %v1430_v53 = vpop.f32.mrf.mxu1 }
 0x20f   : > { %v4956_v35 = vadd.f32 %v1816_v52, %v1761_v9  ;;  %v1687_v57 = vsel %vm6216_vm3, %v1664_v21, %v1665_v60  ;;  %v1814_v21 = vsel %vm6241_vm4, %v1795_v58, %v6206_v41  ;;  %vm4980_vm15 = vcmp.ne.s32.totalorder %v838_v22, 0  ;;  %v4984_v58 = vpop.f32.mrf.mxu0 }
 0x210   : > { %v1762_v32 = vadd.f32 %v1687_v57, %v1430_v53  ;;  %v1434_v3 = vpop.f32.mrf.mxu1  ;;  %v6296_v53 = vmov 0 }
 0x211   : > { %v1666_v44 = vrot.slane %v1434_v3, 7  ;;  %v6297_v53 = vsel %vm4980_vm15, 4294967295, %v6296_v53 }
 0x212   : > { %v4964_v18 = vadd.f32 %v1815_v62, %v1762_v32  ;;  %v1436_v8 = vpop.f32.mrf.mxu1  ;;  %6298 = vst [vmem:[#allocation23_spill] sm:$0xff] %v6297_v53 }
 0x213   : > { %v1686_v16 = vsel %vm6216_vm3, %v1665_v60, %v1666_v44 }
 0x214   : > { %v1763_v19 = vadd.f32 %v1686_v16, %v1436_v8  ;;  %v1438_v48 = vpop.f32.mrf.mxu1  ;;  %v4992_v16 = vpop.f32.mrf.mxu0 }
 0x215   : > { %v1667_v20 = vrot.slane %v1438_v48, 7 }
 0x216   : > { %v4972_v24 = vadd.f32 %v1814_v21, %v1763_v19  ;;  %v1440_v6 = vpop.f32.mrf.mxu1 }
 0x217   : > { %v1685_v23 = vsel %vm6216_vm3, %v1666_v44, %v1667_v20 }
 0x218   : > { %v4978_v9 = vadd.f32 %v1685_v23, %v1440_v6  ;;  %v1444_v60 = vpop.f32.mrf.mxu1  ;;  %v662_v6 = vadd.s32 224, %v4636_v2  ;;  %v4999_v23 = vpop.f32.mrf.mxu0 }
 0x219   : > { %v1668_v52 = vrot.slane %v1444_v60, 7 }
 0x21a   : > { %v1446_v57 = vpop.f32.mrf.mxu1  ;;  %v5005_v41 = vpop.f32.mrf.mxu0 }
 0x21b   : > { %v1684_v32 = vsel %vm6216_vm3, %v1667_v20, %v1668_v52 }
 0x21c   : > { %v1733_v3 = vsel %vm4980_vm15, %v1684_v32, 0.0  ;;  %v1448_v62 = vpop.f32.mrf.mxu1 }
 0x21d   : > { %v4990_v34 = vadd.f32 %v1733_v3, %v1446_v57  ;;  %v1669_v44 = vrot.slane %v1448_v62, 7  ;;  %v866_v62 = vand.u32 31, %v662_v6 }
 0x21e   : > { %v1450_v8 = vpop.f32.mrf.mxu1 }
 0x21f   : > { %v1683_v19 = vsel %vm6216_vm3, %v1668_v52, %v1669_v44  ;;  %vm5011_vm0 = vcmp.ne.s32.totalorder %v866_v62, 0 }
 0x220   : > { %v4996_v48 = vadd.f32 %v1683_v19, %v1450_v8  ;;  %v1454_v21 = vpop.f32.mrf.mxu1  ;;  %v6300_v7 = vsel %vm5011_vm0, 4294967295, %v6299_v7 }
 0x221   : > { %v1670_v22 = vrot.slane %v1454_v21, 7  ;;  %6301 = vst [vmem:[#allocation24_spill] sm:$0xff] %v6300_v7 }
 0x222   : > { %v1456_v20 = vpop.f32.mrf.mxu1 }
 0x223   : > { %v1682_v60 = vsel %vm6216_vm3, %v1669_v44, %v1670_v22 }
 0x224   : > { %v5003_v57 = vadd.f32 %v1682_v60, %v1456_v20  ;;  %v1458_v32 = vpop.f32.mrf.mxu1  ;;  %v5015_v20 = vpop.f32.mrf.mxu0 }
 0x225   : > { %v1671_v3 = vrot.slane %v1458_v32, 7 }
 0x226   : > { %v1460_v45 = vpop.f32.mrf.mxu1  ;;  %v5024_v62 = vpop.f32.mrf.mxu0 }
 0x227   : > { %v1681_v52 = vsel %vm6216_vm3, %v1670_v22, %v1671_v3 }
 0x228   : > { %v5009_v8 = vadd.f32 %v1681_v52, %v1460_v45  ;;  %v1464_v19 = vpop.f32.mrf.mxu1  ;;  %v665_v52 = vadd.s32 248, %v4636_v2 }
 0x229   : > { %v1672_v21 = vrot.slane %v1464_v19, 7 }
 0x22a   : > { %v1466_v44 = vpop.f32.mrf.mxu1 }
 0x22b   : > { %v1680_v6 = vsel %vm6216_vm3, %v1671_v3, %v1672_v21  ;;  %v670_v3 = vand.u32 31, %v4636_v2 }
 0x22c   : > { %v1737_v60 = vsel %vm5011_vm0, %v1680_v6, 0.0  ;;  %v1468_v32 = vpop.f32.mrf.mxu1  ;;  %v6217_v6 = vrot.slane %v5024_v62, 1  ;;  %vm6345_vm0 = vcmp.lt.s32.totalorder %v4636_v2, 7 }
 0x22d   : > { %v5021_v15 = vadd.f32 %v1737_v60, %v1466_v44  ;;  %v1673_v45 = vrot.slane %v1468_v32, 7  ;;  %v887_v44 = vand.u32 31, %v665_v52  ;;  %vm5036_vm1 = vcmp.ne.s32.totalorder %v670_v3, 0 }
 0x22e   : > { %v1470_v22 = vpop.f32.mrf.mxu1  ;;  %v6303_v33 = vsel %vm5036_vm1, 4294967295, %v6302_v33 }
 0x22f   : > { %v1679_v19 = vsel %vm6216_vm3, %v1672_v21, %v1673_v45  ;;  %vm5040_vm2 = vcmp.ne.s32.totalorder %v887_v44, 31 }
 0x230   : > { %v5028_v53 = vadd.f32 %v1679_v19, %v1470_v22  ;;  %v1474_v39 = vpop.f32.mrf.mxu1  ;;  %v6304_v22 = vmov 0  ;;  %v6306_v19 = vrot.slane %v4640_v5, 1 }
 0x231   : > { %v1674_v27 = vrot.slane %v1474_v39, 7  ;;  %v6305_v22 = vsel %vm5040_vm2, 4294967295, %v6304_v22 }
 0x232   : > { %v1476_v7 = vpop.f32.mrf.mxu1 }
 0x233   : > { %v1678_v60 = vsel %vm6216_vm3, %v1673_v45, %v1674_v27  ;;  %v1837_v45 = vsel %vm6241_vm4, %v6217_v6, %v6306_v19  ;;  %v5157_v6 = vadd.f32 %v4680_v46, %v4972_v24  ;;  %v661_v24 = vadd.s32 216, %v4636_v2 }
 0x234   : > { %v5034_v32 = vadd.f32 %v1678_v60, %v1476_v7  ;;  %v1478_v59 = vpop.f32.mrf.mxu1  ;;  %v6307_v7 = vrot.slane %v4634_v1, 7  ;;  %v1869_v5 = vsel %vm5040_vm2, %v1837_v45, 0.0 }
 0x235   : > { %v1675_v21 = vrot.slane %v1478_v59, 7  ;;  %6323 = vst [vmem:[#allocation37_spill] sm:$0xff] %v5157_v6 }
 0x236   : > { %v1480_v39 = vpop.f32.mrf.mxu1 }
 0x237   : > { %v1708_v52 = vsel %vm6216_vm3, %v1675_v21, %v6307_v7  ;;  %v1677_v59 = vsel %vm6216_vm3, %v1674_v27, %v1675_v21  ;;  %v5070_v27 = vadd.f32 %v4680_v46, %v4662_v29  ;;  %v5085_v21 = vadd.f32 %v4680_v46, %v4798_v28 }
 0x238   : > { %v1709_v3 = vsel %vm5036_vm1, %v1708_v52, 0.0  ;;  %v1772_v44 = vadd.f32 %v1677_v59, %v1480_v39  ;;  %v5090_v29 = vadd.f32 %v4680_v46, %v4831_v11  ;;  %v5105_v28 = vadd.f32 %v4680_v46, %v4907_v26  ;;  %v4172_v39 = vld [vmem:[#allocation2 + $0x16c] ss:$12 sps:$4 sm:$0xff]  }
 0x239   : > { %v1741_v60 = vadd.f32 %v1709_v3, %v4638_v4  ;;  %6309 = vst [vmem:[#allocation26_spill] sm:$0xff] %v5070_v27  ;;  %v5075_v4 = vadd.f32 %v4680_v46, %v4713_v12  ;;  %6312 = vst [vmem:[#allocation29_spill] sm:$0xff] %v5085_v21  ;;  %v5095_v12 = vadd.f32 %v4680_v46, %v4859_v0  ;;  %v4170_v0 = vld [vmem:[#allocation2 + $0x168] ss:$12 sps:$4 sm:$0xff]   ;;  %2542 = vmatprep.subr.bf16.mxu0 %v4172_v39 }
 0x23a   : > { %v5061_v14 = vadd.f32 %v1869_v5, %v1772_v44  ;;  %6313 = vst [vmem:[#allocation30_spill] sm:$0xff] %v5090_v29  ;;  %6316 = vst [vmem:[#allocation33_spill] sm:$0xff] %v5105_v28  ;;  %v5110_v11 = vadd.f32 %v4680_v46, %v4926_v13  ;;  %2543 = vmatpush1.bf16.msra.mxu0 %v4170_v0  ;;  %v657_v26 = vadd.s32 184, %v4636_v2 }
 0x23b   : > { %v1870_v19 = vadd.f32 %v4658_v25, %v1741_v60  ;;  %6310 = vst [vmem:[#allocation27_spill] sm:$0xff] %v5075_v4  ;;  %v5080_v25 = vadd.f32 %v4680_v46, %v4745_v43  ;;  %6314 = vst [vmem:[#allocation31_spill] sm:$0xff] %v5095_v12  ;;  %v5100_v43 = vadd.f32 %v4680_v46, %v4876_v54 }
 0x23c   : > { %6317 = vst [vmem:[#allocation34_spill] sm:$0xff] %v5110_v11  ;;  %v831_v0 = vand.u32 31, %v657_v26 }
 0x23d   : > { %v5065_v1 = vadd.f32 %v4680_v46, %v1870_v19  ;;  %6311 = vst [vmem:[#allocation28_spill] sm:$0xff] %v5080_v25  ;;  %6315 = vst [vmem:[#allocation32_spill] sm:$0xff] %v5100_v43  ;;  %v1797_v19 = vrot.slane %v4984_v58, 1  ;;  %v6321_v58 = vrot.slane %v4923_v61, 1  ;;  %v1798_v61 = vrot.slane %v4999_v23, 1 }
 0x23e   : > { %vm5133_vm3 = vcmp.ne.s32.totalorder %v831_v0, 31  ;;  %v4173_v23 = vld [vmem:[#allocation2 + $0x150] ss:$12 sps:$4 sm:$0xff]  }
 0x23f   : > { %6308 = vst [vmem:[#allocation25_spill] sm:$0xff] %v5065_v1  ;;  %1939 = vadd.xlane.f32.xlu0 %v5065_v1 }
 0x243   : > { %1941 = vadd.xlane.f32.xlu0 %v5070_v27 }
 0x247   : > { %1947 = vadd.xlane.f32.xlu0 %v5075_v4 }
 0x24b   : > { %1951 = vadd.xlane.f32.xlu0 %v5080_v25 }
 0x24f   : > { %1955 = vadd.xlane.f32.xlu0 %v5085_v21 }
 0x253   : > { %1959 = vadd.xlane.f32.xlu0 %v5090_v29  ;;  %v1944_v54 = vpop.xlane.xlu1 %1943 }
 0x254   : > { %v2005_v3 = vmul.f32 0.0078125, %v1944_v54 }
 0x257   : > { %1963 = vadd.xlane.f32.xlu0 %v5095_v12  ;;  %v1946_v60 = vpop.xlane.xlu1 %1945 }
 0x258   : > { %v2006_v39 = vmul.f32 0.0078125, %v1946_v60 }
 0x25a   : > { %v5148_v60 = vsub.f32 %v4706_v49, %v2006_v39  ;;  %v4178_v49 = vld [vmem:[#allocation2 + $0x13c] ss:$12 sps:$4 sm:$0xff]  }
 0x25b   : > { %1967 = vadd.xlane.f32.xlu0 %v5100_v43 }
 0x25f   : > { %1971 = vadd.xlane.f32.xlu0 %v5105_v28  ;;  %v1950_v0 = vpop.xlane.xlu1 %1949 }
 0x263   : > { %1975 = vadd.xlane.f32.xlu0 %v5110_v11 }
 0x2c8   : > { %v1940_v45 = vpop.xlane.xlu0 %1939 }
 0x2c9   : > { %v2003_v7 = vmul.f32 0.0078125, %v1940_v45  ;;  %v5125_v45 = vadd.f32 %v4680_v46, %v4956_v35  ;;  %v1813_v35 = vsel %vm6241_vm4, %v6321_v58, %v1797_v19  ;;  %v2008_v58 = vmul.f32 0.0078125, %v1950_v0 }
 0x2cb   : > { %v5114_v52 = vsub.f32 %v5065_v1, %v2003_v7  ;;  %6318 = vst [vmem:[#allocation35_spill] sm:$0xff] %v5125_v45  ;;  %v5130_v7 = vsub.f32 %v4683_v51, %v2005_v3  ;;  %v5145_v3 = vadd.f32 %v4680_v46, %v4964_v18  ;;  %v2070_v18 = vmul.f32 %v5148_v60, %v5148_v60  ;;  %v4179_v51 = vld [vmem:[#allocation2 + $0x170] ss:$12 sps:$4 sm:$0xff]  }
 0x2cc   : > { %v1942_v59 = vpop.xlane.xlu0 %1941  ;;  %4016 = vmatprep.subr.bf16.mxu1 %v4179_v51 }
 0x2cd   : > { %v2004_v44 = vmul.f32 0.0078125, %v1942_v59  ;;  %v2067_v13 = vmul.f32 %v5114_v52, %v5114_v52  ;;  %6322 = vst [vmem:[#allocation36_spill] sm:$0xff] %v5145_v3  ;;  %4017 = vmatpush3.bf16.msra.mxu1 %v4179_v51 }
 0x2cf   : > { %2099 = vadd.xlane.f32.xlu0 %v2067_v13  ;;  %v5120_v5 = vsub.f32 %v5070_v27, %v2004_v44  ;;  %v2069_v13 = vmul.f32 %v5130_v7, %v5130_v7 }
 0x2d0   : > { %v1948_v59 = vpop.xlane.xlu0 %1947 }
 0x2d1   : > { %v2068_v54 = vmul.f32 %v5120_v5, %v5120_v5  ;;  %v2007_v26 = vmul.f32 0.0078125, %v1948_v59 }
 0x2d3   : > { %1979 = vadd.xlane.f32.xlu0 %v5125_v45  ;;  %2101 = vadd.xlane.f32.xlu1 %v2068_v54  ;;  %v1861_v54 = vsel %vm5133_vm3, %v1813_v35, 0.0  ;;  %v5162_v39 = vsub.f32 %v5075_v4, %v2007_v26  ;;  %v4175_v35 = vld [vmem:[#allocation2 + $0x154] ss:$12 sps:$4 sm:$0xff]  }
 0x2d4   : > { %v1893_v59 = vadd.f32 %v1861_v54, %v4978_v9  ;;  %v1952_v1 = vpop.xlane.xlu0 %1951  ;;  %v1812_v9 = vsel %vm6241_vm4, %v1797_v19, %v1798_v61  ;;  %2544 = vmatprep.subr.bf16.mxu0 %v4175_v35 }
 0x2d5   : > { %v1894_v26 = vadd.f32 %v1812_v9, %v4990_v34  ;;  %v2009_v54 = vmul.f32 0.0078125, %v1952_v1  ;;  %v2071_v4 = vmul.f32 %v5162_v39, %v5162_v39  ;;  %2545 = vmatpush1.bf16.msra.mxu0 %v4173_v23  ;;  %v1800_v34 = vrot.slane %v4992_v16, 1  ;;  %v4182_v16 = vld [vmem:[#allocation2 + $0x124] ss:$12 sps:$4 sm:$0xff]  }
 0x2d6   : > { %v5170_v0 = vadd.f32 %v4680_v46, %v1893_v59  ;;  %v4176_v59 = vld [vmem:[#allocation2 + $0x138] ss:$12 sps:$4 sm:$0xff]   ;;  %v1801_v1 = vrot.slane %v5015_v20, 1  ;;  %v859_v9 = vand.u32 31, %v661_v24  ;;  %2546 = vmatprep.subr.bf16.mxu0 %v4178_v49  ;;  %v6326_v24 = vmov 0 }
 0x2d7   : > { %2103 = vadd.xlane.f32.xlu0 %v2069_v13  ;;  %1981 = vadd.xlane.f32.xlu1 %v5145_v3  ;;  %v1799_v13 = vrot.slane %v4974_v31, 1  ;;  %v5176_v31 = vsub.f32 %v4741_v38, %v2008_v58  ;;  %v4183_v20 = vld [vmem:[#allocation2 + $0x158] ss:$12 sps:$4 sm:$0xff]  }
 0x2d8   : > { %6324 = vst [vmem:[#allocation38_spill] sm:$0xff] %v5170_v0  ;;  %v1956_v58 = vpop.xlane.xlu0 %1955  ;;  %vm5195_vm2 = vcmp.ne.s32.totalorder %v859_v9, 31  ;;  %4018 = vmatprep.subr.bf16.mxu1 %v4183_v20 }
 0x2d9   : > { %v1811_v19 = vsel %vm6241_vm4, %v1798_v61, %v1799_v13  ;;  %v2072_v38 = vmul.f32 %v5176_v31, %v5176_v31  ;;  %v5187_v61 = vadd.f32 %v4680_v46, %v1894_v26  ;;  %2547 = vmatpush1.bf16.msra.mxu0 %v4176_v59  ;;  %v1810_v49 = vsel %vm6241_vm4, %v1799_v13, %v1800_v34 }
 0x2da   : > { %v1895_v35 = vadd.f32 %v1811_v19, %v4996_v48  ;;  %v4180_v48 = vld [vmem:[#allocation2 + $0x120] ss:$12 sps:$4 sm:$0xff]   ;;  %v6327_v24 = vsel %vm5195_vm2, 4294967295, %v6326_v24  ;;  %v1809_v26 = vsel %vm6241_vm4, %v1800_v34, %v1801_v1  ;;  %2548 = vmatprep.subr.bf16.mxu0 %v4182_v16  ;;  %v1896_v51 = vadd.f32 %v1810_v49, %v5003_v57  ;;  %4019 = vmatpush3.bf16.msra.mxu1 %v4183_v20  ;;  %v4184_v57 = vld [vmem:[#allocation2 + $0x108] ss:$12 sps:$4 sm:$0xff]  }
 0x2db   : > { %1983 = vadd.xlane.f32.xlu0 %v5157_v6  ;;  %2105 = vadd.xlane.f32.xlu1 %v2070_v18  ;;  %v1954_v18 = vpop.xlane.xlu1 %1953  ;;  %6325 = vst [vmem:[#allocation39_spill] sm:$0xff] %v5187_v61  ;;  %v4186_v34 = vld [vmem:[#allocation2 + $0x10c] ss:$12 sps:$4 sm:$0xff]  }
 0x2dc   : > { %v2010_v23 = vmul.f32 0.0078125, %v1954_v18  ;;  %v2011_v18 = vmul.f32 0.0078125, %v1956_v58  ;;  %v1960_v9 = vpop.xlane.xlu0 %1959 }
 0x2dd   : > { %2549 = vmatpush1.bf16.msra.mxu0 %v4180_v48  ;;  %v5217_v48 = vadd.f32 %v4680_v46, %v1896_v51 }
 0x2de   : > { %v5208_v13 = vsub.f32 %v4791_v17, %v2010_v23  ;;  %2550 = vmatprep.subr.bf16.mxu0 %v4186_v34  ;;  %v5220_v49 = vsub.f32 %v5085_v21, %v2011_v18 }
 0x2df   : > { %1985 = vadd.xlane.f32.xlu1 %v5170_v0  ;;  %2107 = vadd.xlane.f32.xlu0 %v2071_v4  ;;  %v5190_v4 = vsub.f32 %v5080_v25, %v2009_v54  ;;  %v5202_v54 = vadd.f32 %v4680_v46, %v1895_v35  ;;  %v1958_v59 = vpop.xlane.xlu1 %1957  ;;  %v4187_v25 = vld [vmem:[#allocation2 + $0x140] ss:$12 sps:$4 sm:$0xff]   ;;  %v1865_v35 = vsel %vm5195_vm2, %v1809_v26, 0.0  ;;  %6329 = vst [vmem:[#allocation41_spill] sm:$0xff] %v5217_v48  ;;  %vm6339_vm2 = vcmp.lt.s32.totalorder %v4636_v2, 7 }
 0x2e0   : > { %v1897_v16 = vadd.f32 %v1865_v35, %v5009_v8  ;;  %4020 = vmatprep.subr.bf16.mxu1 %v4187_v25  ;;  %v2012_v23 = vmul.f32 0.0078125, %v1958_v59  ;;  %v2074_v20 = vmul.f32 %v5208_v13, %v5208_v13  ;;  %v4190_v26 = vld [vmem:[#allocation2 + $0xf4] ss:$12 sps:$4 sm:$0xff]   ;;  %v4188_v8 = vld [vmem:[#allocation2 + $0xf0] ss:$12 sps:$4 sm:$0xff]   ;;  %v1964_v34 = vpop.xlane.xlu0 %1963  ;;  %v2075_v35 = vmul.f32 %v5220_v49, %v5220_v49 }
 0x2e1   : > { %6328 = vst [vmem:[#allocation40_spill] sm:$0xff] %v5202_v54  ;;  %v2073_v19 = vmul.f32 %v5190_v4, %v5190_v4  ;;  %2551 = vmatpush1.bf16.msra.mxu0 %v4184_v57  ;;  %4021 = vmatpush3.bf16.msra.mxu1 %v4187_v25  ;;  %v2013_v25 = vmul.f32 0.0078125, %v1960_v9 }
 0x2e2   : > { %v5227_v51 = vadd.f32 %v4680_v46, %v1897_v16  ;;  %2552 = vmatprep.subr.bf16.mxu0 %v4190_v26  ;;  %v4192_v26 = vld [vmem:[#allocation2 + $0xd8] ss:$12 sps:$4 sm:$0xff]  }
 0x2e3   : > { %2109 = vadd.xlane.f32.xlu1 %v2072_v38  ;;  %1987 = vadd.xlane.f32.xlu0 %v5187_v61  ;;  %v1632_v38 = vpop.f32.mrf.mxu0  ;;  %v1962_v57 = vpop.xlane.xlu1 %1961 }
 0x2e4   : > { %v1802_v58 = vrot.slane %v1632_v38, 1  ;;  %v1803_v38 = vrot.slane %v5005_v41, 1  ;;  %6330 = vst [vmem:[#allocation42_spill] sm:$0xff] %v5227_v51  ;;  %v5233_v41 = vsub.f32 %v4828_v10, %v2012_v23  ;;  %v2014_v9 = vmul.f32 0.0078125, %v1962_v57 }
 0x2e5   : > { %2553 = vmatpush1.bf16.msra.mxu0 %v4188_v8  ;;  %v5245_v8 = vsub.f32 %v5090_v29, %v2013_v25  ;;  %v6332_v57 = vrot.slane %v5024_v62, 1  ;;  %v4200_v62 = vld [vmem:[#allocation2 + $0xe0] ss:$12 sps:$4 sm:$0xff]  }
 0x2e6   : > { %v1808_v59 = vsel %vm6241_vm4, %v1801_v1, %v1802_v58  ;;  %v4195_v1 = vld [vmem:[#allocation2 + $0x110] ss:$12 sps:$4 sm:$0xff]   ;;  %v1807_v16 = vsel %vm6241_vm4, %v1802_v58, %v1803_v38  ;;  %v2076_v23 = vmul.f32 %v5233_v41, %v5233_v41  ;;  %v1968_v58 = vpop.xlane.xlu0 %1967 }
 0x2e7   : > { %1989 = vadd.xlane.f32.xlu1 %v5202_v54  ;;  %2111 = vadd.xlane.f32.xlu0 %v2073_v19  ;;  %v4191_v19 = vld [vmem:[#allocation2 + $0x128] ss:$12 sps:$4 sm:$0xff]   ;;  %v1898_v18 = vadd.f32 %v1808_v59, %v5021_v15  ;;  %v1899_v15 = vadd.f32 %v1807_v16, %v5028_v53  ;;  %v4198_v59 = vld [vmem:[#allocation2 + $0xc4] ss:$12 sps:$4 sm:$0xff]   ;;  %v4196_v53 = vld [vmem:[#allocation2 + $0xc0] ss:$12 sps:$4 sm:$0xff]  }
 0x2e8   : > { %4022 = vmatprep.subr.bf16.mxu1 %v4191_v19  ;;  %v2015_v16 = vmul.f32 0.0078125, %v1964_v34 }
 0x2e9   : > { %4023 = vmatpush3.bf16.msra.mxu1 %v4191_v19  ;;  %v5242_v19 = vadd.f32 %v4680_v46, %v1898_v18  ;;  %v5253_v18 = vadd.f32 %v4680_v46, %v1899_v15 }
 0x2ea   : > { %4024 = vmatprep.subr.bf16.mxu1 %v4195_v1  ;;  %v1972_v15 = vpop.xlane.xlu0 %1971 }
 0x2eb   : > { %2113 = vadd.xlane.f32.xlu1 %v2074_v20  ;;  %1991 = vadd.xlane.f32.xlu0 %v5217_v48  ;;  %v4194_v20 = vld [vmem:[#allocation2 + $0xdc] ss:$12 sps:$4 sm:$0xff]   ;;  %6331 = vst [vmem:[#allocation43_spill] sm:$0xff] %v5242_v19  ;;  %6333 = vst [vmem:[#allocation44_spill] sm:$0xff] %v5253_v18 }
 0x2ec   : > { %2554 = vmatprep.subr.bf16.mxu0 %v4194_v20  ;;  %v1806_v20 = vsel %vm6241_vm4, %v1803_v38, %v6332_v57  ;;  %v2017_v57 = vmul.f32 0.0078125, %v1968_v58  ;;  %v2019_v58 = vmul.f32 0.0078125, %v1972_v15  ;;  %vm6337_vm4 = vcmp.lt.s32.totalorder %v4636_v2, 1 }
 0x2ed   : > { %2555 = vmatpush1.bf16.msra.mxu0 %v4192_v26  ;;  %4025 = vmatpush3.bf16.msra.mxu1 %v4195_v1  ;;  %v1900_v25 = vadd.f32 %v1806_v20, %v5034_v32  ;;  %v1966_v1 = vpop.xlane.xlu1 %1965  ;;  %v2077_v26 = vmul.f32 %v5245_v8, %v5245_v8  ;;  %vm6338_vm1 = vmmov %vm6337_vm4 }
 0x2ee   : > { %2556 = vmatprep.subr.bf16.mxu0 %v4198_v59  ;;  %v2016_v38 = vmul.f32 0.0078125, %v1966_v1 }
 0x2ef   : > { %1993 = vadd.xlane.f32.xlu1 %v5227_v51  ;;  %2115 = vadd.xlane.f32.xlu0 %v2075_v35  ;;  %v4199_v35 = vld [vmem:[#allocation2 + $0xf8] ss:$12 sps:$4 sm:$0xff]   ;;  %v5265_v34 = vadd.f32 %v4680_v46, %v1900_v25  ;;  %v5278_v25 = vadd.f32 %v4680_v46, %v5061_v14  ;;  %v5292_v14 = vsub.f32 %v5105_v28, %v2019_v58 }
 0x2f0   : > { %4026 = vmatprep.subr.bf16.mxu1 %v4199_v35  ;;  %v5272_v20 = vsub.f32 %v4873_v42, %v2016_v38 }
 0x2f1   : > { %2557 = vmatpush1.bf16.msra.mxu0 %v4196_v53  ;;  %4027 = vmatpush3.bf16.msra.mxu1 %v4199_v35  ;;  %v1970_v59 = vpop.xlane.xlu1 %1969  ;;  %6334 = vst [vmem:[#allocation45_spill] sm:$0xff] %v5265_v34  ;;  %v4201_v35 = vld [vmem:[#allocation2 + $0xc8] ss:$12 sps:$4 sm:$0xff]   ;;  %6335 = vst [vmem:[#allocation46_spill] sm:$0xff] %v5278_v25 }
 0x2f2   : > { %4028 = vmatprep.subr.bf16.mxu1 %v4200_v62  ;;  %v2018_v53 = vmul.f32 0.0078125, %v1970_v59  ;;  %v2080_v38 = vmul.f32 %v5272_v20, %v5272_v20 }
 0x2f3   : > { %2117 = vadd.xlane.f32.xlu1 %v2076_v23  ;;  %1995 = vadd.xlane.f32.xlu0 %v5242_v19  ;;  %v5259_v23 = vsub.f32 %v4855_v50, %v2014_v9  ;;  %v5268_v9 = vsub.f32 %v5095_v12, %v2015_v16  ;;  %v5281_v16 = vsub.f32 %v5100_v43, %v2017_v57 }
 0x2f4   : > { %v5287_v15 = vsub.f32 %v4900_v55, %v2018_v53  ;;  %v2083_v43 = vmul.f32 %v5292_v14, %v5292_v14 }
 0x2f5   : > { %v2078_v32 = vmul.f32 %v5259_v23, %v5259_v23  ;;  %4029 = vmatpush3.bf16.msra.mxu1 %v4200_v62  ;;  %v2079_v1 = vmul.f32 %v5268_v9, %v5268_v9  ;;  %v1976_v62 = vpop.xlane.xlu0 %1975  ;;  %v2081_v46 = vmul.f32 %v5281_v16, %v5281_v16 }
 0x2f6   : > { %4030 = vmatprep.subr.bf16.mxu1 %v4201_v35 }
 0x2f7   : > { %1997 = vadd.xlane.f32.xlu1 %v5253_v18  ;;  %2119 = vadd.xlane.f32.xlu0 %v2077_v26  ;;  %v1974_v26 = vpop.xlane.xlu1 %1973 }
 0x2f8   : > { %v2020_v59 = vmul.f32 0.0078125, %v1974_v26 }
 0x2f9   : > { %4031 = vmatpush3.bf16.msra.mxu1 %v4201_v35  ;;  %v2082_v35 = vmul.f32 %v5287_v15, %v5287_v15 }
 0x2fa   : > { %v5302_v26 = vsub.f32 %v4921_v40, %v2020_v59 }
 0x2fb   : > { %2121 = vadd.xlane.f32.xlu1 %v2078_v32  ;;  %1999 = vadd.xlane.f32.xlu0 %v5265_v34  ;;  %v2021_v32 = vmul.f32 0.0078125, %v1976_v62  ;;  %v1978_v57 = vpop.xlane.xlu1 %1977 }
 0x2fc   : > { %v2084_v62 = vmul.f32 %v5302_v26, %v5302_v26 }
 0x2fd   : > { %v5299_v53 = vsub.f32 %v5110_v11, %v2021_v32 }
 0x2ff   : > { %2123 = vadd.xlane.f32.xlu0 %v2079_v1  ;;  %2001 = vadd.xlane.f32.xlu1 %v5278_v25  ;;  %v2022_v1 = vmul.f32 0.0078125, %v1978_v57  ;;  %v2085_v58 = vmul.f32 %v5299_v53, %v5299_v53 }
 0x303   : > { %2127 = vadd.xlane.f32.xlu0 %v2081_v46  ;;  %2125 = vadd.xlane.f32.xlu1 %v2080_v38  ;;  %v5309_v38 = vsub.f32 %v4950_v30, %v2022_v1 }
 0x305   : > { %v2086_v32 = vmul.f32 %v5309_v38, %v5309_v38 }
 0x307   : > { %2131 = vadd.xlane.f32.xlu0 %v2083_v43  ;;  %2129 = vadd.xlane.f32.xlu1 %v2082_v35 }
 0x30b   : > { %2135 = vadd.xlane.f32.xlu0 %v2085_v58  ;;  %2133 = vadd.xlane.f32.xlu1 %v2084_v62 }
 0x30f   : > { %2137 = vadd.xlane.f32.xlu1 %v2086_v32 }
 0x358   : > { %v2100_v46 = vpop.xlane.xlu0 %2099 }
 0x359   : > { %v2163_v59 = vmul.f32 0.0078125, %v2100_v46 }
 0x35b   : > { %v2195_v57 = vadd.f32 1e-05, %v2163_v59 }
 0x35c   : > { %v2102_v43 = vpop.xlane.xlu1 %2101  ;;  %v1980_v35 = vpop.xlane.xlu0 %1979 }
 0x35d   : > { %4202 = vrsqrt.f32 %v2195_v57  ;;  %v2164_v11 = vmul.f32 0.0078125, %v2102_v43  ;;  %v2023_v40 = vmul.f32 0.0078125, %v1980_v35 }
 0x35f   : > { %v2196_v28 = vadd.f32 1e-05, %v2164_v11  ;;  %v5314_v55 = vsub.f32 %v5125_v45, %v2023_v40  ;;  %v5349_v45 = vld [vmem:[%s6202_s6] ss:$0 sm:$0xff] }
 0x360   : > { %v1982_v1 = vpop.xlane.xlu1 %1981  ;;  %v2104_v30 = vpop.xlane.xlu0 %2103 }
 0x361   : > { %4204 = vrsqrt.f32 %v2196_v28  ;;  %v2024_v58 = vmul.f32 0.0078125, %v1982_v1  ;;  %v2165_v62 = vmul.f32 0.0078125, %v2104_v30  ;;  %v2087_v32 = vmul.f32 %v5314_v55, %v5314_v55 }
 0x363   : > { %v2197_v42 = vadd.f32 1e-05, %v2165_v62  ;;  %2139 = vadd.xlane.f32.xlu0 %v2087_v32  ;;  %v5319_v46 = vsub.f32 %v5145_v3, %v2024_v58 }
 0x364   : > { %v2106_v59 = vpop.xlane.xlu1 %2105  ;;  %v1984_v57 = vpop.xlane.xlu0 %1983 }
 0x365   : > { %4206 = vrsqrt.f32 %v2197_v42  ;;  %v2166_v11 = vmul.f32 0.0078125, %v2106_v59  ;;  %v2025_v43 = vmul.f32 0.0078125, %v1984_v57  ;;  %v2088_v40 = vmul.f32 %v5319_v46, %v5319_v46 }
 0x367   : > { %v2198_v35 = vadd.f32 1e-05, %v2166_v11  ;;  %2141 = vadd.xlane.f32.xlu1 %v2088_v40  ;;  %v5324_v30 = vsub.f32 %v5157_v6, %v2025_v43 }
 0x368   : > { %v1986_v28 = vpop.xlane.xlu1 %1985  ;;  %v2108_v1 = vpop.xlane.xlu0 %2107 }
 0x369   : > { %4208 = vrsqrt.f32 %v2198_v35  ;;  %v2026_v62 = vmul.f32 0.0078125, %v1986_v28  ;;  %v2167_v32 = vmul.f32 0.0078125, %v2108_v1  ;;  %v2089_v58 = vmul.f32 %v5324_v30, %v5324_v30  ;;  %v5337_v28 = vld [vmem:[%s6201_s5] ss:$0 sm:$0xff] }
 0x36a   : > { %v4203_v3 = vpop.eup %4202 }
 0x36b   : > { %v2199_v42 = vadd.f32 1e-05, %v2167_v32  ;;  %2143 = vadd.xlane.f32.xlu0 %v2089_v58  ;;  %v5329_v59 = vsub.f32 %v5170_v0, %v2026_v62  ;;  %v2259_v57 = vmul.f32 %v4203_v3, %v5114_v52 }
 0x36c   : > { %v2110_v11 = vpop.xlane.xlu1 %2109  ;;  %v1988_v40 = vpop.xlane.xlu0 %1987 }
 0x36d   : > { %4210 = vrsqrt.f32 %v2199_v42  ;;  %v2168_v43 = vmul.f32 0.0078125, %v2110_v11  ;;  %v2027_v6 = vmul.f32 0.0078125, %v1988_v40  ;;  %v2090_v35 = vmul.f32 %v5329_v59, %v5329_v59 }
 0x36e   : > { %v4205_v1 = vpop.eup %4204  ;;  %v2296_v42 = vmul.f32 %v5337_v28, %v2259_v57 }
 0x36f   : > { %v2260_v32 = vmul.f32 %v4205_v1, %v5120_v5  ;;  %v2200_v62 = vadd.f32 1e-05, %v2168_v43  ;;  %v5341_v58 = vsub.f32 %v5187_v61, %v2027_v6  ;;  %2145 = vadd.xlane.f32.xlu1 %v2090_v35 }
 0x370   : > { %v1990_v52 = vpop.xlane.xlu1 %1989  ;;  %v2112_v3 = vpop.xlane.xlu0 %2111 }
 0x371   : > { %4212 = vrsqrt.f32 %v2200_v62  ;;  %v2028_v11 = vmul.f32 0.0078125, %v1990_v52  ;;  %v2169_v40 = vmul.f32 0.0078125, %v2112_v3  ;;  %v2091_v0 = vmul.f32 %v5341_v58, %v5341_v58 }
 0x372   : > { %v4207_v5 = vpop.eup %4206  ;;  %v2297_v6 = vmul.f32 %v5337_v28, %v2260_v32  ;;  %v2333_v62 = vadd.f32 %v5349_v45, %v2296_v42 }
 0x373   : > { %v5353_v43 = vsub.f32 %v5202_v54, %v2028_v11  ;;  %v2201_v35 = vadd.f32 1e-05, %v2169_v40  ;;  %2147 = vadd.xlane.f32.xlu0 %v2091_v0  ;;  %v2261_v3 = vmul.f32 %v4207_v5, %v5130_v7 }
 0x374   : > { %v2114_v57 = vpop.xlane.xlu1 %2113  ;;  %v1992_v1 = vpop.xlane.xlu0 %1991  ;;  %v2334_v52 = vadd.f32 %v5349_v45, %v2297_v6 }
 0x375   : > { %4214 = vrsqrt.f32 %v2201_v35  ;;  %v2170_v61 = vmul.f32 0.0078125, %v2114_v57  ;;  %v2029_v12 = vmul.f32 0.0078125, %v1992_v1  ;;  %v2092_v50 = vmul.f32 %v5353_v43, %v5353_v43 }
 0x376   : > { %v4209_v32 = vpop.eup %4208  ;;  %v2365_v29 = vpack.c.bf16 %v2334_v52, %v2333_v62  ;;  %v2298_v7 = vmul.f32 %v5337_v28, %v2261_v3  ;;  %v6336_v1 = vmov 0  }
 0x377   : > { %v2202_v11 = vadd.f32 1e-05, %v2170_v61  ;;  %v5361_v40 = vsub.f32 %v5217_v48, %v2029_v12  ;;  %2149 = vadd.xlane.f32.xlu1 %v2092_v50  ;;  %v2262_v0 = vmul.f32 %v4209_v32, %v5148_v60 }
 0x378   : > { %2575 = vmatmul.mubr.bf16.vlgmr.msra.gmra.mxu0 %v2365_v29  ;;  %4032 = vmatprep.mubr.bf16.mxu1 %v2365_v29  ;;  %v1994_v42 = vpop.xlane.xlu1 %1993  ;;  %v2116_v6 = vpop.xlane.xlu0 %2115  ;;  %v2335_v52 = vadd.f32 %v5349_v45, %v2298_v7 }
 0x379   : > { %4216 = vrsqrt.f32 %v2202_v11  ;;  %v2030_v5 = vmul.f32 0.0078125, %v1994_v42  ;;  %v2171_v35 = vmul.f32 0.0078125, %v2116_v6  ;;  %v2093_v57 = vmul.f32 %v5361_v40, %v5361_v40  ;;  %2584 = vmatprep.mubr.bf16.mxu0 %v6336_v1 }
 0x37a   : > { %v4211_v61 = vpop.eup %4210  ;;  %v2299_v12 = vmul.f32 %v5337_v28, %v2262_v0 }
 0x37b   : > { %v5370_v50 = vsub.f32 %v5227_v51, %v2030_v5  ;;  %v2203_v60 = vadd.f32 1e-05, %v2171_v35  ;;  %2151 = vadd.xlane.f32.xlu0 %v2093_v57  ;;  %v2263_v32 = vmul.f32 %v4211_v61, %v5162_v39 }
 0x37c   : > { %v2118_v29 = vpop.xlane.xlu1 %2117  ;;  %v1996_v62 = vpop.xlane.xlu0 %1995  ;;  %v2336_v3 = vadd.f32 %v5349_v45, %v2299_v12 }
 0x37d   : > { %4218 = vrsqrt.f32 %v2203_v60  ;;  %v2172_v11 = vmul.f32 0.0078125, %v2118_v29  ;;  %v2031_v42 = vmul.f32 0.0078125, %v1996_v62  ;;  %v2094_v6 = vmul.f32 %v5370_v50, %v5370_v50 }
 0x37e   : > { %v4213_v0 = vpop.eup %4212  ;;  %v2366_v48 = vpack.c.bf16 %v2336_v3, %v2335_v52  ;;  %v2300_v39 = vmul.f32 %v5337_v28, %v2263_v32 }
 0x37f   : > { %v2204_v5 = vadd.f32 1e-05, %v2172_v11  ;;  %v5378_v35 = vsub.f32 %v5242_v19, %v2031_v42  ;;  %2153 = vadd.xlane.f32.xlu1 %v2094_v6  ;;  %v2264_v57 = vmul.f32 %v4213_v0, %v5176_v31 }
 0x380   : > { %2585 = vmatmul.mubr.bf16.gmra.mxu0 %v2366_v48  ;;  %4033 = vmatmul.mubr.bf16.vlgmr.msra.gmra.mxu1 %v2366_v48  ;;  %v1998_v7 = vpop.xlane.xlu1 %1997  ;;  %v2120_v12 = vpop.xlane.xlu0 %2119  ;;  %v2337_v32 = vadd.f32 %v5349_v45, %v2300_v39 }
 0x381   : > { %4220 = vrsqrt.f32 %v2204_v5  ;;  %v2032_v61 = vmul.f32 0.0078125, %v1998_v7  ;;  %v2173_v60 = vmul.f32 0.0078125, %v2120_v12  ;;  %v2095_v29 = vmul.f32 %v5378_v35, %v5378_v35  ;;  %2594 = vmatprep.mubr.bf16.mxu0 %v6336_v1 }
 0x382   : > { %v4215_v62 = vpop.eup %4214  ;;  %v2301_v52 = vmul.f32 %v5337_v28, %v2264_v57 }
 0x383   : > { %v5387_v3 = vsub.f32 %v5253_v18, %v2032_v61  ;;  %v2205_v31 = vadd.f32 1e-05, %v2173_v60  ;;  %2155 = vadd.xlane.f32.xlu0 %v2095_v29  ;;  %v2265_v6 = vmul.f32 %v4215_v62, %v5190_v4 }
 0x384   : > { %v2122_v48 = vpop.xlane.xlu1 %2121  ;;  %v2000_v11 = vpop.xlane.xlu0 %1999  ;;  %v2338_v42 = vadd.f32 %v5349_v45, %v2301_v52 }
 0x385   : > { %4222 = vrsqrt.f32 %v2205_v31  ;;  %v2174_v0 = vmul.f32 0.0078125, %v2122_v48  ;;  %v2033_v5 = vmul.f32 0.0078125, %v2000_v11  ;;  %v2096_v7 = vmul.f32 %v5387_v3, %v5387_v3 }
 0x386   : > { %v4217_v57 = vpop.eup %4216  ;;  %v2367_v12 = vpack.c.bf16 %v2338_v42, %v2337_v32  ;;  %v2302_v4 = vmul.f32 %v5337_v28, %v2265_v6 }
 0x387   : > { %v2206_v61 = vadd.f32 1e-05, %v2174_v0  ;;  %v5395_v60 = vsub.f32 %v5265_v34, %v2033_v5  ;;  %2157 = vadd.xlane.f32.xlu1 %v2096_v7  ;;  %v2266_v29 = vmul.f32 %v4217_v57, %v5208_v13 }
 0x388   : > { %2595 = vmatmul.mubr.bf16.gmra.mxu0 %v2367_v12  ;;  %4036 = vmatprep.mubr.bf16.mxu1 %v2367_v12  ;;  %v2124_v39 = vpop.xlane.xlu0 %2123  ;;  %v2002_v52 = vpop.xlane.xlu1 %2001  ;;  %v2339_v7 = vadd.f32 %v5349_v45, %v2302_v4 }
 0x389   : > { %4224 = vrsqrt.f32 %v2206_v61  ;;  %v2175_v62 = vmul.f32 0.0078125, %v2124_v39  ;;  %v2034_v31 = vmul.f32 0.0078125, %v2002_v52  ;;  %v2097_v48 = vmul.f32 %v5395_v60, %v5395_v60  ;;  %2604 = vmatprep.mubr.bf16.mxu0 %v6336_v1 }
 0x38a   : > { %v4219_v11 = vpop.eup %4218  ;;  %v2303_v32 = vmul.f32 %v5337_v28, %v2266_v29 }
 0x38b   : > { %v2207_v42 = vadd.f32 1e-05, %v2175_v62  ;;  %v5404_v13 = vsub.f32 %v5278_v25, %v2034_v31  ;;  %2159 = vadd.xlane.f32.xlu0 %v2097_v48  ;;  %v2267_v0 = vmul.f32 %v4219_v11, %v5220_v49 }
 0x38c   : > { %v2128_v5 = vpop.xlane.xlu0 %2127  ;;  %v2126_v6 = vpop.xlane.xlu1 %2125  ;;  %v2340_v57 = vadd.f32 %v5349_v45, %v2303_v32 }
 0x38d   : > { %4226 = vrsqrt.f32 %v2207_v42  ;;  %v2177_v12 = vmul.f32 0.0078125, %v2128_v5  ;;  %v2176_v61 = vmul.f32 0.0078125, %v2126_v6  ;;  %v2098_v39 = vmul.f32 %v5404_v13, %v5404_v13 }
 0x38e   : > { %v4221_v29 = vpop.eup %4220  ;;  %v2368_v52 = vpack.c.bf16 %v2340_v57, %v2339_v7  ;;  %v2304_v62 = vmul.f32 %v5337_v28, %v2267_v0 }
 0x38f   : > { %v2209_v31 = vadd.f32 1e-05, %v2177_v12  ;;  %v2208_v48 = vadd.f32 1e-05, %v2176_v61  ;;  %2161 = vadd.xlane.f32.xlu1 %v2098_v39  ;;  %v2268_v49 = vmul.f32 %v4221_v29, %v5233_v41 }
 0x390   : > { %2605 = vmatmul.mubr.bf16.gmra.mxu0 %v2368_v52  ;;  %4037 = vmatmul.mubr.bf16.gmra.mxu1 %v2368_v52  ;;  %v2132_v4 = vpop.xlane.xlu0 %2131  ;;  %v2130_v11 = vpop.xlane.xlu1 %2129  ;;  %v2341_v0 = vadd.f32 %v5349_v45, %v2304_v62 }
 0x391   : > { %4228 = vrsqrt.f32 %v2209_v31  ;;  %v2179_v32 = vmul.f32 0.0078125, %v2132_v4  ;;  %v2178_v42 = vmul.f32 0.0078125, %v2130_v11  ;;  %2614 = vmatprep.mubr.bf16.mxu0 %v6336_v1  ;;  %v2305_v5 = vmul.f32 %v5337_v28, %v2268_v49 }
 0x392   : > { %v4223_v6 = vpop.eup %4222  ;;  %4230 = vrsqrt.f32 %v2208_v48 }
 0x393   : > { %v2211_v7 = vadd.f32 1e-05, %v2179_v32  ;;  %v2210_v57 = vadd.f32 1e-05, %v2178_v42  ;;  %v2342_v12 = vadd.f32 %v5349_v45, %v2305_v5  ;;  %v2269_v41 = vmul.f32 %v4223_v6, %v5245_v8 }
 0x394   : > { %v2136_v61 = vpop.xlane.xlu0 %2135  ;;  %v2134_v39 = vpop.xlane.xlu1 %2133 }
 0x395   : > { %4232 = vrsqrt.f32 %v2211_v7  ;;  %v2181_v29 = vmul.f32 0.0078125, %v2136_v61  ;;  %v2180_v52 = vmul.f32 0.0078125, %v2134_v39  ;;  %v2369_v31 = vpack.c.bf16 %v2342_v12, %v2341_v0 }
 0x396   : > { %v4225_v4 = vpop.eup %4224  ;;  %4234 = vrsqrt.f32 %v2210_v57  ;;  %v2306_v62 = vmul.f32 %v5337_v28, %v2269_v41 }
 0x397   : > { %v2213_v11 = vadd.f32 1e-05, %v2181_v29  ;;  %v2212_v49 = vadd.f32 1e-05, %v2180_v52  ;;  %4040 = vmatprep.mubr.bf16.mxu1 %v2369_v31  ;;  %v2270_v48 = vmul.f32 %v4225_v4, %v5259_v23 }
 0x398   : > { %2615 = vmatmul.mubr.bf16.gmra.mxu0 %v2369_v31  ;;  %v2138_v32 = vpop.xlane.xlu1 %2137  ;;  %v2343_v0 = vadd.f32 %v5349_v45, %v2306_v62 }
 0x399   : > { %4236 = vrsqrt.f32 %v2213_v11  ;;  %v2182_v42 = vmul.f32 0.0078125, %v2138_v32  ;;  %2624 = vmatprep.mubr.bf16.mxu0 %v6336_v1  ;;  %v2307_v8 = vmul.f32 %v5337_v28, %v2270_v48 }
 0x39a   : > { %v4227_v5 = vpop.eup %4226  ;;  %4238 = vrsqrt.f32 %v2212_v49 }
 0x39b   : > { %v2214_v6 = vadd.f32 1e-05, %v2182_v42  ;;  %v2344_v7 = vadd.f32 %v5349_v45, %v2307_v8  ;;  %v2271_v57 = vmul.f32 %v4227_v5, %v5268_v9 }
 0x39d   : > { %4240 = vrsqrt.f32 %v2214_v6  ;;  %v2370_v23 = vpack.c.bf16 %v2344_v7, %v2343_v0  ;;  %v2308_v29 = vmul.f32 %v5337_v28, %v2271_v57 }
 0x39e   : > { %v4229_v12 = vpop.eup %4228 }
 0x39f   : > { %v4231_v41 = vpop.eup %4230  ;;  %4041 = vmatmul.mubr.bf16.gmra.mxu1 %v2370_v23  ;;  %v2273_v61 = vmul.f32 %v4229_v12, %v5281_v16  ;;  %v2345_v11 = vadd.f32 %v5349_v45, %v2308_v29 }
 0x3a0   : > { %2625 = vmatmul.mubr.bf16.gmra.mxu0 %v2370_v23  ;;  %v2272_v39 = vmul.f32 %v4231_v41, %v5272_v20 }
 0x3a1   : > { %2634 = vmatprep.mubr.bf16.mxu0 %v6336_v1  ;;  %v2310_v9 = vmul.f32 %v5337_v28, %v2273_v61 }
 0x3a2   : > { %v4233_v52 = vpop.eup %4232  ;;  %v2309_v31 = vmul.f32 %v5337_v28, %v2272_v39 }
 0x3a3   : > { %v4235_v4 = vpop.eup %4234  ;;  %v2275_v16 = vmul.f32 %v4233_v52, %v5292_v14  ;;  %v2347_v8 = vadd.f32 %v5349_v45, %v2310_v9 }
 0x3a4   : > { %v2346_v49 = vadd.f32 %v5349_v45, %v2309_v31  ;;  %v2274_v48 = vmul.f32 %v4235_v4, %v5287_v15 }
 0x3a5   : > { %v2312_v7 = vmul.f32 %v5337_v28, %v2275_v16 }
 0x3a6   : > { %v4237_v62 = vpop.eup %4236  ;;  %v2371_v20 = vpack.c.bf16 %v2346_v49, %v2345_v11  ;;  %v2311_v32 = vmul.f32 %v5337_v28, %v2274_v48 }
 0x3a7   : > { %v4239_v42 = vpop.eup %4238  ;;  %v2277_v5 = vmul.f32 %v4237_v62, %v5299_v53  ;;  %v2349_v53 = vadd.f32 %v5349_v45, %v2312_v7 }
 0x3a8   : > { %2635 = vmatmul.mubr.bf16.gmra.mxu0 %v2371_v20  ;;  %4044 = vmatprep.mubr.bf16.mxu1 %v2371_v20  ;;  %v2348_v6 = vadd.f32 %v5349_v45, %v2311_v32  ;;  %v2276_v0 = vmul.f32 %v4239_v42, %v5302_v26 }
 0x3a9   : > { %2644 = vmatprep.mubr.bf16.mxu0 %v6336_v1  ;;  %v2314_v12 = vmul.f32 %v5337_v28, %v2277_v5 }
 0x3aa   : > { %v4241_v15 = vpop.eup %4240  ;;  %v2372_v14 = vpack.c.bf16 %v2348_v6, %v2347_v8  ;;  %v2313_v57 = vmul.f32 %v5337_v28, %v2276_v0 }
 0x3ab   : > { %v2278_v23 = vmul.f32 %v4241_v15, %v5309_v38  ;;  %v2351_v39 = vadd.f32 %v5349_v45, %v2314_v12 }
 0x3ac   : > { %4045 = vmatmul.mubr.bf16.gmra.mxu1 %v2372_v14  ;;  %v2350_v41 = vadd.f32 %v5349_v45, %v2313_v57 }
 0x3ad   : > { %v2315_v61 = vmul.f32 %v5337_v28, %v2278_v23 }
 0x3ae   : > { %v2373_v26 = vpack.c.bf16 %v2350_v41, %v2349_v53 }
 0x3af   : > { %v2352_v29 = vadd.f32 %v5349_v45, %v2315_v61 }
 0x3b0   : > { %2645 = vmatmul.mubr.bf16.gmra.mxu0 %v2372_v14  ;;  %4048 = vmatprep.mubr.bf16.mxu1 %v2373_v26 }
 0x3b1   : > { %v2374_v52 = vpack.c.bf16 %v2352_v29, %v2351_v39  ;;  %2654 = vmatprep.mubr.bf16.mxu0 %v6336_v1 }
 0x3b4   : > { %4049 = vmatmul.mubr.bf16.gmra.mxu1 %v2374_v52 }
 0x3b8   : > { %2655 = vmatmul.mubr.bf16.gmra.mxu0 %v2373_v26 }
 0x3b9   : > { %2664 = vmatprep.mubr.bf16.mxu0 %v6336_v1 }
 0x3c0   : > { %2665 = vmatmul.mubr.bf16.gmra.mxu0 %v2374_v52 }
 0x3c1   : > { %2674 = vmatprep.mubr.bf16.mxu0 %v6336_v1 }
 0x3ec   : > { %v2140_v38 = vpop.xlane.xlu0 %2139 }
 0x3ed   : > { %v2183_v31 = vmul.f32 0.0078125, %v2140_v38 }
 0x3ef   : > { %v2215_v4 = vadd.f32 1e-05, %v2183_v31 }
 0x3f0   : > { %v2142_v9 = vpop.xlane.xlu1 %2141 }
 0x3f1   : > { %4242 = vrsqrt.f32 %v2215_v4  ;;  %v2184_v11 = vmul.f32 0.0078125, %v2142_v9 }
 0x3f3   : > { %v2216_v49 = vadd.f32 1e-05, %v2184_v11 }
 0x3f4   : > { %v2144_v48 = vpop.xlane.xlu0 %2143 }
 0x3f5   : > { %4244 = vrsqrt.f32 %v2216_v49  ;;  %v2185_v16 = vmul.f32 0.0078125, %v2144_v48 }
 0x3f7   : > { %v2217_v62 = vadd.f32 1e-05, %v2185_v16 }
 0x3f8   : > { %v2146_v20 = vpop.xlane.xlu1 %2145 }
 0x3f9   : > { %4246 = vrsqrt.f32 %v2217_v62  ;;  %v2186_v32 = vmul.f32 0.0078125, %v2146_v20 }
 0x3fb   : > { %v2218_v42 = vadd.f32 1e-05, %v2186_v32 }
 0x3fc   : > { %v2148_v8 = vpop.xlane.xlu0 %2147 }
 0x3fd   : > { %4248 = vrsqrt.f32 %v2218_v42  ;;  %v2187_v5 = vmul.f32 0.0078125, %v2148_v8 }
 0x3fe   : > { %v4243_v6 = vpop.eup %4242 }
 0x3ff   : > { %v2219_v0 = vadd.f32 1e-05, %v2187_v5  ;;  %v2279_v7 = vmul.f32 %v4243_v6, %v5314_v55 }
 0x400   : > { %v2150_v15 = vpop.xlane.xlu1 %2149 }
 0x401   : > { %4250 = vrsqrt.f32 %v2219_v0  ;;  %v2188_v14 = vmul.f32 0.0078125, %v2150_v15  ;;  %v2316_v53 = vmul.f32 %v5337_v28, %v2279_v7 }
 0x402   : > { %v4245_v57 = vpop.eup %4244 }
 0x403   : > { %v2220_v23 = vadd.f32 1e-05, %v2188_v14  ;;  %v2280_v12 = vmul.f32 %v4245_v57, %v5319_v46  ;;  %v2353_v52 = vadd.f32 %v5349_v45, %v2316_v53 }
 0x404   : > { %v2152_v41 = vpop.xlane.xlu0 %2151 }
 0x405   : > { %4252 = vrsqrt.f32 %v2220_v23  ;;  %v2189_v61 = vmul.f32 0.0078125, %v2152_v41  ;;  %v2317_v26 = vmul.f32 %v5337_v28, %v2280_v12 }
 0x406   : > { %v4247_v39 = vpop.eup %4246 }
 0x407   : > { %v2221_v29 = vadd.f32 1e-05, %v2189_v61  ;;  %v2354_v55 = vadd.f32 %v5349_v45, %v2317_v26  ;;  %v2281_v38 = vmul.f32 %v4247_v39, %v5324_v30 }
 0x408   : > { %v2154_v31 = vpop.xlane.xlu1 %2153 }
 0x409   : > { %4254 = vrsqrt.f32 %v2221_v29  ;;  %v2190_v4 = vmul.f32 0.0078125, %v2154_v31  ;;  %v2375_v9 = vpack.c.bf16 %v2354_v55, %v2353_v52  ;;  %v2318_v48 = vmul.f32 %v5337_v28, %v2281_v38 }
 0x40a   : > { %v4249_v46 = vpop.eup %4248 }
 0x40b   : > { %v2222_v11 = vadd.f32 1e-05, %v2190_v4  ;;  %2675 = vmatmul.mubr.bf16.gmra.mxu0 %v2375_v9  ;;  %4052 = vmatprep.mubr.bf16.mxu1 %v2375_v9  ;;  %v2282_v49 = vmul.f32 %v4249_v46, %v5329_v59  ;;  %v2355_v42 = vadd.f32 %v5349_v45, %v2318_v48 }
 0x40c   : > { %v2156_v16 = vpop.xlane.xlu0 %2155  ;;  %2684 = vmatprep.mubr.bf16.mxu0 %v6336_v1 }
 0x40d   : > { %4256 = vrsqrt.f32 %v2222_v11  ;;  %v2191_v62 = vmul.f32 0.0078125, %v2156_v16  ;;  %v2319_v20 = vmul.f32 %v5337_v28, %v2282_v49 }
 0x40e   : > { %v4251_v30 = vpop.eup %4250 }
 0x40f   : > { %v2223_v32 = vadd.f32 1e-05, %v2191_v62  ;;  %v2356_v8 = vadd.f32 %v5349_v45, %v2319_v20  ;;  %v2283_v5 = vmul.f32 %v4251_v30, %v5341_v58 }
 0x410   : > { %v2158_v6 = vpop.xlane.xlu1 %2157 }
 0x411   : > { %4258 = vrsqrt.f32 %v2223_v32  ;;  %v2192_v59 = vmul.f32 0.0078125, %v2158_v6  ;;  %v2376_v0 = vpack.c.bf16 %v2356_v8, %v2355_v42  ;;  %v2320_v57 = vmul.f32 %v5337_v28, %v2283_v5 }
 0x412   : > { %v4253_v7 = vpop.eup %4252 }
 0x413   : > { %v2224_v15 = vadd.f32 1e-05, %v2192_v59  ;;  %2685 = vmatmul.mubr.bf16.gmra.mxu0 %v2376_v0  ;;  %4053 = vmatmul.mubr.bf16.gmra.mxu1 %v2376_v0  ;;  %v2284_v14 = vmul.f32 %v4253_v7, %v5353_v43  ;;  %v2357_v61 = vadd.f32 %v5349_v45, %v2320_v57 }
 0x414   : > { %v2160_v23 = vpop.xlane.xlu0 %2159  ;;  %2694 = vmatprep.mubr.bf16.mxu0 %v6336_v1 }
 0x415   : > { %4260 = vrsqrt.f32 %v2224_v15  ;;  %v2193_v12 = vmul.f32 0.0078125, %v2160_v23  ;;  %v2321_v53 = vmul.f32 %v5337_v28, %v2284_v14 }
 0x416   : > { %v4255_v58 = vpop.eup %4254 }
 0x417   : > { %v2225_v41 = vadd.f32 1e-05, %v2193_v12  ;;  %v2358_v26 = vadd.f32 %v5349_v45, %v2321_v53  ;;  %v2285_v39 = vmul.f32 %v4255_v58, %v5361_v40 }
 0x418   : > { %v2162_v29 = vpop.xlane.xlu1 %2161 }
 0x419   : > { %4262 = vrsqrt.f32 %v2225_v41  ;;  %v2194_v43 = vmul.f32 0.0078125, %v2162_v29  ;;  %v2377_v52 = vpack.c.bf16 %v2358_v26, %v2357_v61  ;;  %v2322_v4 = vmul.f32 %v5337_v28, %v2285_v39 }
 0x41a   : > { %v4257_v55 = vpop.eup %4256 }
 0x41b   : > { %v2226_v38 = vadd.f32 1e-05, %v2194_v43  ;;  %2695 = vmatmul.mubr.bf16.gmra.mxu0 %v2377_v52  ;;  %4056 = vmatprep.mubr.bf16.mxu1 %v2377_v52  ;;  %v2286_v31 = vmul.f32 %v4257_v55, %v5370_v50  ;;  %v2359_v40 = vadd.f32 %v5349_v45, %v2322_v4 }
 0x41c   : > { %2704 = vmatprep.mubr.bf16.mxu0 %v6336_v1 }
 0x41d   : > { %4264 = vrsqrt.f32 %v2226_v38  ;;  %v2323_v9 = vmul.f32 %v5337_v28, %v2286_v31 }
 0x41e   : > { %v4259_v46 = vpop.eup %4258 }
 0x41f   : > { %v2360_v11 = vadd.f32 %v5349_v45, %v2323_v9  ;;  %v2287_v49 = vmul.f32 %v4259_v46, %v5378_v35  ;;  %v5513_v46 = vld [vmem:[%s6200_s4 + $0x1] ss:$0 sm:$0xff] }
 0x421   : > { %v2378_v48 = vpack.c.bf16 %v2360_v11, %v2359_v40  ;;  %v2324_v62 = vmul.f32 %v5337_v28, %v2287_v49 }
 0x422   : > { %v4261_v16 = vpop.eup %4260 }
 0x423   : > { %2705 = vmatmul.mubr.bf16.gmra.mxu0 %v2378_v48  ;;  %4057 = vmatmul.mubr.bf16.gmra.mxu1 %v2378_v48  ;;  %v2288_v50 = vmul.f32 %v4261_v16, %v5387_v3  ;;  %v2361_v32 = vadd.f32 %v5349_v45, %v2324_v62 }
 0x424   : > { %2714 = vmatprep.mubr.bf16.mxu0 %v6336_v1 }
 0x425   : > { %v2325_v20 = vmul.f32 %v5337_v28, %v2288_v50 }
 0x426   : > { %v4263_v30 = vpop.eup %4262 }
 0x427   : > { %v2362_v42 = vadd.f32 %v5349_v45, %v2325_v20  ;;  %v2289_v8 = vmul.f32 %v4263_v30, %v5395_v60 }
 0x429   : > { %v2379_v35 = vpack.c.bf16 %v2362_v42, %v2361_v32  ;;  %v2326_v3 = vmul.f32 %v5337_v28, %v2289_v8 }
 0x42a   : > { %v4265_v5 = vpop.eup %4264 }
 0x42b   : > { %2715 = vmatmul.mubr.bf16.gmra.mxu0 %v2379_v35  ;;  %4060 = vmatprep.mubr.bf16.mxu1 %v2379_v35  ;;  %v2290_v6 = vmul.f32 %v4265_v5, %v5404_v13  ;;  %v2363_v0 = vadd.f32 %v5349_v45, %v2326_v3 }
 0x42c   : > { %2724 = vmatprep.mubr.bf16.mxu0 %v6336_v1 }
 0x42d   : > { %v2327_v59 = vmul.f32 %v5337_v28, %v2290_v6 }
 0x42f   : > { %v2364_v7 = vadd.f32 %v5349_v45, %v2327_v59 }
 0x431   : > { %v2380_v15 = vpack.c.bf16 %v2364_v7, %v2363_v0 }
 0x433   : > { %2725 = vmatmul.mubr.bf16.gmra.mxu0 %v2380_v15  ;;  %4061 = vmatmul.mubr.bf16.gmra.mxu1 %v2380_v15 }
 0x438   : > { %v5494_v60 = vpop.f32.mrf.mxu0 }
 0x439   : > { %v6246_v28 = vrot.slane %v5494_v60, 7 }
 0x43a   : > { %v5496_v14 = vpop.f32.mrf.mxu0 }
 0x43c   : > { %v2580_v57 = vpop.f32.mrf.mxu0 }
 0x43d   : > { %v2897_v53 = vrot.slane %v2580_v57, 7 }
 0x43e   : > { %v2582_v23 = vpop.f32.mrf.mxu0 }
 0x43f   : > { %v2958_v39 = vsel %vm6338_vm1, %v6246_v28, %v2897_v53  ;;  %vm6341_vm1 = vmmov %vm6339_vm2 }
 0x440   : > { %v2586_v13 = vpop.f32.mrf.mxu0  ;;  %v4034_v12 = vpop.f32.mrf.mxu1  ;;  %v2993_v40 = vadd.f32 %v2958_v39, %v2582_v23 }
 0x441   : > { %v2898_v58 = vrot.slane %v2586_v13, 7  ;;  %v3026_v29 = vrot.slane %v4034_v12, 1 }
 0x442   : > { %v2588_v1 = vpop.f32.mrf.mxu0  ;;  %v5498_v41 = vpop.f32.mrf.mxu1 }
 0x443   : > { %v2957_v45 = vsel %vm6337_vm4, %v2897_v53, %v2898_v58  ;;  %v6245_v31 = vrot.slane %v5498_v41, 1  ;;  %vm6340_vm4 = vmmov %vm6339_vm2 }
 0x444   : > { %v2590_v61 = vpop.f32.mrf.mxu0  ;;  %v4035_v26 = vpop.f32.mrf.mxu1  ;;  %v2994_v52 = vadd.f32 %v2957_v45, %v2588_v1 }
 0x445   : > { %v3027_v43 = vrot.slane %v4035_v26, 1  ;;  %v2899_v42 = vrot.slane %v2590_v61, 7 }
 0x446   : > { %v2592_v55 = vpop.f32.mrf.mxu0  ;;  %v2772_v38 = vpop.f32.mrf.mxu1 }
 0x447   : > { %v3025_v4 = vrot.slane %v2772_v38, 1  ;;  %v3084_v9 = vsel %vm6339_vm2, %v3026_v29, %v3027_v43  ;;  %vm6342_vm2 = vcmp.lt.s32.totalorder %v4636_v2, 1 }
 0x448   : > { %v2596_v11 = vpop.f32.mrf.mxu0  ;;  %v3122_v49 = vadd.f32 %v3084_v9, %v2994_v52  ;;  %v2956_v3 = vsel %vm6342_vm2, %v2898_v58, %v2899_v42 }
 0x449   : > { %v3085_v48 = vsel %vm6340_vm4, %v3025_v4, %v3026_v29  ;;  %v5521_v16 = vsel %vm6341_vm1, %v6245_v31, %v3025_v4  ;;  %v2900_v8 = vrot.slane %v2596_v11, 7  ;;  %vm6343_vm4 = vmmov %vm6342_vm2  ;;  %v2995_v13 = vadd.f32 %v2956_v3, %v2592_v55 }
 0x44a   : > { %v2598_v50 = vpop.f32.mrf.mxu0  ;;  %v5524_v62 = vadd.f32 %v5513_v46, %v3122_v49  ;;  %v3121_v20 = vadd.f32 %v3085_v48, %v2993_v40  ;;  %vm6344_vm1 = vmmov %vm6342_vm2 }
 0x44b   : > { %v2955_v0 = vsel %vm6343_vm4, %v2899_v42, %v2900_v8  ;;  %vm6346_vm2 = vmmov %vm6344_vm1 }
 0x44c   : > { %v2600_v30 = vpop.f32.mrf.mxu0  ;;  %3193 = vadd.xlane.f32.xlu0 %v5524_v62  ;;  %v5528_v32 = vadd.f32 %v5513_v46, %v3121_v20  ;;  %v2964_v1 = vsel %vm4693_vm6, %v2955_v0, 0.0  ;;  %vm6347_vm6 = vmmov %vm6345_vm0 }
 0x44d   : > { %v2901_v59 = vrot.slane %v2600_v30, 7  ;;  %v2996_v56 = vadd.f32 %v2964_v1, %v2598_v50  ;;  %vm6349_vm4 = vmmov %vm6344_vm1 }
 0x44e   : > { %v2602_v35 = vpop.f32.mrf.mxu0  ;;  %3191 = vadd.xlane.f32.xlu1 %v5528_v32 }
 0x44f   : > { %v2954_v45 = vsel %vm6344_vm1, %v2900_v8, %v2901_v59 }
 0x450   : > { %v2606_v5 = vpop.f32.mrf.mxu0  ;;  %v4038_v6 = vpop.f32.mrf.mxu1  ;;  %v2997_v9 = vadd.f32 %v2954_v45, %v2602_v35 }
 0x451   : > { %v2902_v57 = vrot.slane %v2606_v5, 7  ;;  %v3030_v52 = vrot.slane %v4038_v6, 1 }
 0x452   : > { %v2608_v7 = vpop.f32.mrf.mxu0  ;;  %v2785_v15 = vpop.f32.mrf.mxu1 }
 0x453   : > { %v3028_v23 = vrot.slane %v2785_v15, 1  ;;  %v2953_v55 = vsel %vm6346_vm2, %v2901_v59, %v2902_v57  ;;  %vm6350_vm2 = vmmov %vm6344_vm1 }
 0x454   : > { %v2610_v12 = vpop.f32.mrf.mxu0  ;;  %v4039_v53 = vpop.f32.mrf.mxu1  ;;  %v2998_v48 = vadd.f32 %v2953_v55, %v2608_v7 }
 0x455   : > { %v3083_v58 = vsel %vm6345_vm0, %v3027_v43, %v3028_v23  ;;  %v3031_v61 = vrot.slane %v4039_v53, 1  ;;  %v2903_v50 = vrot.slane %v2610_v12, 7 }
 0x456   : > { %v2612_v26 = vpop.f32.mrf.mxu0  ;;  %v2788_v39 = vpop.f32.mrf.mxu1  ;;  %v3091_v29 = vsel %vm4668_vm5, %v3083_v58, 0.0  ;;  %vm6348_vm5 = vmmov %vm6345_vm0 }
 0x457   : > { %v3029_v38 = vrot.slane %v2788_v39, 1  ;;  %v3123_v4 = vadd.f32 %v3091_v29, %v2995_v13  ;;  %v3080_v36 = vsel %vm6348_vm5, %v3030_v52, %v3031_v61  ;;  %v2952_v7 = vsel %vm6349_vm4, %v2902_v57, %v2903_v50 }
 0x458   : > { %v2616_v40 = vpop.f32.mrf.mxu0  ;;  %v3126_v6 = vadd.f32 %v3080_v36, %v2998_v48  ;;  %v2999_v39 = vadd.f32 %v2952_v7, %v2612_v26 }
 0x459   : > { %v5546_v11 = vadd.f32 %v5513_v46, %v3123_v4  ;;  %v3082_v43 = vsel %vm6347_vm6, %v3028_v23, %v3029_v38  ;;  %v3081_v49 = vsel %vm6345_vm0, %v3029_v38, %v3030_v52  ;;  %v2904_v3 = vrot.slane %v2616_v40, 7  ;;  %vm6351_vm6 = vmmov %vm6345_vm0 }
 0x45a   : > { %v2618_v20 = vpop.f32.mrf.mxu0  ;;  %v3124_v30 = vadd.f32 %v3082_v43, %v2996_v56  ;;  %v3125_v42 = vadd.f32 %v3081_v49, %v2997_v9  ;;  %v5566_v13 = vadd.f32 %v5513_v46, %v3126_v6  ;;  %vm6352_vm0 = vmmov %vm6344_vm1 }
 0x45b   : > { %3195 = vadd.xlane.f32.xlu1 %v5546_v11  ;;  %v2951_v12 = vsel %vm6344_vm1, %v2903_v50, %v2904_v3  ;;  %vm6355_vm4 = vmmov %vm6352_vm0 }
 0x45c   : > { %v2620_v8 = vpop.f32.mrf.mxu0  ;;  %v5556_v35 = vadd.f32 %v5513_v46, %v3124_v30  ;;  %v5559_v5 = vadd.f32 %v5513_v46, %v3125_v42  ;;  %v2968_v52 = vsel %vm4775_vm8, %v2951_v12, 0.0  ;;  %vm6353_vm8 = vmmov %vm6348_vm5 }
 0x45d   : > { %v2905_v15 = vrot.slane %v2620_v8, 7  ;;  %v3000_v36 = vadd.f32 %v2968_v52, %v2618_v20  ;;  %vm6356_vm1 = vmmov %vm6352_vm0 }
 0x45e   : > { %v2622_v59 = vpop.f32.mrf.mxu0  ;;  %3197 = vadd.xlane.f32.xlu0 %v5556_v35 }
 0x45f   : > { %3199 = vadd.xlane.f32.xlu1 %v5559_v5  ;;  %v4042_v0 = vpop.f32.mrf.mxu1  ;;  %v2950_v57 = vsel %vm6350_vm2, %v2904_v3, %v2905_v15  ;;  %vm6357_vm2 = vmmov %vm6348_vm5 }
 0x460   : > { %v2626_v23 = vpop.f32.mrf.mxu0  ;;  %v3034_v40 = vrot.slane %v4042_v0, 1  ;;  %v3001_v48 = vadd.f32 %v2950_v57, %v2622_v59 }
 0x461   : > { %v2801_v53 = vpop.f32.mrf.mxu1  ;;  %v2906_v1 = vrot.slane %v2626_v23, 7 }
 0x462   : > { %v2628_v45 = vpop.f32.mrf.mxu0  ;;  %3201 = vadd.xlane.f32.xlu0 %v5566_v13  ;;  %v3032_v58 = vrot.slane %v2801_v53, 1 }
 0x463   : > { %v4043_v29 = vpop.f32.mrf.mxu1  ;;  %v2949_v26 = vsel %vm6352_vm0, %v2905_v15, %v2906_v1 }
 0x464   : > { %v3079_v55 = vsel %vm6351_vm6, %v3031_v61, %v3032_v58  ;;  %v2630_v38 = vpop.f32.mrf.mxu0  ;;  %v3035_v4 = vrot.slane %v4043_v29, 1  ;;  %v3002_v8 = vadd.f32 %v2949_v26, %v2628_v45  ;;  %vm6358_vm6 = vmmov %vm6352_vm0 }
 0x465   : > { %v2804_v56 = vpop.f32.mrf.mxu1  ;;  %v3095_v9 = vsel %vm4749_vm7, %v3079_v55, 0.0  ;;  %vm6354_vm7 = vmmov %vm6348_vm5  ;;  %v2907_v0 = vrot.slane %v2630_v38, 7 }
 0x466   : > { %v2632_v43 = vpop.f32.mrf.mxu0  ;;  %v3033_v49 = vrot.slane %v2804_v56, 1  ;;  %v3127_v63 = vadd.f32 %v3095_v9, %v2999_v39  ;;  %v3076_v50 = vsel %vm6354_vm7, %v3034_v40, %v3035_v4  ;;  %vm6364_vm7 = vmmov %vm6357_vm2 }
 0x467   : > { %v3130_v23 = vadd.f32 %v3076_v50, %v3002_v8  ;;  %v2948_v45 = vsel %vm6355_vm4, %v2906_v1, %v2907_v0  ;;  %vm6366_vm4 = vmmov %vm6352_vm0 }
 0x468   : > { %v2636_v30 = vpop.f32.mrf.mxu0  ;;  %v5582_v42 = vadd.f32 %v5513_v46, %v3127_v63  ;;  %v3078_v61 = vsel %vm6353_vm8, %v3032_v58, %v3033_v49  ;;  %v3077_v47 = vsel %vm6348_vm5, %v3033_v49, %v3034_v40  ;;  %v3003_v9 = vadd.f32 %v2948_v45, %v2632_v43  ;;  %vm6362_vm8 = vmmov %vm6357_vm2 }
 0x469   : > { %v3128_v6 = vadd.f32 %v3078_v61, %v3000_v36  ;;  %v3129_v3 = vadd.f32 %v3077_v47, %v3001_v48  ;;  %v2908_v7 = vrot.slane %v2636_v30, 7  ;;  %v5604_v55 = vadd.f32 %v5513_v46, %v3130_v23  ;;  %vm6363_vm5 = vmmov %vm6352_vm0 }
 0x46a   : > { %v2638_v20 = vpop.f32.mrf.mxu0  ;;  %3203 = vadd.xlane.f32.xlu1 %v5582_v42 }
 0x46b   : > { %v5592_v59 = vadd.f32 %v5513_v46, %v3128_v6  ;;  %v5595_v15 = vadd.f32 %v5513_v46, %v3129_v3  ;;  %v2947_v58 = vsel %vm6356_vm1, %v2907_v0, %v2908_v7  ;;  %vm6369_vm1 = vmmov %vm6352_vm0 }
 0x46c   : > { %v2640_v12 = vpop.f32.mrf.mxu0  ;;  %v4046_v53 = vpop.f32.mrf.mxu1  ;;  %v2972_v40 = vsel %vm4846_vm10, %v2947_v58, 0.0  ;;  %vm6360_vm10 = vmmov %vm6357_vm2 }
 0x46d   : > { %3205 = vadd.xlane.f32.xlu0 %v5592_v59  ;;  %v2909_v39 = vrot.slane %v2640_v12, 7  ;;  %v3004_v50 = vadd.f32 %v2972_v40, %v2638_v20  ;;  %v3038_v8 = vrot.slane %v4046_v53, 1 }
 0x46e   : > { %v2642_v29 = vpop.f32.mrf.mxu0  ;;  %v2817_v52 = vpop.f32.mrf.mxu1  ;;  %3207 = vadd.xlane.f32.xlu1 %v5595_v15 }
 0x46f   : > { %v3036_v57 = vrot.slane %v2817_v52, 1  ;;  %v2946_v49 = vsel %vm6358_vm6, %v2908_v7, %v2909_v39  ;;  %vm6372_vm6 = vmmov %vm6364_vm7 }
 0x470   : > { %v2646_v38 = vpop.f32.mrf.mxu0  ;;  %v4047_v56 = vpop.f32.mrf.mxu1  ;;  %v3005_v0 = vadd.f32 %v2946_v49, %v2642_v29 }
 0x471   : > { %v3075_v1 = vsel %vm6357_vm2, %v3035_v4, %v3036_v57  ;;  %v2910_v26 = vrot.slane %v2646_v38, 7  ;;  %3209 = vadd.xlane.f32.xlu0 %v5604_v55  ;;  %v3039_v61 = vrot.slane %v4047_v56, 1 }
 0x472   : > { %v2648_v63 = vpop.f32.mrf.mxu0  ;;  %v2820_v36 = vpop.f32.mrf.mxu1  ;;  %v3099_v30 = vsel %vm4834_vm9, %v3075_v1, 0.0  ;;  %vm6361_vm9 = vmmov %vm6357_vm2 }
 0x473   : > { %v2945_v43 = vsel %vm6352_vm0, %v2909_v39, %v2910_v26  ;;  %v3037_v37 = vrot.slane %v2820_v36, 1  ;;  %v3131_v47 = vadd.f32 %v3099_v30, %v3003_v9  ;;  %v3072_v20 = vsel %vm6362_vm8, %v3038_v8, %v3039_v61  ;;  %vm6376_vm8 = vmmov %vm6372_vm6 }
 0x474   : > { %v3006_v4 = vadd.f32 %v2945_v43, %v2648_v63  ;;  %v2650_v6 = vpop.f32.mrf.mxu0  ;;  %v4050_v3 = vpop.f32.mrf.mxu1 }
 0x475   : > { %v2911_v23 = vrot.slane %v2650_v6, 7  ;;  %v5618_v7 = vadd.f32 %v5513_v46, %v3131_v47  ;;  %v3074_v12 = vsel %vm6360_vm10, %v3036_v57, %v3037_v37  ;;  %v3073_v39 = vsel %vm6361_vm9, %v3037_v37, %v3038_v8  ;;  %vm6373_vm10 = vmmov %vm6352_vm0 }
 0x476   : > { %v2652_v45 = vpop.f32.mrf.mxu0  ;;  %v2833_v58 = vpop.f32.mrf.mxu1  ;;  %v3132_v52 = vadd.f32 %v3074_v12, %v3004_v50  ;;  %v3133_v38 = vadd.f32 %v3073_v39, %v3005_v0  ;;  %v3134_v56 = vadd.f32 %v3072_v20, %v3006_v4  ;;  %vm6375_vm9 = vmmov %vm6352_vm0 }
 0x477   : > { %v2944_v53 = vsel %vm6363_vm5, %v2910_v26, %v2911_v23  ;;  %v3040_v29 = vrot.slane %v2833_v58, 1  ;;  %3211 = vadd.xlane.f32.xlu1 %v5618_v7  ;;  %vm6378_vm5 = vmmov %vm6352_vm0 }
 0x478   : > { %v3007_v9 = vadd.f32 %v2944_v53, %v2652_v45  ;;  %v2656_v40 = vpop.f32.mrf.mxu0  ;;  %v5629_v57 = vpop.f32.mrf.mxu1  ;;  %v5632_v1 = vadd.f32 %v5513_v46, %v3132_v52  ;;  %v5637_v36 = vadd.f32 %v5513_v46, %v3133_v38  ;;  %v5648_v6 = vadd.f32 %v5513_v46, %v3134_v56 }
 0x479   : > { %v3071_v49 = vsel %vm6364_vm7, %v3039_v61, %v3040_v29  ;;  %v2912_v63 = vrot.slane %v2656_v40, 7  ;;  %v3042_v52 = vrot.slane %v4050_v3, 1  ;;  %v3043_v56 = vrot.slane %v5629_v57, 1  ;;  %vm6380_vm7 = vmmov %vm6372_vm6 }
 0x47a   : > { %3213 = vadd.xlane.f32.xlu0 %v5632_v1  ;;  %v2658_v26 = vpop.f32.mrf.mxu0  ;;  %v2836_v48 = vpop.f32.mrf.mxu1  ;;  %v3103_v43 = vsel %vm4879_vm11, %v3071_v49, 0.0  ;;  %vm6368_vm11 = vmmov %vm6357_vm2 }
 0x47b   : > { %v2943_v37 = vsel %vm6366_vm4, %v2911_v23, %v2912_v63  ;;  %v3041_v47 = vrot.slane %v2836_v48, 1  ;;  %3215 = vadd.xlane.f32.xlu1 %v5637_v36  ;;  %v3135_v50 = vadd.f32 %v3103_v43, %v3007_v9  ;;  %v3068_v57 = vsel %vm6372_vm6, %v3042_v52, %v3043_v56  ;;  %vm6382_vm4 = vmmov %vm6352_vm0 }
 0x47c   : > { %v2976_v61 = vsel %vm4891_vm12, %v2943_v37, 0.0  ;;  %v2660_v4 = vpop.f32.mrf.mxu0  ;;  %vm6370_vm12 = vmmov %vm6357_vm2 }
 0x47d   : > { %v3008_v0 = vadd.f32 %v2976_v61, %v2658_v26  ;;  %v2913_v12 = vrot.slane %v2660_v4, 7  ;;  %v5651_v45 = vadd.f32 %v5513_v46, %v3135_v50  ;;  %v3070_v23 = vsel %vm6368_vm11, %v3040_v29, %v3041_v47  ;;  %vm6371_vm2 = vmmov %vm6352_vm0 }
 0x47e   : > { %3217 = vadd.xlane.f32.xlu0 %v5648_v6  ;;  %v2662_v58 = vpop.f32.mrf.mxu0  ;;  %v3069_v9 = vsel %vm6370_vm12, %v3041_v47, %v3042_v52  ;;  %vm6383_vm11 = vmmov %vm6352_vm0 }
 0x47f   : > { %v2942_v39 = vsel %vm6369_vm1, %v2912_v63, %v2913_v12  ;;  %3219 = vadd.xlane.f32.xlu1 %v5651_v45  ;;  %v3136_v20 = vadd.f32 %v3070_v23, %v3008_v0  ;;  %vm6384_vm1 = vmmov %vm6372_vm6 }
 0x480   : > { %v3009_v53 = vadd.f32 %v2942_v39, %v2662_v58  ;;  %v2666_v38 = vpop.f32.mrf.mxu0  ;;  %vm6386_vm12 = vmmov %vm6352_vm0 }
 0x481   : > { %v2914_v40 = vrot.slane %v2666_v38, 7  ;;  %v5663_v49 = vadd.f32 %v5513_v46, %v3136_v20 }
 0x482   : > { %v3137_v26 = vadd.f32 %v3069_v9, %v3009_v53  ;;  %v2668_v29 = vpop.f32.mrf.mxu0 }
 0x483   : > { %v2941_v3 = vsel %vm6371_vm2, %v2913_v12, %v2914_v40  ;;  %3221 = vadd.xlane.f32.xlu0 %v5663_v49  ;;  %vm6387_vm2 = vmmov %vm6352_vm0 }
 0x484   : > { %v3010_v63 = vadd.f32 %v2941_v3, %v2668_v29  ;;  %v5669_v48 = vadd.f32 %v5513_v46, %v3137_v26  ;;  %v2670_v37 = vpop.f32.mrf.mxu0 }
 0x485   : > { %v2915_v4 = vrot.slane %v2670_v37, 7 }
 0x486   : > { %v3138_v30 = vadd.f32 %v3068_v57, %v3010_v63  ;;  %3223 = vadd.xlane.f32.xlu1 %v5669_v48  ;;  %v2672_v47 = vpop.f32.mrf.mxu0 }
 0x487   : > { %v2940_v52 = vsel %vm6352_vm0, %v2914_v40, %v2915_v4 }
 0x488   : > { %v5675_v43 = vadd.f32 %v5513_v46, %v3138_v30  ;;  %v3011_v3 = vadd.f32 %v2940_v52, %v2672_v47 }
 0x48a   : > { %3225 = vadd.xlane.f32.xlu0 %v5675_v43 }
 0x4cb   : > { %v2676_v50 = vpop.f32.mrf.mxu0 }
 0x4cc   : > { %v2916_v12 = vrot.slane %v2676_v50, 7 }
 0x4cd   : > { %v2678_v8 = vpop.f32.mrf.mxu0 }
 0x4ce   : > { %v2939_v53 = vsel %vm6373_vm10, %v2915_v4, %v2916_v12  ;;  %vm6392_vm10 = vmmov %vm6352_vm0 }
 0x4cf   : > { %v2680_v61 = vpop.f32.mrf.mxu0  ;;  %v2980_v30 = vsel %vm4941_vm14, %v2939_v53, 0.0  ;;  %vm6379_vm14 = vmmov %vm6372_vm6 }
 0x4d0   : > { %v2917_v39 = vrot.slane %v2680_v61, 7  ;;  %v3012_v53 = vadd.f32 %v2980_v30, %v2678_v8 }
 0x4d1   : > { %v2682_v0 = vpop.f32.mrf.mxu0 }
 0x4d2   : > { %v2938_v37 = vsel %vm6375_vm9, %v2916_v12, %v2917_v39 }
 0x4d3   : > { %v2686_v58 = vpop.f32.mrf.mxu0  ;;  %v4054_v23 = vpop.f32.mrf.mxu1  ;;  %v3013_v34 = vadd.f32 %v2938_v37, %v2682_v0 }
 0x4d4   : > { %v2918_v9 = vrot.slane %v2686_v58, 7  ;;  %v3046_v58 = vrot.slane %v4054_v23, 1 }
 0x4d5   : > { %v2688_v20 = vpop.f32.mrf.mxu0  ;;  %v2849_v38 = vpop.f32.mrf.mxu1 }
 0x4d6   : > { %v3044_v26 = vrot.slane %v2849_v38, 1  ;;  %v2937_v47 = vsel %vm6378_vm5, %v2917_v39, %v2918_v9  ;;  %vm6396_vm5 = vmmov %vm6384_vm1 }
 0x4d7   : > { %v2690_v29 = vpop.f32.mrf.mxu0  ;;  %v4055_v63 = vpop.f32.mrf.mxu1 }
 0x4d8   : > { %v3067_v40 = vsel %vm6376_vm8, %v3043_v56, %v3044_v26  ;;  %v3047_v50 = vrot.slane %v4055_v63, 1  ;;  %v3014_v63 = vadd.f32 %v2937_v47, %v2688_v20  ;;  %vm6395_vm8 = vmmov %vm6352_vm0 }
 0x4d9   : > { %v2692_v61 = vpop.f32.mrf.mxu0  ;;  %v2852_v31 = vpop.f32.mrf.mxu1  ;;  %v3107_v4 = vsel %vm4929_vm13, %v3067_v40, 0.0  ;;  %vm6381_vm13 = vmmov %vm6372_vm6 }
 0x4da   : > { %v3045_v52 = vrot.slane %v2852_v31, 1  ;;  %v3139_v57 = vadd.f32 %v3107_v4, %v3011_v3  ;;  %v3064_v23 = vsel %vm6381_vm13, %v3046_v58, %v3047_v50  ;;  %vm6389_vm6 = vmmov %vm6384_vm1  ;;  %vm6400_vm13 = vnez %v6303_v33 }
 0x4db   : > { %v2696_v38 = vpop.f32.mrf.mxu0  ;;  %v3142_v30 = vadd.f32 %v3064_v23, %v3014_v63 }
 0x4dc   : > { %v5693_v12 = vadd.f32 %v5513_v46, %v3139_v57  ;;  %v3066_v56 = vsel %vm6379_vm14, %v3044_v26, %v3045_v52  ;;  %v3065_v28 = vsel %vm6380_vm7, %v3045_v52, %v3046_v58  ;;  %v2919_v26 = vrot.slane %v2690_v29, 7  ;;  %vm6399_vm7 = vmmov %vm6352_vm0 }
 0x4dd   : > { %v2698_v25 = vpop.f32.mrf.mxu0  ;;  %v3140_v39 = vadd.f32 %v3066_v56, %v3012_v53  ;;  %v3141_v31 = vadd.f32 %v3065_v28, %v3013_v34  ;;  %v2920_v40 = vrot.slane %v2696_v38, 7  ;;  %v5711_v34 = vadd.f32 %v5513_v46, %v3142_v30 }
 0x4de   : > { %3227 = vadd.xlane.f32.xlu1 %v5693_v12  ;;  %v2936_v58 = vsel %vm6382_vm4, %v2918_v9, %v2919_v26  ;;  %vm6397_vm14 = vnez %v6327_v24  ;;  %vm6401_vm4 = vmmov %vm6352_vm0 }
 0x4df   : > { %v2700_v8 = vpop.f32.mrf.mxu0  ;;  %v5703_v0 = vadd.f32 %v5513_v46, %v3140_v39  ;;  %v5706_v3 = vadd.f32 %v5513_v46, %v3141_v31  ;;  %v2935_v29 = vsel %vm6383_vm11, %v2919_v26, %v2920_v40  ;;  %v3015_v28 = vadd.f32 %v2936_v58, %v2692_v61  ;;  %vm6403_vm11 = vmmov %vm6384_vm1 }
 0x4e0   : > { %v2921_v47 = vrot.slane %v2700_v8, 7  ;;  %v2984_v31 = vsel %vm4980_vm15, %v2935_v29, 0.0  ;;  %vm6388_vm15 = vmmov %vm6384_vm1 }
 0x4e1   : > { %v2702_v37 = vpop.f32.mrf.mxu0  ;;  %3229 = vadd.xlane.f32.xlu0 %v5703_v0  ;;  %v3016_v19 = vadd.f32 %v2984_v31, %v2698_v25 }
 0x4e2   : > { %3231 = vadd.xlane.f32.xlu1 %v5706_v3  ;;  %v2934_v9 = vsel %vm6386_vm12, %v2920_v40, %v2921_v47  ;;  %vm6404_vm12 = vmmov %vm6384_vm1 }
 0x4e3   : > { %v2706_v20 = vpop.f32.mrf.mxu0  ;;  %v4058_v4 = vpop.f32.mrf.mxu1  ;;  %v3017_v51 = vadd.f32 %v2934_v9, %v2702_v37 }
 0x4e4   : > { %v2922_v53 = vrot.slane %v2706_v20, 7  ;;  %v3050_v20 = vrot.slane %v4058_v4, 1 }
 0x4e5   : > { %v2708_v52 = vpop.f32.mrf.mxu0  ;;  %v2865_v57 = vpop.f32.mrf.mxu1  ;;  %3233 = vadd.xlane.f32.xlu0 %v5711_v34 }
 0x4e6   : > { %v3048_v38 = vrot.slane %v2865_v57, 1  ;;  %v2933_v61 = vsel %vm6387_vm2, %v2921_v47, %v2922_v53  ;;  %vm6405_vm2 = vmmov %vm6352_vm0 }
 0x4e7   : > { %v2710_v56 = vpop.f32.mrf.mxu0  ;;  %v4059_v63 = vpop.f32.mrf.mxu1 }
 0x4e8   : > { %v3063_v23 = vsel %vm6384_vm1, %v3047_v50, %v3048_v38  ;;  %v3051_v8 = vrot.slane %v4059_v63, 1  ;;  %v2923_v9 = vrot.slane %v2710_v56, 7 }
 0x4e9   : > { %v2712_v30 = vpop.f32.mrf.mxu0  ;;  %v3111_v26 = vsel %vm5133_vm3, %v3063_v23, 0.0  ;;  %v2868_v18 = vpop.f32.mrf.mxu1  ;;  %vm6390_vm3 = vmmov %vm6384_vm1 }
 0x4ea   : > { %v3143_v57 = vadd.f32 %v3111_v26, %v3015_v28  ;;  %v3049_v58 = vrot.slane %v2868_v18, 1  ;;  %v3060_v4 = vsel %vm6390_vm3, %v3050_v20, %v3051_v8  ;;  %v3018_v28 = vadd.f32 %v2933_v61, %v2708_v52 }
 0x4eb   : > { %v2716_v50 = vpop.f32.mrf.mxu0  ;;  %v2932_v56 = vsel %vm6392_vm10, %v2922_v53, %v2923_v9 }
 0x4ec   : > { %v5729_v29 = vadd.f32 %v5513_v46, %v3143_v57  ;;  %v3062_v40 = vsel %vm6388_vm15, %v3048_v38, %v3049_v58  ;;  %v3061_v44 = vsel %vm6389_vm6, %v3049_v58, %v3050_v20  ;;  %v2924_v37 = vrot.slane %v2716_v50, 7  ;;  %v3192_v58 = vpop.xlane.xlu1 %3191  ;;  %vm6407_vm6 = vmmov %vm6384_vm1 }
 0x4ed   : > { %v2718_v39 = vpop.f32.mrf.mxu0  ;;  %v3144_v18 = vadd.f32 %v3062_v40, %v3016_v19  ;;  %v3145_v47 = vadd.f32 %v3061_v44, %v3017_v51  ;;  %v3146_v38 = vadd.f32 %v3060_v4, %v3018_v28  ;;  %v6393_v40 = vld [vmem:[#allocation24_spill] sm:$0xff]  ;;  %v3019_v53 = vadd.f32 %v2932_v56, %v2712_v30 }
 0x4ee   : > { %3235 = vadd.xlane.f32.xlu1 %v5729_v29  ;;  %v2931_v51 = vsel %vm6352_vm0, %v2923_v9, %v2924_v37  ;;  %vm6394_vm9 = vnez %v6393_v40  ;;  %v6402_v30 = vrot.slane %v5498_v41, 1  ;;  %vm6406_vm15 = vnez %v6305_v22 }
 0x4ef   : > { %v2720_v25 = vpop.f32.mrf.mxu0  ;;  %v5739_v23 = vadd.f32 %v5513_v46, %v3144_v18  ;;  %v5742_v63 = vadd.f32 %v5513_v46, %v3145_v47  ;;  %v5749_v57 = vadd.f32 %v5513_v46, %v3146_v38  ;;  %v2988_v44 = vsel %vm6394_vm9, %v2931_v51, 0.0  ;;  %v3194_v18 = vpop.xlane.xlu0 %3193 }
 0x4f0   : > { %v2925_v19 = vrot.slane %v2720_v25, 7  ;;  %v6398_v51 = vrot.slane %v5494_v60, 7  ;;  %v3196_v27 = vpop.xlane.xlu1 %3195 }
 0x4f1   : > { %v2722_v31 = vpop.f32.mrf.mxu0  ;;  %3237 = vadd.xlane.f32.xlu0 %v5739_v23  ;;  %6391 = vst [vmem:[#allocation13_spill] sm:$0xff] %v5749_v57 }
 0x4f2   : > { %3239 = vadd.xlane.f32.xlu1 %v5742_v63  ;;  %v2930_v47 = vsel %vm6395_vm8, %v2924_v37, %v2925_v19  ;;  %v3020_v37 = vadd.f32 %v2988_v44, %v2718_v39 }
 0x4f3   : > { %v2726_v52 = vpop.f32.mrf.mxu0  ;;  %v4062_v26 = vpop.f32.mrf.mxu1 }
 0x4f4   : > { %v2926_v10 = vrot.slane %v2726_v52, 7  ;;  %v3054_v9 = vrot.slane %v4062_v26, 1  ;;  %v3198_v24 = vpop.xlane.xlu0 %3197 }
 0x4f5   : > { %v2728_v20 = vpop.f32.mrf.mxu0  ;;  %v2881_v61 = vpop.f32.mrf.mxu1  ;;  %3241 = vadd.xlane.f32.xlu0 %v5749_v57  ;;  %v3021_v57 = vadd.f32 %v2930_v47, %v2722_v31 }
 0x4f6   : > { %v3052_v50 = vrot.slane %v2881_v61, 1  ;;  %v2929_v44 = vsel %vm6405_vm2, %v2925_v19, %v2926_v10 }
 0x4f7   : > { %v2730_v4 = vpop.f32.mrf.mxu0  ;;  %v4063_v28 = vpop.f32.mrf.mxu1  ;;  %v3022_v19 = vadd.f32 %v2929_v44, %v2728_v20 }
 0x4f8   : > { %v3059_v25 = vsel %vm6396_vm5, %v3051_v8, %v3052_v50  ;;  %v2927_v38 = vrot.slane %v2730_v4, 7  ;;  %v3055_v54 = vrot.slane %v4063_v28, 1  ;;  %v3202_v22 = vpop.xlane.xlu0 %3201 }
 0x4f9   : > { %v2884_v21 = vpop.f32.mrf.mxu1  ;;  %v3115_v61 = vsel %vm6397_vm14, %v3059_v25, 0.0  ;;  %v2732_v4 = vpop.f32.mrf.mxu0 }
 0x4fa   : > { %v2959_v40 = vsel %vm6399_vm7, %v2927_v38, %v6398_v51  ;;  %v3053_v17 = vrot.slane %v2884_v21, 1  ;;  %v2928_v52 = vsel %vm6401_vm4, %v2926_v10, %v2927_v38  ;;  %v3087_v60 = vsel %vm6403_vm11, %v3055_v54, %v6402_v30 }
 0x4fb   : > { %v2960_v8 = vsel %vm6400_vm13, %v2959_v40, 0.0  ;;  %v3147_v39 = vadd.f32 %v3115_v61, %v3019_v53  ;;  %v3023_v28 = vadd.f32 %v2928_v52, %v2732_v4  ;;  %v3119_v47 = vsel %vm6406_vm15, %v3087_v60, 0.0 }
 0x4fc   : > { %v3057_v26 = vsel %vm6384_vm1, %v3053_v17, %v3054_v9  ;;  %v3058_v21 = vsel %vm6404_vm12, %v3052_v50, %v3053_v17  ;;  %v2992_v56 = vadd.f32 %v2960_v8, %v5496_v14  ;;  %v3056_v10 = vsel %vm6407_vm6, %v3054_v9, %v3055_v54  ;;  %v3200_v14 = vpop.xlane.xlu1 %3199  ;;  %v3206_v20 = vpop.xlane.xlu0 %3205 }
 0x4fd   : > { %v3148_v31 = vadd.f32 %v3058_v21, %v3020_v37  ;;  %v3149_v33 = vadd.f32 %v3057_v26, %v3021_v57  ;;  %v5782_v41 = vadd.f32 %v5513_v46, %v3147_v39  ;;  %v3254_v50 = vmul.f32 0.0078125, %v3192_v58 }
 0x4fe   : > { %v3120_v17 = vadd.f32 %v5521_v16, %v2992_v56  ;;  %v3151_v38 = vadd.f32 %v3119_v47, %v3023_v28  ;;  %v3255_v61 = vmul.f32 0.0078125, %v3194_v18  ;;  %v3150_v16 = vadd.f32 %v3056_v10, %v3022_v19 }
 0x4ff   : > { %v5787_v25 = vadd.f32 %v5513_v46, %v3148_v31  ;;  %3243 = vadd.xlane.f32.xlu1 %v5782_v41  ;;  %v5792_v57 = vadd.f32 %v5513_v46, %v3149_v33  ;;  %v5803_v2 = vsub.f32 %v5528_v32, %v3254_v50  ;;  %v3256_v54 = vmul.f32 0.0078125, %v3196_v27 }
 0x500   : > { %v5798_v53 = vadd.f32 %v5513_v46, %v3120_v17  ;;  %v3204_v51 = vpop.xlane.xlu1 %3203  ;;  %v5806_v9 = vadd.f32 %v5513_v46, %v3151_v38  ;;  %v5809_v58 = vsub.f32 %v5524_v62, %v3255_v61  ;;  %v3257_v18 = vmul.f32 0.0078125, %v3198_v24  ;;  %v3210_v52 = vpop.xlane.xlu0 %3209 }
 0x501   : > { %3245 = vadd.xlane.f32.xlu0 %v5787_v25  ;;  %v5812_v40 = vadd.f32 %v5513_v46, %v3150_v16  ;;  %v5817_v37 = vsub.f32 %v5546_v11, %v3256_v54  ;;  %v3258_v32 = vmul.f32 0.0078125, %v3200_v14  ;;  %v3318_v27 = vmul.f32 %v5803_v2, %v5803_v2 }
 0x502   : > { %v5822_v8 = vsub.f32 %v5556_v35, %v3257_v18  ;;  %v3259_v62 = vmul.f32 0.0078125, %v3202_v22  ;;  %v3319_v46 = vmul.f32 %v5809_v58, %v5809_v58  ;;  %v3260_v11 = vmul.f32 0.0078125, %v3204_v51 }
 0x503   : > { %3247 = vadd.xlane.f32.xlu1 %v5792_v57  ;;  %v5827_v24 = vsub.f32 %v5559_v5, %v3258_v32  ;;  %v3320_v30 = vmul.f32 %v5817_v37, %v5817_v37  ;;  %v3261_v35 = vmul.f32 0.0078125, %v3206_v20 }
 0x504   : > { %v3208_v4 = vpop.xlane.xlu1 %3207  ;;  %v5832_v60 = vsub.f32 %v5566_v13, %v3259_v62  ;;  %v3321_v21 = vmul.f32 %v5822_v8, %v5822_v8  ;;  %v3214_v39 = vpop.xlane.xlu0 %3213  ;;  %v5837_v31 = vsub.f32 %v5582_v42, %v3260_v11  ;;  %v3263_v13 = vmul.f32 0.0078125, %v3210_v52 }
 0x505   : > { %3189 = vadd.xlane.f32.xlu0 %v5798_v53  ;;  %v3262_v5 = vmul.f32 0.0078125, %v3208_v4  ;;  %v3322_v33 = vmul.f32 %v5827_v24, %v5827_v24  ;;  %v5842_v56 = vsub.f32 %v5592_v59, %v3261_v35  ;;  %v3265_v59 = vmul.f32 0.0078125, %v3214_v39 }
 0x506   : > { %v3323_v44 = vmul.f32 %v5832_v60, %v5832_v60  ;;  %v3324_v10 = vmul.f32 %v5837_v31, %v5837_v31  ;;  %v5852_v14 = vsub.f32 %v5604_v55, %v3263_v13 }
 0x507   : > { %3251 = vadd.xlane.f32.xlu1 %v5806_v9  ;;  %v5847_v47 = vsub.f32 %v5595_v15, %v3262_v5  ;;  %v3325_v19 = vmul.f32 %v5842_v56, %v5842_v56  ;;  %v5862_v38 = vsub.f32 %v5632_v1, %v3265_v59 }
 0x508   : > { %v3212_v26 = vpop.xlane.xlu1 %3211  ;;  %v3218_v42 = vpop.xlane.xlu0 %3217  ;;  %v3327_v55 = vmul.f32 %v5852_v14, %v5852_v14 }
 0x509   : > { %3249 = vadd.xlane.f32.xlu0 %v5812_v40  ;;  %v3264_v17 = vmul.f32 0.0078125, %v3212_v26  ;;  %v3326_v15 = vmul.f32 %v5847_v47, %v5847_v47  ;;  %v3267_v61 = vmul.f32 0.0078125, %v3218_v42 }
 0x50b   : > { %3351 = vadd.xlane.f32.xlu1 %v3318_v27  ;;  %v5857_v50 = vsub.f32 %v5618_v7, %v3264_v17  ;;  %v5872_v18 = vsub.f32 %v5648_v6, %v3267_v61  ;;  %v3329_v27 = vmul.f32 %v5862_v38, %v5862_v38 }
 0x50c   : > { %v3216_v28 = vpop.xlane.xlu1 %3215  ;;  %v3222_v51 = vpop.xlane.xlu0 %3221 }
 0x50d   : > { %3353 = vadd.xlane.f32.xlu0 %v3319_v46  ;;  %v3266_v22 = vmul.f32 0.0078125, %v3216_v28  ;;  %v3328_v20 = vmul.f32 %v5857_v50, %v5857_v50  ;;  %v3269_v1 = vmul.f32 0.0078125, %v3222_v51  ;;  %v3331_v11 = vmul.f32 %v5872_v18, %v5872_v18 }
 0x50f   : > { %3355 = vadd.xlane.f32.xlu1 %v3320_v30  ;;  %v5867_v54 = vsub.f32 %v5637_v36, %v3266_v22  ;;  %v5882_v52 = vsub.f32 %v5663_v49, %v3269_v1 }
 0x510   : > { %v3220_v16 = vpop.xlane.xlu1 %3219 }
 0x511   : > { %3357 = vadd.xlane.f32.xlu0 %v3321_v21  ;;  %v3268_v7 = vmul.f32 0.0078125, %v3220_v16  ;;  %v3330_v46 = vmul.f32 %v5867_v54, %v5867_v54  ;;  %v3333_v26 = vmul.f32 %v5882_v52, %v5882_v52 }
 0x513   : > { %3359 = vadd.xlane.f32.xlu1 %v3322_v33  ;;  %v3226_v62 = vpop.xlane.xlu0 %3225  ;;  %v5877_v4 = vsub.f32 %v5651_v45, %v3268_v7 }
 0x514   : > { %v3224_v32 = vpop.xlane.xlu1 %3223  ;;  %v3271_v6 = vmul.f32 0.0078125, %v3226_v62 }
 0x515   : > { %3361 = vadd.xlane.f32.xlu0 %v3323_v44  ;;  %v3270_v36 = vmul.f32 0.0078125, %v3224_v32  ;;  %v3332_v45 = vmul.f32 %v5877_v4, %v5877_v4 }
 0x516   : > { %v5892_v35 = vsub.f32 %v5675_v43, %v3271_v6 }
 0x517   : > { %3363 = vadd.xlane.f32.xlu1 %v3324_v10  ;;  %v5887_v30 = vsub.f32 %v5669_v48, %v3270_v36  ;;  %v6408_v36 = vld [vmem:[#allocation13_spill] sm:$0xff] }
 0x518   : > { %v3335_v21 = vmul.f32 %v5892_v35, %v5892_v35 }
 0x519   : > { %3365 = vadd.xlane.f32.xlu0 %v3325_v19  ;;  %v3334_v49 = vmul.f32 %v5887_v30, %v5887_v30 }
 0x51b   : > { %3367 = vadd.xlane.f32.xlu1 %v3326_v15 }
 0x51d   : > { %3369 = vadd.xlane.f32.xlu0 %v3327_v55 }
 0x51f   : > { %3371 = vadd.xlane.f32.xlu1 %v3328_v20 }
 0x521   : > { %3373 = vadd.xlane.f32.xlu0 %v3329_v27 }
 0x523   : > { %3375 = vadd.xlane.f32.xlu1 %v3330_v46 }
 0x525   : > { %3377 = vadd.xlane.f32.xlu0 %v3331_v11 }
 0x527   : > { %3379 = vadd.xlane.f32.xlu1 %v3332_v45 }
 0x529   : > { %3381 = vadd.xlane.f32.xlu0 %v3333_v26 }
 0x52b   : > { %3383 = vadd.xlane.f32.xlu1 %v3334_v49 }
 0x52d   : > { %3385 = vadd.xlane.f32.xlu0 %v3335_v21 }
 0x567   : > { %v3228_v48 = vpop.xlane.xlu1 %3227 }
 0x568   : > { %v3272_v39 = vmul.f32 0.0078125, %v3228_v48 }
 0x56a   : > { %v5901_v5 = vsub.f32 %v5693_v12, %v3272_v39  ;;  %v3230_v43 = vpop.xlane.xlu0 %3229 }
 0x56b   : > { %v3273_v33 = vmul.f32 0.0078125, %v3230_v43  ;;  %v3232_v13 = vpop.xlane.xlu1 %3231 }
 0x56c   : > { %v3274_v44 = vmul.f32 0.0078125, %v3232_v13  ;;  %v3336_v28 = vmul.f32 %v5901_v5, %v5901_v5 }
 0x56d   : > { %v5906_v17 = vsub.f32 %v5703_v0, %v3273_v33 }
 0x56e   : > { %v5909_v42 = vsub.f32 %v5706_v3, %v3274_v44  ;;  %v3234_v10 = vpop.xlane.xlu0 %3233  ;;  %3387 = vadd.xlane.f32.xlu1 %v3336_v28 }
 0x56f   : > { %v3275_v59 = vmul.f32 0.0078125, %v3234_v10  ;;  %v3337_v12 = vmul.f32 %v5906_v17, %v5906_v17 }
 0x570   : > { %v3338_v19 = vmul.f32 %v5909_v42, %v5909_v42 }
 0x571   : > { %v5916_v22 = vsub.f32 %v5711_v34, %v3275_v59  ;;  %3389 = vadd.xlane.f32.xlu0 %v3337_v12 }
 0x572   : > { %3391 = vadd.xlane.f32.xlu1 %v3338_v19 }
 0x573   : > { %v3339_v0 = vmul.f32 %v5916_v22, %v5916_v22 }
 0x575   : > { %3393 = vadd.xlane.f32.xlu0 %v3339_v0 }
 0x577   : > { %v3236_v3 = vpop.xlane.xlu1 %3235 }
 0x578   : > { %v3276_v15 = vmul.f32 0.0078125, %v3236_v3 }
 0x57a   : > { %v5921_v61 = vsub.f32 %v5729_v29, %v3276_v15  ;;  %v3238_v16 = vpop.xlane.xlu0 %3237 }
 0x57b   : > { %v3240_v55 = vpop.xlane.xlu1 %3239  ;;  %v3277_v51 = vmul.f32 0.0078125, %v3238_v16 }
 0x57c   : > { %v3278_v7 = vmul.f32 0.0078125, %v3240_v55  ;;  %v3340_v20 = vmul.f32 %v5921_v61, %v5921_v61 }
 0x57d   : > { %v5926_v34 = vsub.f32 %v5739_v23, %v3277_v51 }
 0x57e   : > { %v5929_v1 = vsub.f32 %v5742_v63, %v3278_v7  ;;  %3395 = vadd.xlane.f32.xlu1 %v3340_v20  ;;  %v3242_v32 = vpop.xlane.xlu0 %3241 }
 0x57f   : > { %v3279_v27 = vmul.f32 0.0078125, %v3242_v32  ;;  %v3341_v29 = vmul.f32 %v5926_v34, %v5926_v34 }
 0x580   : > { %v3342_v62 = vmul.f32 %v5929_v1, %v5929_v1 }
 0x581   : > { %v5936_v46 = vsub.f32 %v6408_v36, %v3279_v27  ;;  %3397 = vadd.xlane.f32.xlu0 %v3341_v29 }
 0x582   : > { %3399 = vadd.xlane.f32.xlu1 %v3342_v62 }
 0x583   : > { %v3343_v23 = vmul.f32 %v5936_v46, %v5936_v46 }
 0x585   : > { %3401 = vadd.xlane.f32.xlu0 %v3343_v23 }
 0x588   : > { %v3244_v63 = vpop.xlane.xlu1 %3243 }
 0x589   : > { %v3280_v6 = vmul.f32 0.0078125, %v3244_v63 }
 0x58a   : > { %v3246_v11 = vpop.xlane.xlu0 %3245 }
 0x58b   : > { %v3281_v45 = vmul.f32 0.0078125, %v3246_v11  ;;  %v5941_v26 = vsub.f32 %v5782_v41, %v3280_v6 }
 0x58c   : > { %v3248_v21 = vpop.xlane.xlu1 %3247 }
 0x58d   : > { %v5944_v49 = vsub.f32 %v5787_v25, %v3281_v45  ;;  %v3282_v48 = vmul.f32 0.0078125, %v3248_v21  ;;  %v3344_v43 = vmul.f32 %v5941_v26, %v5941_v26 }
 0x58e   : > { %v3190_v39 = vpop.xlane.xlu0 %3189 }
 0x58f   : > { %v3253_v33 = vmul.f32 0.0078125, %v3190_v39  ;;  %v3345_v13 = vmul.f32 %v5944_v49, %v5944_v49  ;;  %v5951_v44 = vsub.f32 %v5792_v57, %v3282_v48  ;;  %3403 = vadd.xlane.f32.xlu1 %v3344_v43 }
 0x590   : > { %v3252_v28 = vpop.xlane.xlu1 %3251 }
 0x591   : > { %v5954_v41 = vsub.f32 %v5798_v53, %v3253_v33  ;;  %3405 = vadd.xlane.f32.xlu0 %v3345_v13  ;;  %v3284_v25 = vmul.f32 0.0078125, %v3252_v28  ;;  %v3346_v59 = vmul.f32 %v5951_v44, %v5951_v44 }
 0x592   : > { %v3250_v10 = vpop.xlane.xlu0 %3249 }
 0x593   : > { %v3283_v12 = vmul.f32 0.0078125, %v3250_v10  ;;  %v3317_v19 = vmul.f32 %v5954_v41, %v5954_v41  ;;  %v5961_v0 = vsub.f32 %v5806_v9, %v3284_v25  ;;  %3407 = vadd.xlane.f32.xlu1 %v3346_v59 }
 0x594   : > { %v3352_v53 = vpop.xlane.xlu1 %3351 }
 0x595   : > { %v5964_v57 = vsub.f32 %v5812_v40, %v3283_v12  ;;  %3349 = vadd.xlane.f32.xlu0 %v3317_v19  ;;  %v3414_v3 = vmul.f32 0.0078125, %v3352_v53  ;;  %v3348_v16 = vmul.f32 %v5961_v0, %v5961_v0  ;;  %v5974_v12 = vld [vmem:[%s6201_s5 + $0x1] ss:$0 sm:$0xff] }
 0x596   : > { %v3354_v15 = vpop.xlane.xlu0 %3353 }
 0x597   : > { %v3415_v55 = vmul.f32 0.0078125, %v3354_v15  ;;  %v3347_v51 = vmul.f32 %v5964_v57, %v5964_v57  ;;  %v3446_v7 = vadd.f32 1e-05, %v3414_v3  ;;  %3411 = vadd.xlane.f32.xlu1 %v3348_v16  ;;  %v5980_v16 = vld [vmem:[%s6202_s6 + $0x1] ss:$0 sm:$0xff] }
 0x598   : > { %v3356_v9 = vpop.xlane.xlu1 %3355 }
 0x599   : > { %v3447_v20 = vadd.f32 1e-05, %v3415_v55  ;;  %3409 = vadd.xlane.f32.xlu0 %v3347_v51  ;;  %4266 = vrsqrt.f32 %v3446_v7  ;;  %v3416_v32 = vmul.f32 0.0078125, %v3356_v9 }
 0x59a   : > { %v3358_v40 = vpop.xlane.xlu0 %3357 }
 0x59b   : > { %4268 = vrsqrt.f32 %v3447_v20  ;;  %v3417_v27 = vmul.f32 0.0078125, %v3358_v40  ;;  %v3448_v29 = vadd.f32 1e-05, %v3416_v32 }
 0x59c   : > { %v3360_v36 = vpop.xlane.xlu1 %3359 }
 0x59d   : > { %v3449_v62 = vadd.f32 1e-05, %v3417_v27  ;;  %4270 = vrsqrt.f32 %v3448_v29  ;;  %v3418_v23 = vmul.f32 0.0078125, %v3360_v36 }
 0x59e   : > { %v3362_v63 = vpop.xlane.xlu0 %3361 }
 0x59f   : > { %4272 = vrsqrt.f32 %v3449_v62  ;;  %v3419_v6 = vmul.f32 0.0078125, %v3362_v63  ;;  %v3450_v11 = vadd.f32 1e-05, %v3418_v23 }
 0x5a0   : > { %v3364_v21 = vpop.xlane.xlu1 %3363 }
 0x5a1   : > { %v3451_v45 = vadd.f32 1e-05, %v3419_v6  ;;  %4274 = vrsqrt.f32 %v3450_v11  ;;  %v3420_v48 = vmul.f32 0.0078125, %v3364_v21 }
 0x5a2   : > { %v3366_v39 = vpop.xlane.xlu0 %3365 }
 0x5a3   : > { %4276 = vrsqrt.f32 %v3451_v45  ;;  %v3421_v43 = vmul.f32 0.0078125, %v3366_v39  ;;  %v3452_v33 = vadd.f32 1e-05, %v3420_v48  ;;  %v6409_v45 = vld [vmem:[#allocation26_spill] sm:$0xff] }
 0x5a4   : > { %v3368_v28 = vpop.xlane.xlu1 %3367 }
 0x5a5   : > { %v3453_v13 = vadd.f32 1e-05, %v3421_v43  ;;  %4278 = vrsqrt.f32 %v3452_v33  ;;  %v3422_v25 = vmul.f32 0.0078125, %v3368_v28 }
 0x5a6   : > { %v3370_v10 = vpop.xlane.xlu0 %3369  ;;  %v4267_v59 = vpop.eup %4266 }
 0x5a7   : > { %4280 = vrsqrt.f32 %v3453_v13  ;;  %v3423_v19 = vmul.f32 0.0078125, %v3370_v10  ;;  %v3510_v3 = vmul.f32 %v4267_v59, %v5803_v2  ;;  %v3454_v15 = vadd.f32 1e-05, %v3422_v25  ;;  %v6410_v13 = vld [vmem:[#allocation8_spill] sm:$0xff] }
 0x5a8   : > { %v4269_v53 = vpop.eup %4268  ;;  %v3372_v7 = vpop.xlane.xlu1 %3371 }
 0x5a9   : > { %v3511_v55 = vmul.f32 %v4269_v53, %v5809_v58  ;;  %v3455_v51 = vadd.f32 1e-05, %v3423_v19  ;;  %v3547_v20 = vmul.f32 %v5974_v12, %v3510_v3  ;;  %4282 = vrsqrt.f32 %v3454_v15 }
 0x5aa   : > { %v3424_v9 = vmul.f32 0.0078125, %v3372_v7  ;;  %v3374_v32 = vpop.xlane.xlu0 %3373  ;;  %v4271_v40 = vpop.eup %4270 }
 0x5ab   : > { %v3548_v2 = vmul.f32 %v5974_v12, %v3511_v55  ;;  %4284 = vrsqrt.f32 %v3455_v51  ;;  %v3425_v27 = vmul.f32 0.0078125, %v3374_v32  ;;  %v3584_v62 = vadd.f32 %v5980_v16, %v3547_v20  ;;  %v6411_v51 = vld [vmem:[#allocation9_spill] sm:$0xff] }
 0x5ac   : > { %v4273_v29 = vpop.eup %4272  ;;  %v3512_v36 = vmul.f32 %v4271_v40, %v5817_v37  ;;  %v3456_v58 = vadd.f32 1e-05, %v3424_v9  ;;  %v3376_v11 = vpop.xlane.xlu1 %3375 }
 0x5ad   : > { %v3585_v23 = vadd.f32 %v5980_v16, %v3548_v2  ;;  %v3513_v63 = vmul.f32 %v4273_v29, %v5822_v8  ;;  %v3457_v6 = vadd.f32 1e-05, %v3425_v27  ;;  %v3616_v21 = vadd.f32 %v3584_v62, %v6409_v45  ;;  %v6412_v2 = vld [vmem:[#allocation27_spill] sm:$0xff]  ;;  %v6413_v45 = vld [vmem:[#allocation10_spill] sm:$0xff] }
 0x5ae   : > { %v3549_v48 = vmul.f32 %v5974_v12, %v3512_v36  ;;  %4286 = vrsqrt.f32 %v3456_v58  ;;  %v3426_v39 = vmul.f32 0.0078125, %v3376_v11  ;;  %v3378_v43 = vpop.xlane.xlu0 %3377  ;;  %v4275_v33 = vpop.eup %4274 }
 0x5af   : > { %v3617_v28 = vadd.f32 %v3585_v23, %v6410_v13  ;;  %v3550_v25 = vmul.f32 %v5974_v12, %v3513_v63  ;;  %4288 = vrsqrt.f32 %v3457_v6  ;;  %v3427_v37 = vmul.f32 0.0078125, %v3378_v43  ;;  %3648 = vst [vmem:[%s5995_s16 + $0x8] sm:$0xff] %v3616_v21  ;;  %v6414_v13 = vld [vmem:[#allocation28_spill] sm:$0xff] }
 0x5b0   : > { %v4277_v10 = vpop.eup %4276  ;;  %v3586_v8 = vadd.f32 %v5980_v16, %v3549_v48  ;;  %v3514_v59 = vmul.f32 %v4275_v33, %v5827_v24  ;;  %v3458_v19 = vadd.f32 1e-05, %v3426_v39  ;;  %v3380_v55 = vpop.xlane.xlu1 %3379 }
 0x5b1   : > { %3649 = vst [vmem:[%s5995_s16 + $0x10] sm:$0xff] %v3617_v28  ;;  %v3587_v53 = vadd.f32 %v5980_v16, %v3550_v25  ;;  %v3515_v3 = vmul.f32 %v4277_v10, %v5832_v60  ;;  %v3459_v15 = vadd.f32 1e-05, %v3427_v37  ;;  %v3428_v9 = vmul.f32 0.0078125, %v3380_v55 }
 0x5b2   : > { %v3618_v7 = vadd.f32 %v3586_v8, %v6411_v51  ;;  %v3551_v20 = vmul.f32 %v5974_v12, %v3514_v59  ;;  %4290 = vrsqrt.f32 %v3458_v19  ;;  %v3382_v32 = vpop.xlane.xlu0 %3381  ;;  %v4279_v40 = vpop.eup %4278 }
 0x5b3   : > { %v3619_v24 = vadd.f32 %v3587_v53, %v6412_v2  ;;  %v3552_v27 = vmul.f32 %v5974_v12, %v3515_v3  ;;  %4292 = vrsqrt.f32 %v3459_v15  ;;  %v3429_v29 = vmul.f32 0.0078125, %v3382_v32  ;;  %v6415_v3 = vld [vmem:[#allocation11_spill] sm:$0xff] }
 0x5b4   : > { %v4281_v62 = vpop.eup %4280  ;;  %3650 = vst [vmem:[%s5995_s16 + $0x18] sm:$0xff] %v3618_v7  ;;  %v3588_v60 = vadd.f32 %v5980_v16, %v3551_v20  ;;  %v3516_v36 = vmul.f32 %v4279_v40, %v5837_v31  ;;  %v3460_v58 = vadd.f32 1e-05, %v3428_v9  ;;  %v3384_v11 = vpop.xlane.xlu1 %3383  ;;  %v6416_v7 = vld [vmem:[#allocation29_spill] sm:$0xff] }
 0x5b5   : > { %3651 = vst [vmem:[%s5995_s16 + $0x20] sm:$0xff] %v3619_v24  ;;  %v3589_v23 = vadd.f32 %v5980_v16, %v3552_v27  ;;  %v3517_v63 = vmul.f32 %v4281_v62, %v5842_v56  ;;  %v3461_v6 = vadd.f32 1e-05, %v3429_v29  ;;  %v3430_v39 = vmul.f32 0.0078125, %v3384_v11  ;;  %v6417_v24 = vld [vmem:[#allocation12_spill] sm:$0xff]  ;;  %v6419_v11 = vld [vmem:[#allocation14_spill] sm:$0xff] }
 0x5b6   : > { %v3620_v21 = vadd.f32 %v3588_v60, %v6413_v45  ;;  %v3553_v48 = vmul.f32 %v5974_v12, %v3516_v36  ;;  %4294 = vrsqrt.f32 %v3460_v58  ;;  %v3386_v43 = vpop.xlane.xlu0 %3385  ;;  %v4283_v33 = vpop.eup %4282  ;;  %v6418_v60 = vld [vmem:[#allocation30_spill] sm:$0xff] }
 0x5b7   : > { %v3621_v31 = vadd.f32 %v3589_v23, %v6414_v13  ;;  %v3554_v28 = vmul.f32 %v5974_v12, %v3517_v63  ;;  %4296 = vrsqrt.f32 %v3461_v6  ;;  %v3431_v25 = vmul.f32 0.0078125, %v3386_v43 }
 0x5b8   : > { %v4285_v37 = vpop.eup %4284  ;;  %3652 = vst [vmem:[%s5995_s16 + $0x28] sm:$0xff] %v3620_v21  ;;  %v3590_v56 = vadd.f32 %v5980_v16, %v3553_v48  ;;  %v3518_v10 = vmul.f32 %v4283_v33, %v5847_v47  ;;  %v3462_v8 = vadd.f32 1e-05, %v3430_v39  ;;  %v6420_v39 = vld [vmem:[#allocation31_spill] sm:$0xff] }
 0x5b9   : > { %3653 = vst [vmem:[%s5995_s16 + $0x30] sm:$0xff] %v3621_v31  ;;  %v3591_v59 = vadd.f32 %v5980_v16, %v3554_v28  ;;  %v3519_v19 = vmul.f32 %v4285_v37, %v5852_v14  ;;  %v3463_v53 = vadd.f32 1e-05, %v3431_v25  ;;  %v6421_v25 = vld [vmem:[#allocation15_spill] sm:$0xff] }
 0x5ba   : > { %v3622_v15 = vadd.f32 %v3590_v56, %v6415_v3  ;;  %v3555_v55 = vmul.f32 %v5974_v12, %v3518_v10  ;;  %4298 = vrsqrt.f32 %v3462_v8  ;;  %v6422_v8 = vld [vmem:[#allocation32_spill] sm:$0xff] }
 0x5bb   : > { %v4287_v51 = vpop.eup %4286  ;;  %v3623_v20 = vadd.f32 %v3591_v59, %v6416_v7  ;;  %v3556_v9 = vmul.f32 %v5974_v12, %v3519_v19  ;;  %4300 = vrsqrt.f32 %v3463_v53 }
 0x5bc   : > { %v4289_v47 = vpop.eup %4288  ;;  %3654 = vst [vmem:[%s5995_s16 + $0x38] sm:$0xff] %v3622_v15  ;;  %v3592_v32 = vadd.f32 %v5980_v16, %v3555_v55  ;;  %v3520_v14 = vmul.f32 %v4287_v51, %v5857_v50  ;;  %v6423_v55 = vld [vmem:[#allocation18_spill] sm:$0xff] }
 0x5bd   : > { %3655 = vst [vmem:[%s5995_s16 + $0x40] sm:$0xff] %v3623_v20  ;;  %v3593_v40 = vadd.f32 %v5980_v16, %v3556_v9  ;;  %v3521_v2 = vmul.f32 %v4289_v47, %v5862_v38  ;;  %v6424_v20 = vld [vmem:[#allocation33_spill] sm:$0xff] }
 0x5be   : > { %v3624_v27 = vadd.f32 %v3592_v32, %v6417_v24  ;;  %v3557_v29 = vmul.f32 %v5974_v12, %v3520_v14 }
 0x5bf   : > { %v4291_v62 = vpop.eup %4290  ;;  %v3625_v36 = vadd.f32 %v3593_v40, %v6418_v60  ;;  %v3558_v58 = vmul.f32 %v5974_v12, %v3521_v2  ;;  %v6426_v2 = vld [vmem:[#allocation34_spill] sm:$0xff] }
 0x5c0   : > { %v4293_v23 = vpop.eup %4292  ;;  %3656 = vst [vmem:[%s5995_s16 + $0x48] sm:$0xff] %v3624_v27  ;;  %v3594_v50 = vadd.f32 %v5980_v16, %v3557_v29  ;;  %v3522_v63 = vmul.f32 %v4291_v62, %v5867_v54 }
 0x5c1   : > { %3657 = vst [vmem:[%s5995_s16 + $0x50] sm:$0xff] %v3625_v36  ;;  %v3595_v38 = vadd.f32 %v5980_v16, %v3558_v58  ;;  %v3523_v6 = vmul.f32 %v4293_v23, %v5872_v18 }
 0x5c2   : > { %v3626_v45 = vadd.f32 %v3594_v50, %v6419_v11  ;;  %v3559_v21 = vmul.f32 %v5974_v12, %v3522_v63 }
 0x5c3   : > { %v4295_v48 = vpop.eup %4294  ;;  %v3627_v43 = vadd.f32 %v3595_v38, %v6420_v39  ;;  %v3560_v33 = vmul.f32 %v5974_v12, %v3523_v6 }
 0x5c4   : > { %v4297_v13 = vpop.eup %4296  ;;  %3658 = vst [vmem:[%s5995_s16 + $0x58] sm:$0xff] %v3626_v45  ;;  %v3596_v54 = vadd.f32 %v5980_v16, %v3559_v21  ;;  %v3524_v31 = vmul.f32 %v4295_v48, %v5877_v4 }
 0x5c5   : > { %3659 = vst [vmem:[%s5995_s16 + $0x60] sm:$0xff] %v3627_v43  ;;  %v3597_v18 = vadd.f32 %v5980_v16, %v3560_v33  ;;  %v3525_v28 = vmul.f32 %v4297_v13, %v5882_v52 }
 0x5c6   : > { %v3628_v37 = vadd.f32 %v3596_v54, %v6421_v25  ;;  %v3561_v56 = vmul.f32 %v5974_v12, %v3524_v31 }
 0x5c7   : > { %v4299_v10 = vpop.eup %4298  ;;  %v3629_v59 = vadd.f32 %v3597_v18, %v6422_v8  ;;  %v3562_v19 = vmul.f32 %v5974_v12, %v3525_v28 }
 0x5c8   : > { %v4301_v53 = vpop.eup %4300  ;;  %3660 = vst [vmem:[%s5995_s16 + $0x68] sm:$0xff] %v3628_v37  ;;  %v3598_v4 = vadd.f32 %v5980_v16, %v3561_v56  ;;  %v3526_v3 = vmul.f32 %v4299_v10, %v5887_v30  ;;  %v6425_v30 = vld [vmem:[#allocation19_spill] sm:$0xff] }
 0x5c9   : > { %3661 = vst [vmem:[%s5995_s16 + $0x70] sm:$0xff] %v3629_v59  ;;  %v3599_v52 = vadd.f32 %v5980_v16, %v3562_v19  ;;  %v3527_v15 = vmul.f32 %v4301_v53, %v5892_v35 }
 0x5ca   : > { %v3630_v51 = vadd.f32 %v3598_v4, %v6423_v55  ;;  %v3563_v7 = vmul.f32 %v5974_v12, %v3526_v3  ;;  %v6427_v4 = vld [vmem:[#allocation22_spill] sm:$0xff] }
 0x5cb   : > { %v3631_v9 = vadd.f32 %v3599_v52, %v6424_v20  ;;  %v3564_v47 = vmul.f32 %v5974_v12, %v3527_v15 }
 0x5cc   : > { %3662 = vst [vmem:[%s5995_s16 + $0x78] sm:$0xff] %v3630_v51  ;;  %v3600_v32 = vadd.f32 %v5980_v16, %v3563_v7  ;;  %v6428_v51 = vld [vmem:[#allocation35_spill] sm:$0xff] }
 0x5cd   : > { %3663 = vst [vmem:[%s5995_s16 + $0x80] sm:$0xff] %v3631_v9  ;;  %v3601_v14 = vadd.f32 %v5980_v16, %v3564_v47  ;;  %v6429_v9 = vld [vmem:[#allocation36_spill] sm:$0xff] }
 0x5ce   : > { %v3632_v40 = vadd.f32 %v3600_v32, %v6425_v30 }
 0x5cf   : > { %v3633_v24 = vadd.f32 %v3601_v14, %v6426_v2  ;;  %v6430_v14 = vld [vmem:[#allocation37_spill] sm:$0xff] }
 0x5d0   : > { %3664 = vst [vmem:[%s5995_s16 + $0x88] sm:$0xff] %v3632_v40 }
 0x5d1   : > { %3665 = vst [vmem:[%s5995_s16 + $0x90] sm:$0xff] %v3633_v24 }
 0x5f7   : > { %v3388_v35 = vpop.xlane.xlu1 %3387 }
 0x5f8   : > { %v3432_v27 = vmul.f32 0.0078125, %v3388_v35 }
 0x5fa   : > { %v3464_v29 = vadd.f32 1e-05, %v3432_v27  ;;  %v3390_v62 = vpop.xlane.xlu0 %3389 }
 0x5fb   : > { %v3433_v60 = vmul.f32 0.0078125, %v3390_v62  ;;  %v3392_v36 = vpop.xlane.xlu1 %3391 }
 0x5fc   : > { %4302 = vrsqrt.f32 %v3464_v29  ;;  %v3434_v58 = vmul.f32 0.0078125, %v3392_v36 }
 0x5fd   : > { %v3465_v23 = vadd.f32 1e-05, %v3433_v60 }
 0x5fe   : > { %v3466_v50 = vadd.f32 1e-05, %v3434_v58  ;;  %v3394_v63 = vpop.xlane.xlu0 %3393 }
 0x5ff   : > { %4304 = vrsqrt.f32 %v3465_v23  ;;  %v3435_v38 = vmul.f32 0.0078125, %v3394_v63 }
 0x600   : > { %4306 = vrsqrt.f32 %v3466_v50 }
 0x601   : > { %v3467_v6 = vadd.f32 1e-05, %v3435_v38 }
 0x603   : > { %4308 = vrsqrt.f32 %v3467_v6 }
 0x607   : > { %v3396_v11 = vpop.xlane.xlu1 %3395 }
 0x608   : > { %v3436_v45 = vmul.f32 0.0078125, %v3396_v11 }
 0x609   : > { %v4303_v21 = vpop.eup %4302 }
 0x60a   : > { %v3468_v48 = vadd.f32 1e-05, %v3436_v45  ;;  %v3528_v39 = vmul.f32 %v4303_v21, %v5901_v5  ;;  %v3398_v43 = vpop.xlane.xlu0 %3397  ;;  %v6431_v45 = vld [vmem:[#allocation38_spill] sm:$0xff] }
 0x60b   : > { %v3400_v33 = vpop.xlane.xlu1 %3399  ;;  %v3437_v13 = vmul.f32 0.0078125, %v3398_v43 }
 0x60c   : > { %4310 = vrsqrt.f32 %v3468_v48  ;;  %v3438_v54 = vmul.f32 0.0078125, %v3400_v33  ;;  %v4305_v31 = vpop.eup %4304  ;;  %v3565_v18 = vmul.f32 %v5974_v12, %v3528_v39 }
 0x60d   : > { %v4307_v28 = vpop.eup %4306  ;;  %v3529_v25 = vmul.f32 %v4305_v31, %v5906_v17  ;;  %v3469_v37 = vadd.f32 1e-05, %v3437_v13 }
 0x60e   : > { %v3470_v56 = vadd.f32 1e-05, %v3438_v54  ;;  %v3602_v10 = vadd.f32 %v5980_v16, %v3565_v18  ;;  %v3530_v8 = vmul.f32 %v4307_v28, %v5909_v42  ;;  %v3402_v59 = vpop.xlane.xlu0 %3401 }
 0x60f   : > { %v3566_v5 = vmul.f32 %v5974_v12, %v3529_v25  ;;  %4312 = vrsqrt.f32 %v3469_v37  ;;  %v3439_v19 = vmul.f32 0.0078125, %v3402_v59  ;;  %v6432_v37 = vld [vmem:[#allocation39_spill] sm:$0xff]  ;;  %v6433_v59 = vld [vmem:[#allocation40_spill] sm:$0xff] }
 0x610   : > { %v4309_v53 = vpop.eup %4308  ;;  %v3634_v3 = vadd.f32 %v3602_v10, %v6427_v4  ;;  %v3567_v52 = vmul.f32 %v5974_v12, %v3530_v8  ;;  %4314 = vrsqrt.f32 %v3470_v56 }
 0x611   : > { %v3603_v17 = vadd.f32 %v5980_v16, %v3566_v5  ;;  %v3531_v15 = vmul.f32 %v4309_v53, %v5916_v22  ;;  %v3471_v55 = vadd.f32 1e-05, %v3439_v19 }
 0x612   : > { %3666 = vst [vmem:[%s5995_s16 + $0x98] sm:$0xff] %v3634_v3  ;;  %v3604_v42 = vadd.f32 %v5980_v16, %v3567_v52 }
 0x613   : > { %v3635_v7 = vadd.f32 %v3603_v17, %v6428_v51  ;;  %v3568_v20 = vmul.f32 %v5974_v12, %v3531_v15  ;;  %4316 = vrsqrt.f32 %v3471_v55 }
 0x614   : > { %v3636_v47 = vadd.f32 %v3604_v42, %v6429_v9 }
 0x615   : > { %3667 = vst [vmem:[%s5995_s16 + $0xa0] sm:$0xff] %v3635_v7  ;;  %v3605_v32 = vadd.f32 %v5980_v16, %v3568_v20 }
 0x616   : > { %3668 = vst [vmem:[%s5995_s16 + $0xa8] sm:$0xff] %v3636_v47 }
 0x617   : > { %v3637_v30 = vadd.f32 %v3605_v32, %v6430_v14  ;;  %v6435_v14 = vld [vmem:[#allocation42_spill] sm:$0xff] }
 0x618   : > { %v3404_v2 = vpop.xlane.xlu1 %3403 }
 0x619   : > { %v4311_v40 = vpop.eup %4310  ;;  %3669 = vst [vmem:[%s5995_s16 + $0xb0] sm:$0xff] %v3637_v30  ;;  %v3440_v24 = vmul.f32 0.0078125, %v3404_v2 }
 0x61a   : > { %v3532_v22 = vmul.f32 %v4311_v40, %v5921_v61  ;;  %v3406_v35 = vpop.xlane.xlu0 %3405  ;;  %v6436_v40 = vld [vmem:[#allocation43_spill] sm:$0xff] }
 0x61b   : > { %v3441_v27 = vmul.f32 0.0078125, %v3406_v35  ;;  %v3472_v62 = vadd.f32 1e-05, %v3440_v24 }
 0x61c   : > { %v3569_v29 = vmul.f32 %v5974_v12, %v3532_v22  ;;  %v4313_v60 = vpop.eup %4312  ;;  %v3408_v58 = vpop.xlane.xlu1 %3407 }
 0x61d   : > { %v3473_v36 = vadd.f32 1e-05, %v3441_v27  ;;  %v4315_v23 = vpop.eup %4314  ;;  %v3533_v63 = vmul.f32 %v4313_v60, %v5926_v34  ;;  %4318 = vrsqrt.f32 %v3472_v62  ;;  %v3442_v38 = vmul.f32 0.0078125, %v3408_v58 }
 0x61e   : > { %v3606_v50 = vadd.f32 %v5980_v16, %v3569_v29  ;;  %v3350_v6 = vpop.xlane.xlu0 %3349  ;;  %v3534_v61 = vmul.f32 %v4315_v23, %v5929_v1  ;;  %v6437_v29 = vld [vmem:[#allocation44_spill] sm:$0xff] }
 0x61f   : > { %4320 = vrsqrt.f32 %v3473_v36  ;;  %v3413_v11 = vmul.f32 0.0078125, %v3350_v6  ;;  %v3570_v48 = vmul.f32 %v5974_v12, %v3533_v63  ;;  %v3474_v39 = vadd.f32 1e-05, %v3442_v38  ;;  %v6438_v36 = vld [vmem:[#allocation25_spill] sm:$0xff] }
 0x620   : > { %v3638_v21 = vadd.f32 %v3606_v50, %v6431_v45  ;;  %v4317_v43 = vpop.eup %4316  ;;  %v3571_v33 = vmul.f32 %v5974_v12, %v3534_v61  ;;  %v3412_v54 = vpop.xlane.xlu1 %3411  ;;  %v6440_v38 = vld [vmem:[#allocation45_spill] sm:$0xff] }
 0x621   : > { %v3445_v13 = vadd.f32 1e-05, %v3413_v11  ;;  %v3607_v34 = vadd.f32 %v5980_v16, %v3570_v48  ;;  %v3535_v31 = vmul.f32 %v4317_v43, %v5936_v46  ;;  %4322 = vrsqrt.f32 %v3474_v39  ;;  %v6434_v46 = vld [vmem:[#allocation41_spill] sm:$0xff] }
 0x622   : > { %3670 = vst [vmem:[%s5995_s16 + $0xb8] sm:$0xff] %v3638_v21  ;;  %v3444_v1 = vmul.f32 0.0078125, %v3412_v54  ;;  %v3410_v18 = vpop.xlane.xlu0 %3409  ;;  %v3608_v28 = vadd.f32 %v5980_v16, %v3571_v33 }
 0x623   : > { %4324 = vrsqrt.f32 %v3445_v13  ;;  %v3443_v25 = vmul.f32 0.0078125, %v3410_v18  ;;  %v3639_v56 = vadd.f32 %v3607_v34, %v6432_v37  ;;  %v3572_v10 = vmul.f32 %v5974_v12, %v3535_v31 }
 0x624   : > { %v3476_v8 = vadd.f32 1e-05, %v3444_v1  ;;  %v3640_v5 = vadd.f32 %v3608_v28, %v6433_v59 }
 0x625   : > { %v3475_v19 = vadd.f32 1e-05, %v3443_v25  ;;  %3671 = vst [vmem:[%s5995_s16 + $0xc0] sm:$0xff] %v3639_v56  ;;  %v3609_v53 = vadd.f32 %v5980_v16, %v3572_v10 }
 0x626   : > { %4326 = vrsqrt.f32 %v3476_v8  ;;  %3672 = vst [vmem:[%s5995_s16 + $0xc8] sm:$0xff] %v3640_v5 }
 0x627   : > { %4328 = vrsqrt.f32 %v3475_v19  ;;  %v3641_v4 = vadd.f32 %v3609_v53, %v6434_v46 }
 0x629   : > { %3673 = vst [vmem:[%s5995_s16 + $0xd0] sm:$0xff] %v3641_v4 }
 0x62a   : > { %v4319_v3 = vpop.eup %4318 }
 0x62b   : > { %v3536_v17 = vmul.f32 %v4319_v3, %v5941_v26 }
 0x62c   : > { %v4321_v52 = vpop.eup %4320 }
 0x62d   : > { %v3537_v15 = vmul.f32 %v4321_v52, %v5944_v49  ;;  %v3573_v55 = vmul.f32 %v5974_v12, %v3536_v17 }
 0x62e   : > { %v4323_v42 = vpop.eup %4322 }
 0x62f   : > { %v3574_v51 = vmul.f32 %v5974_v12, %v3537_v15  ;;  %v3610_v20 = vadd.f32 %v5980_v16, %v3573_v55  ;;  %v3538_v9 = vmul.f32 %v4323_v42, %v5951_v44 }
 0x630   : > { %v4325_v7 = vpop.eup %4324 }
 0x631   : > { %v3611_v47 = vadd.f32 %v5980_v16, %v3574_v51  ;;  %v3509_v32 = vmul.f32 %v4325_v7, %v5954_v41  ;;  %v3642_v26 = vadd.f32 %v3610_v20, %v6435_v14  ;;  %v3575_v49 = vmul.f32 %v5974_v12, %v3538_v9 }
 0x633   : > { %v4327_v30 = vpop.eup %4326  ;;  %v3643_v2 = vadd.f32 %v3611_v47, %v6436_v40  ;;  %v3546_v22 = vmul.f32 %v5974_v12, %v3509_v32  ;;  %3674 = vst [vmem:[%s5995_s16 + $0xd8] sm:$0xff] %v3642_v26  ;;  %v3612_v44 = vadd.f32 %v5980_v16, %v3575_v49 }
 0x634   : > { %v4329_v24 = vpop.eup %4328  ;;  %v3540_v35 = vmul.f32 %v4327_v30, %v5961_v0 }
 0x635   : > { %3675 = vst [vmem:[%s5995_s16 + $0xe0] sm:$0xff] %v3643_v2  ;;  %v3583_v41 = vadd.f32 %v5980_v16, %v3546_v22  ;;  %v3539_v27 = vmul.f32 %v4329_v24, %v5964_v57  ;;  %v3644_v62 = vadd.f32 %v3612_v44, %v6437_v29  ;;  %v6439_v57 = vld [vmem:[#allocation46_spill] sm:$0xff] }
 0x636   : > { %v3577_v60 = vmul.f32 %v5974_v12, %v3540_v35 }
 0x637   : > { %v3615_v58 = vadd.f32 %v3583_v41, %v6438_v36  ;;  %v3576_v23 = vmul.f32 %v5974_v12, %v3539_v27  ;;  %3676 = vst [vmem:[%s5995_s16 + $0xe8] sm:$0xff] %v3644_v62 }
 0x638   : > { %v3614_v0 = vadd.f32 %v5980_v16, %v3577_v60 }
 0x639   : > { %3647 = vst [vmem:[%s5995_s16] sm:$0xff] %v3615_v58  ;;  %v3613_v50 = vadd.f32 %v5980_v16, %v3576_v23 }
 0x63a   : > { %v3646_v63 = vadd.f32 %v3614_v0, %v6439_v57 }
 0x63b   : > { %v3645_v12 = vadd.f32 %v3613_v50, %v6440_v38 }
 0x63c   : > { %3678 = vst [vmem:[%s5995_s16 + $0xf8] sm:$0xff] %v3646_v63 }
 0x63d   : > { %3677 = vst [vmem:[%s5995_s16 + $0xf0] sm:$0xff] %v3645_v12 }
 0x63e   : > { %4369 = shalt.err (!%p4366_p0)
}
 0x63f   : > { %s4370_s29 = scalar_lea.hbm %s6147_s21, 4096  ;;  %s4374_s15 = scalar_lea.hbm %s6203_s7, 8192 }
 0x640   : > { %p4371_p1 = scmp.ne.s32.totalorder %s6147_s21, %s4370_s29  ;;  %p4375_p4 = scmp.lt.s32.totalorder %s6147_s21, %s6203_s7 }
 0x641   : > { %p4376_p7 = scmp.lt.s32.totalorder %s4374_s15, %s4370_s29 }
 0x642   : > { %p4372_p2 = pnand %p4371_p1, %p4508_p5 }
 0x643   : > { %p4377_p6 = por %p4376_p7, %p4375_p4 }
 0x644   : > { %p4373_p3 = pneg %p4372_p2 }
 0x646   : > { %p4378_p8 = pnand %p4377_p6, %p4373_p3 }
 0x648   : > { %4381 = shalt.err (!%p4378_p8)
}
 0x649   : > { %s4428_s19 = smov 128   ;;  %s4429_s20 = smov 8  }
 0x64a   : > { %4070 = dma.vmem_to_hbm [thread:$0]  (%p4508_p5), %s6149_s18, 4096, %s6147_s21, %s6156_s28, %s4428_s19, %s4428_s19, %s4429_s20  }
 0x64b PF: > { %p4082_p9 = scmp.ge.s32.totalorder %s4420_s27, 2  ;;  %s3708_s22 = sand.u32 1, %s4408_s24  }
 0x64c   : > { %p6441_p10 = scmp.ne.s32.totalorder %s6259_s12, 0  ;;  %s3709_s23 = scalar_lea.sflag [#allocation4], %s3708_s22 }
 0x64e   : > { %p4077_p11 = pnand %p4082_p9, %p6441_p10 }
 0x650   : > { %p4078_p12 = pneg %p4077_p11 }
 0x652   : > { %4403 = dma.done.wait (%p4078_p12), %s3709_s23, 4096  }
 0x653   : > { %4405 = vsyncadd (%p4078_p12), %s3709_s23, 4294963200  ;;  %p18_p13 = scmp.ge.s32.totalorder %s4495_s30, 4   ;;  %s6442_s24 = smov %s4412_s25 }
 0x654   : > { %s6443_s25 = smov %s4416_s26  ;;  %s6444_s26 = smov %s4506_s10 }
 0x655   : > { %s6445_s27 = smov %s4495_s30  ;;  %20 = sbr.rel (!%p18_p13) target bundleno = 4 (0x4), region = 89 }
 0x65a   :  { %3714 = vsyncpa [#allocation3], 1 }
 0x65b   :  { %3716 = vsyncpa [#allocation3 + $0x1], 1 }
 0x65c   :  { %3717 = vsyncpa [#allocation4], 1 }
 0x65d   :  { %3719 = vsyncpa [#allocation4 + $0x1], 1 }

</bundles_post_ra>
